<compile_context>
chip_gen: v6e
topology: v6e:2x2x1
jax: 0.10.0
libtpu: 0.0.40
codegen_flags: <defaults>
</compile_context>

<pallas_src>
import functools

import jax
import jax.numpy as jnp
import numpy as np
from jax import lax
from jax.experimental import pallas as pl
from jax.experimental.pallas import tpu as pltpu

_BN_EPS = 1e-5
_LANE = 128


def _round_up(x, m):
  return (x + m - 1) // m * m


def _tpu_budget():
  """Returns (vmem_limit_bytes, matmul-M tile target) per TPU generation."""
  try:
    vmem = pltpu.get_tpu_info().vmem_capacity_bytes
  except Exception:  # no info available -> conservative (v7x-safe) budget
    vmem = 64 * 1024 * 1024
  if vmem >= 96 * 1024 * 1024:          # v5e / v6e: 128 MiB physical VMEM
    return 96 * 1024 * 1024, 1024
  return 40 * 1024 * 1024, 512          # v7x: 64 MiB physical VMEM


# ---------------------------------------------------------------------------
# Pass 1: fused 3x3 conv (9 shifted MXU matmuls, no im2col) + BN partial stats
# ---------------------------------------------------------------------------
def _str_conv_stats_kernel(x_ref, w_ref, y_ref, stats_ref, *, tile_h, wo, dil,
                           ho_valid):
  """Grid (N, row-tiles).

  x_ref:     (Hp, Wp, Cin_pad)  resident zero-padded bf16 image (one sample)
  w_ref:     (9, Cin_pad, Cpad) resident thresholded bf16 weight
  y_ref:     (tile_h, Wo, Cpad) bf16 un-normalized conv output tile
  stats_ref: (2, Cpad)          per-sample [sum; sum of squares] accumulator
  """
  t_i = pl.program_id(1)

  @pl.when(t_i == 0)
  def _():
    stats_ref[...] = jnp.zeros_like(stats_ref)

  cin_pad = x_ref.shape[-1]
  cpad = y_ref.shape[-1]
  r0 = t_i * tile_h

  acc = None
  for kh in range(3):
    for kw in range(3):
      xs = x_ref[pl.ds(r0 + kh * dil, tile_h), pl.ds(kw * dil, wo), :]
      part = jnp.dot(xs.reshape(tile_h * wo, cin_pad), w_ref[kh * 3 + kw],
                     preferred_element_type=jnp.float32)
      acc = part if acc is None else acc + part

  acc3 = acc.reshape(tile_h, wo, cpad)
  y_ref[...] = acc3.astype(y_ref.dtype)

  if ho_valid % tile_h != 0:
    # Rows past the real output height exist only because the grid pads the
    # row axis; keep them out of the batch statistics (static-shape branch).
    rows = lax.broadcasted_iota(jnp.int32, (tile_h, 1, 1), 0)
    acc3 = jnp.where(rows + r0 < ho_valid, acc3, 0.0)

  stats_ref[0:1, :] += jnp.sum(acc3, axis=(0, 1))[None, :]
  stats_ref[1:2, :] += jnp.sum(acc3 * acc3, axis=(0, 1))[None, :]


# ---------------------------------------------------------------------------
# Pass 2: out = y * scale + offset (+ReLU)   (scale/offset precomputed in XLA)
# ---------------------------------------------------------------------------
def _bn_scale_offset_kernel(y_ref, scale_ref, off_ref, out_ref, *, apply_relu):
  out = y_ref[...].astype(jnp.float32) * scale_ref[...] + off_ref[...]
  if apply_relu:
    out = jnp.maximum(out, 0.0)
  out_ref[...] = out.astype(out_ref.dtype)


# ---------------------------------------------------------------------------
# One STRConv3x3 + BatchNorm (+per-sample keep-mask) (+ReLU) block
# ---------------------------------------------------------------------------
def _str_conv_bn(x_nhwc, w_oihw, s, gamma, beta, sample_mask, *, apply_relu,
                 out_dtype, stride=1, dilation=1):
  if stride != 1:
    # TODO(synk): stride > 1 (downsampling conv1) needs strided row/col slices
    # in the kernel; only the stride=1 BasicBlock path is implemented here.
    raise NotImplementedError("stride != 1 is not supported by this kernel")

  n, h, w_sp, c_given = x_nhwc.shape
  cout, cin, ksz, _ = w_oihw.shape
  assert ksz == 3
  cin_pad = _round_up(cin, _LANE)
  cpad = _round_up(cout, _LANE)
  assert c_given in (cin, cin_pad)
  dil = int(dilation)

  ho, wo = h, w_sp                              # stride-1 'same' conv
  vmem_limit, tile_m_target = _tpu_budget()
  tile_h = max(1, min(ho, tile_m_target // max(wo, 1)))
  n_tiles = (ho + tile_h - 1) // tile_h
  ho_pad = n_tiles * tile_h

  # Single zero-pad copy of the activation (spatial halo + channel lanes +
  # bottom rows so every in-kernel row slab stays in bounds).
  hp = ho_pad + 2 * dil
  wp = wo + 2 * dil
  xp = jnp.pad(x_nhwc.astype(jnp.bfloat16),
               ((0, 0), (dil, dil + ho_pad - ho), (dil, dil),
                (0, cin_pad - c_given)))

  # STR soft-threshold (sign(w)*relu(|w| - sigmoid(s))) once, in XLA glue.
  thr = jax.nn.sigmoid(jnp.asarray(s, jnp.float32))
  wf = jnp.asarray(w_oihw, jnp.float32)
  sw = jnp.sign(wf) * jnp.maximum(jnp.abs(wf) - thr, 0.0)
  sw = jnp.transpose(sw, (2, 3, 1, 0)).reshape(9, cin, cout)
  sw = jnp.pad(sw, ((0, 0), (0, cin_pad - cin), (0, cpad - cout)))
  sw = sw.astype(jnp.bfloat16)

  # ---- pass 1: conv + per-sample partial BN statistics ---------------------
  y_unnorm, stats_part = pl.pallas_call(
      functools.partial(_str_conv_stats_kernel, tile_h=tile_h, wo=wo, dil=dil,
                        ho_valid=ho),
      grid=(n, n_tiles),
      in_specs=[
          pl.BlockSpec((None, hp, wp, cin_pad), lambda ni, ti: (ni, 0, 0, 0)),
          pl.BlockSpec((9, cin_pad, cpad), lambda ni, ti: (0, 0, 0)),
      ],
      out_specs=[
          pl.BlockSpec((None, tile_h, wo, cpad), lambda ni, ti: (ni, ti, 0, 0)),
          pl.BlockSpec((None, 2, cpad), lambda ni, ti: (ni, 0, 0)),
      ],
      out_shape=[
          jax.ShapeDtypeStruct((n, ho_pad, wo, cpad), jnp.bfloat16),
          jax.ShapeDtypeStruct((n, 2, cpad), jnp.float32),
      ],
      compiler_params=pltpu.CompilerParams(
          dimension_semantics=("parallel", "arbitrary"),
          vmem_limit_bytes=vmem_limit),
      cost_estimate=pl.CostEstimate(
          flops=2 * 9 * n * ho_pad * wo * cin_pad * cpad,
          transcendentals=0,
          bytes_accessed=(xp.size * 2 + sw.size * 2
                          + n * ho_pad * wo * cpad * 2 + n * 2 * cpad * 4)),
  )(xp, sw)

  # ---- tiny XLA finalize: global BN stats -> per-(n, c) scale/offset -------
  m_real = float(n * ho * wo)
  tot = jnp.sum(stats_part, axis=0)             # (2, Cpad)
  mean = tot[0] / m_real
  var = jnp.maximum(tot[1] / m_real - mean * mean, 0.0)   # biased (training)
  rstd = lax.rsqrt(var + _BN_EPS)

  gpad = jnp.zeros((cpad,), jnp.float32).at[:cout].set(
      jnp.asarray(gamma, jnp.float32))
  bpad = jnp.zeros((cpad,), jnp.float32).at[:cout].set(
      jnp.asarray(beta, jnp.float32))
  scale_c = rstd * gpad
  off_c = bpad - mean * scale_c                 # padded channels stay exactly 0
  if sample_mask is None:
    scale = jnp.broadcast_to(scale_c, (n, cpad))
    off = jnp.broadcast_to(off_c, (n, cpad))
  else:
    mpad = jnp.zeros((n, cpad), jnp.float32).at[:, :cout].set(
        jnp.asarray(sample_mask, jnp.float32))
    scale = scale_c[None, :] * mpad
    off = off_c[None, :] * mpad
  scale = scale.reshape(n, 1, 1, cpad)
  off = off.reshape(n, 1, 1, cpad)

  # ---- pass 2: y*scale + offset (+ReLU), aliased in place when possible ----
  alias = {0: 0} if jnp.dtype(out_dtype) == y_unnorm.dtype else {}
  out = pl.pallas_call(
      functools.partial(_bn_scale_offset_kernel, apply_relu=apply_relu),
      grid=(n, n_tiles),
      in_specs=[
          pl.BlockSpec((None, tile_h, wo, cpad), lambda ni, ti: (ni, ti, 0, 0)),
          pl.BlockSpec((None, 1, 1, cpad), lambda ni, ti: (ni, 0, 0, 0)),
          pl.BlockSpec((None, 1, 1, cpad), lambda ni, ti: (ni, 0, 0, 0)),
      ],
      out_specs=pl.BlockSpec((None, tile_h, wo, cpad),
                             lambda ni, ti: (ni, ti, 0, 0)),
      out_shape=jax.ShapeDtypeStruct((n, ho_pad, wo, cpad), out_dtype),
      input_output_aliases=alias,
      compiler_params=pltpu.CompilerParams(
          dimension_semantics=("parallel", "parallel"),
          vmem_limit_bytes=vmem_limit),
  )(y_unnorm, scale, off)

  return out, ho, wo


# ---------------------------------------------------------------------------
# Parameters + forward (BasicBlock.forward semantics)
# ---------------------------------------------------------------------------
def make_basic_block_params(key, inplanes, planes):
  """Deterministic synthetic parameters (shapes from BasicBlock.__init__)."""
  ks = jax.random.split(key, 6)
  w1 = jax.random.normal(ks[0], (planes, inplanes, 3, 3), jnp.float32) * 0.5
  w2 = jax.random.normal(ks[1], (planes, planes, 3, 3), jnp.float32) * 0.5
  s1 = jnp.float32(-3.0)          # sigmoid(-3) ~ 0.047 -> most weights survive
  s2 = jnp.float32(-3.0)
  g1 = 1.0 + 0.1 * jax.random.normal(ks[2], (planes,), jnp.float32)
  b1 = 0.1 * jax.random.normal(ks[3], (planes,), jnp.float32)
  g2 = 1.0 + 0.1 * jax.random.normal(ks[4], (planes,), jnp.float32)
  b2 = 0.1 * jax.random.normal(ks[5], (planes,), jnp.float32)
  keep_channels = (planes * np.cumsum([0, 0.25, 0.25, 0.5])).astype('int')
  keep_masks = np.zeros((len(keep_channels), planes), np.float32)
  for i, kc in enumerate(keep_channels):
    keep_masks[i, :kc] = 1.0
  return dict(w1=w1, w2=w2, s1=s1, s2=s2, g1=g1, b1=b1, g2=g2, b2=b2,
              keep_masks=jnp.asarray(keep_masks))


def basic_block_forward(x_nchw, params, keep=None, stride=1, dilation=1):
  """conv1 -> bn1 -> [*keep_mask] -> relu -> conv2 -> bn2."""
  x = jnp.transpose(x_nchw, (0, 2, 3, 1))                     # NCHW -> NHWC
  planes = params['w2'].shape[0]

  if keep is None:
    mask1 = None
  else:
    keep = jnp.asarray(keep, jnp.int32)
    mask1 = params['keep_masks'][keep]                         # (N, planes)

  # conv1 + bn1 (+keep mask) + relu -- bf16 intermediate, channel-padded lanes
  out1, ho1, _ = _str_conv_bn(x, params['w1'], params['s1'], params['g1'],
                              params['b1'], mask1, apply_relu=True,
                              out_dtype=jnp.bfloat16, stride=stride,
                              dilation=dilation)
  out1 = out1[:, :ho1]          # drop grid-padding rows; zero lanes kept as-is

  # conv2 + bn2 -- consumes the channel-padded activation directly
  out2, ho2, _ = _str_conv_bn(out1, params['w2'], params['s2'], params['g2'],
                              params['b2'], None, apply_relu=False,
                              out_dtype=jnp.float32, stride=1,
                              dilation=dilation)
  y = out2[:, :ho2, :, :planes]
  return jnp.transpose(y, (0, 3, 1, 2))                        # NHWC -> NCHW


if __name__ == "__main__":
  key = jax.random.PRNGKey(0)
  k_x, k_p = jax.random.split(key)

  inplanes, planes = 4, 8
  x = jax.random.normal(k_x, (2, inplanes, 16, 16), jnp.float32)
  params = make_basic_block_params(k_p, inplanes, planes)

  fwd = jax.jit(basic_block_forward, static_argnames=("stride", "dilation"))

  # keep=None path (default forward)
  y = fwd(x, params)
  jax.block_until_ready(y)
  assert y.shape == (2, planes, 16, 16)
  assert bool(jnp.all(jnp.isfinite(y)))

  # keep path (per-sample channel keep-mask, as in forward(x, keep))
  y_keep = fwd(x, params, keep=jnp.array([1, 3]))
  jax.block_until_ready(y_keep)
  assert y_keep.shape == (2, planes, 16, 16)
  assert bool(jnp.all(jnp.isfinite(y_keep)))

  print("KERNEL_OK")
</pallas_src>

<mosaic_0001>
module attributes {stable_mosaic.version = 11 : i64} {
  func.func @_str_conv_stats_kernel(%arg0: i32, %arg1: i32, %arg2: memref<1x18x18x128xbf16, #tpu.memory_space<vmem>>, %arg3: memref<9x128x128xbf16, #tpu.memory_space<vmem>>, %arg4: memref<1x16x16x128xbf16, #tpu.memory_space<vmem>>, %arg5: memref<1x2x128xf32, #tpu.memory_space<vmem>>) attributes {dimension_semantics = [#tpu.dimension_semantics<parallel>, #tpu.dimension_semantics<arbitrary>], iteration_bounds = array<i64: 2, 1>, scalar_prefetch = 0 : i64, scratch_operands = 0 : i64, tpu.core_type = #tpu.core_type<tc>, window_params = [{transform_indices = @transform_0, window_bounds = array<i64: 1, 18, 18, 128>}, {pipeline_mode = #tpu.pipeline_mode<synchronous>, transform_indices = @transform_1, window_bounds = array<i64: 9, 128, 128>}, {transform_indices = @transform_2, window_bounds = array<i64: 1, 16, 16, 128>}, {transform_indices = @transform_3, window_bounds = array<i64: 1, 2, 128>}]} {
    %c0_i32 = arith.constant 0 : i32
    %0 = arith.cmpi eq, %arg1, %c0_i32 : i32
    %1 = arith.extui %0 : i1 to i32
    %c0_i32_0 = arith.constant 0 : i32
    %2 = arith.cmpi ne, %1, %c0_i32_0 : i32
    scf.if %2 {
      %cst_79 = arith.constant 0.000000e+00 : f32
      %106 = vector.broadcast %cst_79 : f32 to vector<2x128xf32>
      %c0_80 = arith.constant 0 : index
      %c0_81 = arith.constant 0 : index
      %c0_82 = arith.constant 0 : index
      %107 = vector.load %arg5[%c0_80, %c0_81, %c0_82] : memref<1x2x128xf32, #tpu.memory_space<vmem>>, vector<1x2x128xf32>
      %108 = vector.shape_cast %107 : vector<1x2x128xf32> to vector<2x128xf32>
      %109 = vector.shape_cast %106 : vector<2x128xf32> to vector<1x2x128xf32>
      tpu.vector_store %arg5[%c0_80, %c0_81, %c0_82], %109 {strides = array<i32>} : memref<1x2x128xf32, #tpu.memory_space<vmem>>, vector<1x2x128xf32>,
    } else {
    }
    %c16_i32 = arith.constant 16 : i32
    %3 = arith.muli %arg1, %c16_i32 : i32
    %c0_i32_1 = arith.constant 0 : i32
    %4 = arith.addi %3, %c0_i32_1 : i32
    %c0 = arith.constant 0 : index
    %5 = arith.index_cast %4 : i32 to index
    %c0_2 = arith.constant 0 : index
    %c0_3 = arith.constant 0 : index
    %6 = vector.load %arg2[%c0, %5, %c0_2, %c0_3] : memref<1x18x18x128xbf16, #tpu.memory_space<vmem>>, vector<1x16x16x128xbf16>
    %7 = vector.shape_cast %6 : vector<1x16x16x128xbf16> to vector<16x16x128xbf16>
    %8 = vector.shape_cast %7 : vector<16x16x128xbf16> to vector<256x128xbf16>
    %c0_4 = arith.constant 0 : index
    %c0_5 = arith.constant 0 : index
    %c0_6 = arith.constant 0 : index
    %9 = vector.load %arg3[%c0_4, %c0_5, %c0_6] : memref<9x128x128xbf16, #tpu.memory_space<vmem>>, vector<1x128x128xbf16>
    %10 = vector.shape_cast %9 : vector<1x128x128xbf16> to vector<128x128xbf16>
    %cst = arith.constant dense<0.000000e+00> : vector<256x128xf32>
    %11 = tpu.matmul %8, %10, %cst {dimension_numbers = #tpu.dot_dimension_numbers<[1], [0], [0], [1], [0, 0, 1, 1], [], []>} : vector<256x128xbf16>, vector<128x128xbf16>, vector<256x128xf32> -> vector<256x128xf32>
    %c0_i32_7 = arith.constant 0 : i32
    %12 = arith.addi %3, %c0_i32_7 : i32
    %c0_8 = arith.constant 0 : index
    %13 = arith.index_cast %12 : i32 to index
    %c1 = arith.constant 1 : index
    %c0_9 = arith.constant 0 : index
    %14 = vector.load %arg2[%c0_8, %13, %c1, %c0_9] : memref<1x18x18x128xbf16, #tpu.memory_space<vmem>>, vector<1x16x16x128xbf16>
    %15 = vector.shape_cast %14 : vector<1x16x16x128xbf16> to vector<16x16x128xbf16>
    %16 = vector.shape_cast %15 : vector<16x16x128xbf16> to vector<256x128xbf16>
    %c1_10 = arith.constant 1 : index
    %c0_11 = arith.constant 0 : index
    %c0_12 = arith.constant 0 : index
    %17 = vector.load %arg3[%c1_10, %c0_11, %c0_12] : memref<9x128x128xbf16, #tpu.memory_space<vmem>>, vector<1x128x128xbf16>
    %18 = vector.shape_cast %17 : vector<1x128x128xbf16> to vector<128x128xbf16>
    %cst_13 = arith.constant dense<0.000000e+00> : vector<256x128xf32>
    %19 = tpu.matmul %16, %18, %cst_13 {dimension_numbers = #tpu.dot_dimension_numbers<[1], [0], [0], [1], [0, 0, 1, 1], [], []>} : vector<256x128xbf16>, vector<128x128xbf16>, vector<256x128xf32> -> vector<256x128xf32>
    %20 = arith.addf %11, %19 : vector<256x128xf32>
    %c0_i32_14 = arith.constant 0 : i32
    %21 = arith.addi %3, %c0_i32_14 : i32
    %c0_15 = arith.constant 0 : index
    %22 = arith.index_cast %21 : i32 to index
    %c2 = arith.constant 2 : index
    %c0_16 = arith.constant 0 : index
    %23 = vector.load %arg2[%c0_15, %22, %c2, %c0_16] : memref<1x18x18x128xbf16, #tpu.memory_space<vmem>>, vector<1x16x16x128xbf16>
    %24 = vector.shape_cast %23 : vector<1x16x16x128xbf16> to vector<16x16x128xbf16>
    %25 = vector.shape_cast %24 : vector<16x16x128xbf16> to vector<256x128xbf16>
    %c2_17 = arith.constant 2 : index
    %c0_18 = arith.constant 0 : index
    %c0_19 = arith.constant 0 : index
    %26 = vector.load %arg3[%c2_17, %c0_18, %c0_19] : memref<9x128x128xbf16, #tpu.memory_space<vmem>>, vector<1x128x128xbf16>
    %27 = vector.shape_cast %26 : vector<1x128x128xbf16> to vector<128x128xbf16>
    %cst_20 = arith.constant dense<0.000000e+00> : vector<256x128xf32>
    %28 = tpu.matmul %25, %27, %cst_20 {dimension_numbers = #tpu.dot_dimension_numbers<[1], [0], [0], [1], [0, 0, 1, 1], [], []>} : vector<256x128xbf16>, vector<128x128xbf16>, vector<256x128xf32> -> vector<256x128xf32>
    %29 = arith.addf %20, %28 : vector<256x128xf32>
    %c1_i32 = arith.constant 1 : i32
    %30 = arith.addi %3, %c1_i32 : i32
    %c0_21 = arith.constant 0 : index
    %31 = arith.index_cast %30 : i32 to index
    %c0_22 = arith.constant 0 : index
    %c0_23 = arith.constant 0 : index
    %32 = vector.load %arg2[%c0_21, %31, %c0_22, %c0_23] : memref<1x18x18x128xbf16, #tpu.memory_space<vmem>>, vector<1x16x16x128xbf16>
    %33 = vector.shape_cast %32 : vector<1x16x16x128xbf16> to vector<16x16x128xbf16>
    %34 = vector.shape_cast %33 : vector<16x16x128xbf16> to vector<256x128xbf16>
    %c3 = arith.constant 3 : index
    %c0_24 = arith.constant 0 : index
    %c0_25 = arith.constant 0 : index
    %35 = vector.load %arg3[%c3, %c0_24, %c0_25] : memref<9x128x128xbf16, #tpu.memory_space<vmem>>, vector<1x128x128xbf16>
    %36 = vector.shape_cast %35 : vector<1x128x128xbf16> to vector<128x128xbf16>
    %cst_26 = arith.constant dense<0.000000e+00> : vector<256x128xf32>
    %37 = tpu.matmul %34, %36, %cst_26 {dimension_numbers = #tpu.dot_dimension_numbers<[1], [0], [0], [1], [0, 0, 1, 1], [], []>} : vector<256x128xbf16>, vector<128x128xbf16>, vector<256x128xf32> -> vector<256x128xf32>
    %38 = arith.addf %29, %37 : vector<256x128xf32>
    %c1_i32_27 = arith.constant 1 : i32
    %39 = arith.addi %3, %c1_i32_27 : i32
    %c0_28 = arith.constant 0 : index
    %40 = arith.index_cast %39 : i32 to index
    %c1_29 = arith.constant 1 : index
    %c0_30 = arith.constant 0 : index
    %41 = vector.load %arg2[%c0_28, %40, %c1_29, %c0_30] : memref<1x18x18x128xbf16, #tpu.memory_space<vmem>>, vector<1x16x16x128xbf16>
    %42 = vector.shape_cast %41 : vector<1x16x16x128xbf16> to vector<16x16x128xbf16>
    %43 = vector.shape_cast %42 : vector<16x16x128xbf16> to vector<256x128xbf16>
    %c4 = arith.constant 4 : index
    %c0_31 = arith.constant 0 : index
    %c0_32 = arith.constant 0 : index
    %44 = vector.load %arg3[%c4, %c0_31, %c0_32] : memref<9x128x128xbf16, #tpu.memory_space<vmem>>, vector<1x128x128xbf16>
    %45 = vector.shape_cast %44 : vector<1x128x128xbf16> to vector<128x128xbf16>
    %cst_33 = arith.constant dense<0.000000e+00> : vector<256x128xf32>
    %46 = tpu.matmul %43, %45, %cst_33 {dimension_numbers = #tpu.dot_dimension_numbers<[1], [0], [0], [1], [0, 0, 1, 1], [], []>} : vector<256x128xbf16>, vector<128x128xbf16>, vector<256x128xf32> -> vector<256x128xf32>
    %47 = arith.addf %38, %46 : vector<256x128xf32>
    %c1_i32_34 = arith.constant 1 : i32
    %48 = arith.addi %3, %c1_i32_34 : i32
    %c0_35 = arith.constant 0 : index
    %49 = arith.index_cast %48 : i32 to index
    %c2_36 = arith.constant 2 : index
    %c0_37 = arith.constant 0 : index
    %50 = vector.load %arg2[%c0_35, %49, %c2_36, %c0_37] : memref<1x18x18x128xbf16, #tpu.memory_space<vmem>>, vector<1x16x16x128xbf16>
    %51 = vector.shape_cast %50 : vector<1x16x16x128xbf16> to vector<16x16x128xbf16>
    %52 = vector.shape_cast %51 : vector<16x16x128xbf16> to vector<256x128xbf16>
    %c5 = arith.constant 5 : index
    %c0_38 = arith.constant 0 : index
    %c0_39 = arith.constant 0 : index
    %53 = vector.load %arg3[%c5, %c0_38, %c0_39] : memref<9x128x128xbf16, #tpu.memory_space<vmem>>, vector<1x128x128xbf16>
    %54 = vector.shape_cast %53 : vector<1x128x128xbf16> to vector<128x128xbf16>
    %cst_40 = arith.constant dense<0.000000e+00> : vector<256x128xf32>
    %55 = tpu.matmul %52, %54, %cst_40 {dimension_numbers = #tpu.dot_dimension_numbers<[1], [0], [0], [1], [0, 0, 1, 1], [], []>} : vector<256x128xbf16>, vector<128x128xbf16>, vector<256x128xf32> -> vector<256x128xf32>
    %56 = arith.addf %47, %55 : vector<256x128xf32>
    %c2_i32 = arith.constant 2 : i32
    %57 = arith.addi %3, %c2_i32 : i32
    %c0_41 = arith.constant 0 : index
    %58 = arith.index_cast %57 : i32 to index
    %c0_42 = arith.constant 0 : index
    %c0_43 = arith.constant 0 : index
    %59 = vector.load %arg2[%c0_41, %58, %c0_42, %c0_43] : memref<1x18x18x128xbf16, #tpu.memory_space<vmem>>, vector<1x16x16x128xbf16>
    %60 = vector.shape_cast %59 : vector<1x16x16x128xbf16> to vector<16x16x128xbf16>
    %61 = vector.shape_cast %60 : vector<16x16x128xbf16> to vector<256x128xbf16>
    %c6 = arith.constant 6 : index
    %c0_44 = arith.constant 0 : index
    %c0_45 = arith.constant 0 : index
    %62 = vector.load %arg3[%c6, %c0_44, %c0_45] : memref<9x128x128xbf16, #tpu.memory_space<vmem>>, vector<1x128x128xbf16>
    %63 = vector.shape_cast %62 : vector<1x128x128xbf16> to vector<128x128xbf16>
    %cst_46 = arith.constant dense<0.000000e+00> : vector<256x128xf32>
    %64 = tpu.matmul %61, %63, %cst_46 {dimension_numbers = #tpu.dot_dimension_numbers<[1], [0], [0], [1], [0, 0, 1, 1], [], []>} : vector<256x128xbf16>, vector<128x128xbf16>, vector<256x128xf32> -> vector<256x128xf32>
    %65 = arith.addf %56, %64 : vector<256x128xf32>
    %c2_i32_47 = arith.constant 2 : i32
    %66 = arith.addi %3, %c2_i32_47 : i32
    %c0_48 = arith.constant 0 : index
    %67 = arith.index_cast %66 : i32 to index
    %c1_49 = arith.constant 1 : index
    %c0_50 = arith.constant 0 : index
    %68 = vector.load %arg2[%c0_48, %67, %c1_49, %c0_50] : memref<1x18x18x128xbf16, #tpu.memory_space<vmem>>, vector<1x16x16x128xbf16>
    %69 = vector.shape_cast %68 : vector<1x16x16x128xbf16> to vector<16x16x128xbf16>
    %70 = vector.shape_cast %69 : vector<16x16x128xbf16> to vector<256x128xbf16>
    %c7 = arith.constant 7 : index
    %c0_51 = arith.constant 0 : index
    %c0_52 = arith.constant 0 : index
    %71 = vector.load %arg3[%c7, %c0_51, %c0_52] : memref<9x128x128xbf16, #tpu.memory_space<vmem>>, vector<1x128x128xbf16>
    %72 = vector.shape_cast %71 : vector<1x128x128xbf16> to vector<128x128xbf16>
    %cst_53 = arith.constant dense<0.000000e+00> : vector<256x128xf32>
    %73 = tpu.matmul %70, %72, %cst_53 {dimension_numbers = #tpu.dot_dimension_numbers<[1], [0], [0], [1], [0, 0, 1, 1], [], []>} : vector<256x128xbf16>, vector<128x128xbf16>, vector<256x128xf32> -> vector<256x128xf32>
    %74 = arith.addf %65, %73 : vector<256x128xf32>
    %c2_i32_54 = arith.constant 2 : i32
    %75 = arith.addi %3, %c2_i32_54 : i32
    %c0_55 = arith.constant 0 : index
    %76 = arith.index_cast %75 : i32 to index
    %c2_56 = arith.constant 2 : index
    %c0_57 = arith.constant 0 : index
    %77 = vector.load %arg2[%c0_55, %76, %c2_56, %c0_57] : memref<1x18x18x128xbf16, #tpu.memory_space<vmem>>, vector<1x16x16x128xbf16>
    %78 = vector.shape_cast %77 : vector<1x16x16x128xbf16> to vector<16x16x128xbf16>
    %79 = vector.shape_cast %78 : vector<16x16x128xbf16> to vector<256x128xbf16>
    %c8 = arith.constant 8 : index
    %c0_58 = arith.constant 0 : index
    %c0_59 = arith.constant 0 : index
    %80 = vector.load %arg3[%c8, %c0_58, %c0_59] : memref<9x128x128xbf16, #tpu.memory_space<vmem>>, vector<1x128x128xbf16>
    %81 = vector.shape_cast %80 : vector<1x128x128xbf16> to vector<128x128xbf16>
    %cst_60 = arith.constant dense<0.000000e+00> : vector<256x128xf32>
    %82 = tpu.matmul %79, %81, %cst_60 {dimension_numbers = #tpu.dot_dimension_numbers<[1], [0], [0], [1], [0, 0, 1, 1], [], []>} : vector<256x128xbf16>, vector<128x128xbf16>, vector<256x128xf32> -> vector<256x128xf32>
    %83 = arith.addf %74, %82 : vector<256x128xf32>
    %84 = vector.shape_cast %83 : vector<256x128xf32> to vector<16x16x128xf32>
    %85 = arith.truncf %84 : vector<16x16x128xf32> to vector<16x16x128xbf16>
    %c0_61 = arith.constant 0 : index
    %c0_62 = arith.constant 0 : index
    %c0_63 = arith.constant 0 : index
    %c0_64 = arith.constant 0 : index
    %86 = vector.load %arg4[%c0_61, %c0_62, %c0_63, %c0_64] : memref<1x16x16x128xbf16, #tpu.memory_space<vmem>>, vector<1x16x16x128xbf16>
    %87 = vector.shape_cast %86 : vector<1x16x16x128xbf16> to vector<16x16x128xbf16>
    %88 = vector.shape_cast %85 : vector<16x16x128xbf16> to vector<1x16x16x128xbf16>
    tpu.vector_store %arg4[%c0_61, %c0_62, %c0_63, %c0_64], %88 {strides = array<i32>} : memref<1x16x16x128xbf16, #tpu.memory_space<vmem>>, vector<1x16x16x128xbf16>,
    %c0_65 = arith.constant 0 : index
    %c0_66 = arith.constant 0 : index
    %c0_67 = arith.constant 0 : index
    %89 = vector.load %arg5[%c0_65, %c0_66, %c0_67] : memref<1x2x128xf32, #tpu.memory_space<vmem>>, vector<1x1x128xf32>
    %90 = vector.shape_cast %89 : vector<1x1x128xf32> to vector<1x128xf32>
    %cst_68 = arith.constant dense<0.000000e+00> : vector<128xf32>
    %91 = vector.multi_reduction <add>, %84, %cst_68 [0, 1] : vector<16x16x128xf32> to vector<128xf32>
    %92 = vector.shape_cast %91 : vector<128xf32> to vector<1x128xf32>
    %93 = arith.addf %90, %92 : vector<1x128xf32>
    %c0_69 = arith.constant 0 : index
    %c0_70 = arith.constant 0 : index
    %c0_71 = arith.constant 0 : index
    %94 = vector.load %arg5[%c0_69, %c0_70, %c0_71] : memref<1x2x128xf32, #tpu.memory_space<vmem>>, vector<1x1x128xf32>
    %95 = vector.shape_cast %94 : vector<1x1x128xf32> to vector<1x128xf32>
    %96 = vector.shape_cast %93 : vector<1x128xf32> to vector<1x1x128xf32>
    tpu.vector_store %arg5[%c0_69, %c0_70, %c0_71], %96 {strides = array<i32>} : memref<1x2x128xf32, #tpu.memory_space<vmem>>, vector<1x1x128xf32>,
    %c0_72 = arith.constant 0 : index
    %c1_73 = arith.constant 1 : index
    %c0_74 = arith.constant 0 : index
    %97 = vector.load %arg5[%c0_72, %c1_73, %c0_74] : memref<1x2x128xf32, #tpu.memory_space<vmem>>, vector<1x1x128xf32>
    %98 = vector.shape_cast %97 : vector<1x1x128xf32> to vector<1x128xf32>
    %99 = arith.mulf %84, %84 : vector<16x16x128xf32>
    %cst_75 = arith.constant dense<0.000000e+00> : vector<128xf32>
    %100 = vector.multi_reduction <add>, %99, %cst_75 [0, 1] : vector<16x16x128xf32> to vector<128xf32>
    %101 = vector.shape_cast %100 : vector<128xf32> to vector<1x128xf32>
    %102 = arith.addf %98, %101 : vector<1x128xf32>
    %c0_76 = arith.constant 0 : index
    %c1_77 = arith.constant 1 : index
    %c0_78 = arith.constant 0 : index
    %103 = vector.load %arg5[%c0_76, %c1_77, %c0_78] : memref<1x2x128xf32, #tpu.memory_space<vmem>>, vector<1x1x128xf32>
    %104 = vector.shape_cast %103 : vector<1x1x128xf32> to vector<1x128xf32>
    %105 = vector.shape_cast %102 : vector<1x128xf32> to vector<1x1x128xf32>
    tpu.vector_store %arg5[%c0_76, %c1_77, %c0_78], %105 {strides = array<i32>} : memref<1x2x128xf32, #tpu.memory_space<vmem>>, vector<1x1x128xf32>,
    return
  }
  func.func @transform_0(%arg0: i32, %arg1: i32) -> (i32, i32, i32, i32) {
    %c0_i32 = arith.constant 0 : i32
    %c0_i32_0 = arith.constant 0 : i32
    %c0_i32_1 = arith.constant 0 : i32
    %c0_i32_2 = arith.constant 0 : i32
    return %arg0, %c0_i32, %c0_i32_0, %c0_i32_1 : i32, i32, i32, i32
  }
  func.func @transform_1(%arg0: i32, %arg1: i32) -> (i32, i32, i32) {
    %c0_i32 = arith.constant 0 : i32
    %c0_i32_0 = arith.constant 0 : i32
    %c0_i32_1 = arith.constant 0 : i32
    %c0_i32_2 = arith.constant 0 : i32
    return %c0_i32, %c0_i32_0, %c0_i32_1 : i32, i32, i32
  }
  func.func @transform_2(%arg0: i32, %arg1: i32) -> (i32, i32, i32, i32) {
    %c0_i32 = arith.constant 0 : i32
    %c0_i32_0 = arith.constant 0 : i32
    %c0_i32_1 = arith.constant 0 : i32
    return %arg0, %arg1, %c0_i32, %c0_i32_0 : i32, i32, i32, i32
  }
  func.func @transform_3(%arg0: i32, %arg1: i32) -> (i32, i32, i32) {
    %c0_i32 = arith.constant 0 : i32
    %c0_i32_0 = arith.constant 0 : i32
    %c0_i32_1 = arith.constant 0 : i32
    return %arg0, %c0_i32, %c0_i32_0 : i32, i32, i32
  }
}

module attributes {stable_mosaic.version = 11 : i64} {
  func.func @_bn_scale_offset_kernel(%arg0: i32, %arg1: i32, %arg2: memref<1x16x16x128xbf16, #tpu.memory_space<vmem>>, %arg3: memref<1x1x1x128xf32, #tpu.memory_space<vmem>>, %arg4: memref<1x1x1x128xf32, #tpu.memory_space<vmem>>, %arg5: memref<1x16x16x128xbf16, #tpu.memory_space<vmem>>) attributes {dimension_semantics = [#tpu.dimension_semantics<parallel>, #tpu.dimension_semantics<parallel>], iteration_bounds = array<i64: 2, 1>, scalar_prefetch = 0 : i64, scratch_operands = 0 : i64, tpu.core_type = #tpu.core_type<tc>, window_params = [{transform_indices = @transform_0, window_bounds = array<i64: 1, 16, 16, 128>}, {transform_indices = @transform_1, window_bounds = array<i64: 1, 1, 1, 128>}, {transform_indices = @transform_2, window_bounds = array<i64: 1, 1, 1, 128>}, {transform_indices = @transform_3, window_bounds = array<i64: 1, 16, 16, 128>}]} {
    %c0 = arith.constant 0 : index
    %c0_0 = arith.constant 0 : index
    %c0_1 = arith.constant 0 : index
    %c0_2 = arith.constant 0 : index
    %0 = vector.load %arg2[%c0, %c0_0, %c0_1, %c0_2] : memref<1x16x16x128xbf16, #tpu.memory_space<vmem>>, vector<1x16x16x128xbf16>
    %1 = vector.shape_cast %0 : vector<1x16x16x128xbf16> to vector<16x16x128xbf16>
    %2 = arith.extf %1 : vector<16x16x128xbf16> to vector<16x16x128xf32>
    %c0_3 = arith.constant 0 : index
    %c0_4 = arith.constant 0 : index
    %c0_5 = arith.constant 0 : index
    %c0_6 = arith.constant 0 : index
    %3 = vector.load %arg3[%c0_3, %c0_4, %c0_5, %c0_6] : memref<1x1x1x128xf32, #tpu.memory_space<vmem>>, vector<1x1x1x128xf32>
    %4 = vector.shape_cast %3 : vector<1x1x1x128xf32> to vector<1x1x128xf32>
    %5 = vector.broadcast %4 : vector<1x1x128xf32> to vector<16x16x128xf32>
    %6 = arith.mulf %2, %5 : vector<16x16x128xf32>
    %c0_7 = arith.constant 0 : index
    %c0_8 = arith.constant 0 : index
    %c0_9 = arith.constant 0 : index
    %c0_10 = arith.constant 0 : index
    %7 = vector.load %arg4[%c0_7, %c0_8, %c0_9, %c0_10] : memref<1x1x1x128xf32, #tpu.memory_space<vmem>>, vector<1x1x1x128xf32>
    %8 = vector.shape_cast %7 : vector<1x1x1x128xf32> to vector<1x1x128xf32>
    %9 = vector.broadcast %8 : vector<1x1x128xf32> to vector<16x16x128xf32>
    %10 = arith.addf %6, %9 : vector<16x16x128xf32>
    %cst = arith.constant 0.000000e+00 : f32
    %11 = vector.broadcast %cst : f32 to vector<16x16x128xf32>
    %12 = arith.maximumf %10, %11 : vector<16x16x128xf32>
    %13 = arith.truncf %12 : vector<16x16x128xf32> to vector<16x16x128xbf16>
    %c0_11 = arith.constant 0 : index
    %c0_12 = arith.constant 0 : index
    %c0_13 = arith.constant 0 : index
    %c0_14 = arith.constant 0 : index
    %14 = vector.load %arg5[%c0_11, %c0_12, %c0_13, %c0_14] : memref<1x16x16x128xbf16, #tpu.memory_space<vmem>>, vector<1x16x16x128xbf16>
    %15 = vector.shape_cast %14 : vector<1x16x16x128xbf16> to vector<16x16x128xbf16>
    %16 = vector.shape_cast %13 : vector<16x16x128xbf16> to vector<1x16x16x128xbf16>
    tpu.vector_store %arg5[%c0_11, %c0_12, %c0_13, %c0_14], %16 {strides = array<i32>} : memref<1x16x16x128xbf16, #tpu.memory_space<vmem>>, vector<1x16x16x128xbf16>,
    return
  }
  func.func @transform_0(%arg0: i32, %arg1: i32) -> (i32, i32, i32, i32) {
    %c0_i32 = arith.constant 0 : i32
    %c0_i32_0 = arith.constant 0 : i32
    %c0_i32_1 = arith.constant 0 : i32
    return %arg0, %arg1, %c0_i32, %c0_i32_0 : i32, i32, i32, i32
  }
  func.func @transform_1(%arg0: i32, %arg1: i32) -> (i32, i32, i32, i32) {
    %c0_i32 = arith.constant 0 : i32
    %c0_i32_0 = arith.constant 0 : i32
    %c0_i32_1 = arith.constant 0 : i32
    %c0_i32_2 = arith.constant 0 : i32
    return %arg0, %c0_i32, %c0_i32_0, %c0_i32_1 : i32, i32, i32, i32
  }
  func.func @transform_2(%arg0: i32, %arg1: i32) -> (i32, i32, i32, i32) {
    %c0_i32 = arith.constant 0 : i32
    %c0_i32_0 = arith.constant 0 : i32
    %c0_i32_1 = arith.constant 0 : i32
    %c0_i32_2 = arith.constant 0 : i32
    return %arg0, %c0_i32, %c0_i32_0, %c0_i32_1 : i32, i32, i32, i32
  }
  func.func @transform_3(%arg0: i32, %arg1: i32) -> (i32, i32, i32, i32) {
    %c0_i32 = arith.constant 0 : i32
    %c0_i32_0 = arith.constant 0 : i32
    %c0_i32_1 = arith.constant 0 : i32
    return %arg0, %arg1, %c0_i32, %c0_i32_0 : i32, i32, i32, i32
  }
}

module attributes {stable_mosaic.version = 11 : i64} {
  func.func @_bn_scale_offset_kernel(%arg0: i32, %arg1: i32, %arg2: memref<1x16x16x128xbf16, #tpu.memory_space<vmem>>, %arg3: memref<1x1x1x128xf32, #tpu.memory_space<vmem>>, %arg4: memref<1x1x1x128xf32, #tpu.memory_space<vmem>>, %arg5: memref<1x16x16x128xf32, #tpu.memory_space<vmem>>) attributes {dimension_semantics = [#tpu.dimension_semantics<parallel>, #tpu.dimension_semantics<parallel>], iteration_bounds = array<i64: 2, 1>, scalar_prefetch = 0 : i64, scratch_operands = 0 : i64, tpu.core_type = #tpu.core_type<tc>, window_params = [{transform_indices = @transform_0, window_bounds = array<i64: 1, 16, 16, 128>}, {transform_indices = @transform_1, window_bounds = array<i64: 1, 1, 1, 128>}, {transform_indices = @transform_2, window_bounds = array<i64: 1, 1, 1, 128>}, {transform_indices = @transform_3, window_bounds = array<i64: 1, 16, 16, 128>}]} {
    %c0 = arith.constant 0 : index
    %c0_0 = arith.constant 0 : index
    %c0_1 = arith.constant 0 : index
    %c0_2 = arith.constant 0 : index
    %0 = vector.load %arg2[%c0, %c0_0, %c0_1, %c0_2] : memref<1x16x16x128xbf16, #tpu.memory_space<vmem>>, vector<1x16x16x128xbf16>
    %1 = vector.shape_cast %0 : vector<1x16x16x128xbf16> to vector<16x16x128xbf16>
    %2 = arith.extf %1 : vector<16x16x128xbf16> to vector<16x16x128xf32>
    %c0_3 = arith.constant 0 : index
    %c0_4 = arith.constant 0 : index
    %c0_5 = arith.constant 0 : index
    %c0_6 = arith.constant 0 : index
    %3 = vector.load %arg3[%c0_3, %c0_4, %c0_5, %c0_6] : memref<1x1x1x128xf32, #tpu.memory_space<vmem>>, vector<1x1x1x128xf32>
    %4 = vector.shape_cast %3 : vector<1x1x1x128xf32> to vector<1x1x128xf32>
    %5 = vector.broadcast %4 : vector<1x1x128xf32> to vector<16x16x128xf32>
    %6 = arith.mulf %2, %5 : vector<16x16x128xf32>
    %c0_7 = arith.constant 0 : index
    %c0_8 = arith.constant 0 : index
    %c0_9 = arith.constant 0 : index
    %c0_10 = arith.constant 0 : index
    %7 = vector.load %arg4[%c0_7, %c0_8, %c0_9, %c0_10] : memref<1x1x1x128xf32, #tpu.memory_space<vmem>>, vector<1x1x1x128xf32>
    %8 = vector.shape_cast %7 : vector<1x1x1x128xf32> to vector<1x1x128xf32>
    %9 = vector.broadcast %8 : vector<1x1x128xf32> to vector<16x16x128xf32>
    %10 = arith.addf %6, %9 : vector<16x16x128xf32>
    %c0_11 = arith.constant 0 : index
    %c0_12 = arith.constant 0 : index
    %c0_13 = arith.constant 0 : index
    %c0_14 = arith.constant 0 : index
    %11 = vector.load %arg5[%c0_11, %c0_12, %c0_13, %c0_14] : memref<1x16x16x128xf32, #tpu.memory_space<vmem>>, vector<1x16x16x128xf32>
    %12 = vector.shape_cast %11 : vector<1x16x16x128xf32> to vector<16x16x128xf32>
    %13 = vector.shape_cast %10 : vector<16x16x128xf32> to vector<1x16x16x128xf32>
    tpu.vector_store %arg5[%c0_11, %c0_12, %c0_13, %c0_14], %13 {strides = array<i32>} : memref<1x16x16x128xf32, #tpu.memory_space<vmem>>, vector<1x16x16x128xf32>,
    return
  }
  func.func @transform_0(%arg0: i32, %arg1: i32) -> (i32, i32, i32, i32) {
    %c0_i32 = arith.constant 0 : i32
    %c0_i32_0 = arith.constant 0 : i32
    %c0_i32_1 = arith.constant 0 : i32
    return %arg0, %arg1, %c0_i32, %c0_i32_0 : i32, i32, i32, i32
  }
  func.func @transform_1(%arg0: i32, %arg1: i32) -> (i32, i32, i32, i32) {
    %c0_i32 = arith.constant 0 : i32
    %c0_i32_0 = arith.constant 0 : i32
    %c0_i32_1 = arith.constant 0 : i32
    %c0_i32_2 = arith.constant 0 : i32
    return %arg0, %c0_i32, %c0_i32_0, %c0_i32_1 : i32, i32, i32, i32
  }
  func.func @transform_2(%arg0: i32, %arg1: i32) -> (i32, i32, i32, i32) {
    %c0_i32 = arith.constant 0 : i32
    %c0_i32_0 = arith.constant 0 : i32
    %c0_i32_1 = arith.constant 0 : i32
    %c0_i32_2 = arith.constant 0 : i32
    return %arg0, %c0_i32, %c0_i32_0, %c0_i32_1 : i32, i32, i32, i32
  }
  func.func @transform_3(%arg0: i32, %arg1: i32) -> (i32, i32, i32, i32) {
    %c0_i32 = arith.constant 0 : i32
    %c0_i32_0 = arith.constant 0 : i32
    %c0_i32_1 = arith.constant 0 : i32
    return %arg0, %arg1, %c0_i32, %c0_i32_0 : i32, i32, i32, i32
  }
}

</mosaic_0001>

<bundles_post_ra>
// kernel: basic_block_forward.7
= control target key start
LH: loop header
LB: loop body
LE: loop exit
PB: predicated region body
PF: predicated region fallthrough
CT: control target
= control target key end

     0   :  { %s693_s12 = smov 0   ;;  %s695_s13 = smov 0   ;;  %s852_s0 = inlined_call_operand.vmem [shape: bf16[2,16,16,128], index: 0, kind: input, shape index: {}]   ;;  %s853_s1 = inlined_call_operand.vmem [shape: f32[2,1,1,128], index: 1, kind: input, shape index: {}]   ;;  %s854_s2 = inlined_call_operand.vmem [shape: f32[2,1,1,128], index: 2, kind: input, shape index: {}]   ;;  %s855_s3 = inlined_call_operand.vmem [shape: f32[2,16,16,128], index: 3, kind: output, shape index: {}]  }
   0x1   :  { %s697_s14 = smov 0  }
   0x2 LB: > { %s25_s15 = sadd.s32 1, %s667_s13  ;;  %p535_p0 = scmp.ge.s32.totalorder %s671_s14, 1  ;;  %s671_s14 = sphi %s697_s14, %s13_s14   ;;  %s667_s13 = sphi %s695_s13, %s857_s13   ;;  %s663_s12 = sphi %s693_s12, %s856_s12  }
   0x3   : > { %p27_p1 = scmp.ge.s32.totalorder %s25_s15, 2  ;;  %p175_p2 = scmp.lt.s32.totalorder %s671_s14, 3 }
   0x5   : > { %s859_s15 = smov (%p27_p1, %s25_s15), 0  ;;  %p176_p3 = pnand %p535_p0, %p175_p2 }
   0x6   : > { %p216_p4 = scmp.lt.s32.totalorder (!%p176_p3), %s663_s12, 1 }
   0x7   : > { %179 = sbr.rel (%p176_p3) target bundleno = 44 (0x2c), region = 32 }
   0xc   : > { %s861_s12 = smov (!%p216_p4, %s663_s12), 1 }
   0xd   : > { %s544_s16 = sshll.u32 %s861_s12, 7  ;;  %s228_s19 = scalar_lea.vmem %s853_s1, %s861_s12 }
   0xe   : > { %s717_s22 = scalar_lea.vmem %s852_s0, %s544_s16  ;;  %s231_s25 = scalar_lea.vmem %s854_s2, %s861_s12  ;;  %v723_v1 = vld [vmem:[%s228_s19] ss:$0 sm:$0xff] }
   0xf   : > { %v547_v0 = vld [vmem:[%s717_s22] sm:$0xff]   ;;  %v610_v2 = vld [vmem:[%s717_s22 + $0x8] sm:$0xff]   ;;  %s545_s26 = sshll.u32 %s861_s12, 8  ;;  %v611_v7 = vld [vmem:[%s717_s22 + $0x10] sm:$0xff]  }
  0x10   : > { %v548_v3 = vunpack.c.l.bf16 %v547_v0  ;;  %v549_v4 = vunpack.c.h.bf16 %v547_v0  ;;  %v552_v5 = vunpack.c.l.bf16 %v610_v2  ;;  %v553_v6 = vunpack.c.h.bf16 %v610_v2  ;;  %v612_v8 = vld [vmem:[%s717_s22 + $0x18] sm:$0xff]   ;;  %v728_v9 = vld [vmem:[%s231_s25] ss:$0 sm:$0xff]  ;;  %s737_s29 = scalar_lea.vmem %s855_s3, %s545_s26  ;;  %v614_v23 = vld [vmem:[%s717_s22 + $0x28] sm:$0xff]  }
  0x11   : > { %v556_v10 = vunpack.c.l.bf16 %v611_v7  ;;  %v557_v11 = vunpack.c.h.bf16 %v611_v7  ;;  %v560_v12 = vunpack.c.l.bf16 %v612_v8  ;;  %v561_v13 = vunpack.c.h.bf16 %v612_v8  ;;  %v613_v22 = vld [vmem:[%s717_s22 + $0x20] sm:$0xff]   ;;  %v615_v28 = vld [vmem:[%s717_s22 + $0x30] sm:$0xff]   ;;  %v616_v29 = vld [vmem:[%s717_s22 + $0x38] sm:$0xff]  }
  0x12   : > { %v314_v14 = vmul.f32 %v548_v3, %v723_v1  ;;  %v315_v15 = vmul.f32 %v549_v4, %v723_v1  ;;  %v316_v16 = vmul.f32 %v552_v5, %v723_v1  ;;  %v317_v17 = vmul.f32 %v553_v6, %v723_v1  ;;  %v617_v50 = vld [vmem:[%s717_s22 + $0x40] sm:$0xff]   ;;  %v618_v51 = vld [vmem:[%s717_s22 + $0x48] sm:$0xff]   ;;  %v619_v56 = vld [vmem:[%s717_s22 + $0x50] sm:$0xff]  }
  0x13   : > { %v318_v18 = vmul.f32 %v556_v10, %v723_v1  ;;  %v319_v19 = vmul.f32 %v557_v11, %v723_v1  ;;  %v320_v20 = vmul.f32 %v560_v12, %v723_v1  ;;  %v321_v21 = vmul.f32 %v561_v13, %v723_v1  ;;  %v620_v57 = vld [vmem:[%s717_s22 + $0x58] sm:$0xff]  }
  0x14   : > { %v353_v24 = vadd.f32 %v728_v9, %v314_v14  ;;  %v354_v25 = vadd.f32 %v728_v9, %v315_v15  ;;  %v355_v26 = vadd.f32 %v728_v9, %v316_v16  ;;  %v356_v27 = vadd.f32 %v728_v9, %v317_v17  ;;  %v621_v16 = vld [vmem:[%s717_s22 + $0x60] sm:$0xff]   ;;  %v622_v17 = vld [vmem:[%s717_s22 + $0x68] sm:$0xff]  }
  0x15   : > { %v357_v30 = vadd.f32 %v728_v9, %v318_v18  ;;  %v358_v31 = vadd.f32 %v728_v9, %v319_v19  ;;  %v359_v32 = vadd.f32 %v728_v9, %v320_v20  ;;  %v360_v33 = vadd.f32 %v728_v9, %v321_v21 }
  0x16   : > { %385 = vst [vmem:[%s737_s29] sm:$0xff] %v353_v24  ;;  %386 = vst [vmem:[%s737_s29 + $0x8] sm:$0xff] %v354_v25  ;;  %v564_v34 = vunpack.c.l.bf16 %v613_v22  ;;  %v565_v35 = vunpack.c.h.bf16 %v613_v22  ;;  %v568_v36 = vunpack.c.l.bf16 %v614_v23  ;;  %v569_v37 = vunpack.c.h.bf16 %v614_v23  ;;  %v623_v22 = vld [vmem:[%s717_s22 + $0x70] sm:$0xff]   ;;  %v624_v23 = vld [vmem:[%s717_s22 + $0x78] sm:$0xff]  }
  0x17   : > { %387 = vst [vmem:[%s737_s29 + $0x10] sm:$0xff] %v355_v26  ;;  %388 = vst [vmem:[%s737_s29 + $0x18] sm:$0xff] %v356_v27  ;;  %v572_v38 = vunpack.c.l.bf16 %v615_v28  ;;  %v573_v39 = vunpack.c.h.bf16 %v615_v28  ;;  %v576_v40 = vunpack.c.l.bf16 %v616_v29  ;;  %v577_v41 = vunpack.c.h.bf16 %v616_v29 }
  0x18   : > { %389 = vst [vmem:[%s737_s29 + $0x20] sm:$0xff] %v357_v30  ;;  %390 = vst [vmem:[%s737_s29 + $0x28] sm:$0xff] %v358_v31  ;;  %v322_v42 = vmul.f32 %v564_v34, %v723_v1  ;;  %v323_v43 = vmul.f32 %v565_v35, %v723_v1  ;;  %v324_v44 = vmul.f32 %v568_v36, %v723_v1  ;;  %v580_v62 = vunpack.c.l.bf16 %v617_v50 }
  0x19   : > { %391 = vst [vmem:[%s737_s29 + $0x30] sm:$0xff] %v359_v32  ;;  %392 = vst [vmem:[%s737_s29 + $0x38] sm:$0xff] %v360_v33  ;;  %v325_v45 = vmul.f32 %v569_v37, %v723_v1  ;;  %v326_v46 = vmul.f32 %v572_v38, %v723_v1  ;;  %v327_v47 = vmul.f32 %v573_v39, %v723_v1  ;;  %v581_v63 = vunpack.c.h.bf16 %v617_v50 }
  0x1a   : > { %v328_v48 = vmul.f32 %v576_v40, %v723_v1  ;;  %v329_v49 = vmul.f32 %v577_v41, %v723_v1  ;;  %v361_v52 = vadd.f32 %v728_v9, %v322_v42  ;;  %v362_v53 = vadd.f32 %v728_v9, %v323_v43 }
  0x1b   : > { %v363_v54 = vadd.f32 %v728_v9, %v324_v44  ;;  %v364_v55 = vadd.f32 %v728_v9, %v325_v45  ;;  %v365_v58 = vadd.f32 %v728_v9, %v326_v46  ;;  %v366_v59 = vadd.f32 %v728_v9, %v327_v47 }
  0x1c   : > { %v367_v60 = vadd.f32 %v728_v9, %v328_v48  ;;  %v368_v61 = vadd.f32 %v728_v9, %v329_v49  ;;  %393 = vst [vmem:[%s737_s29 + $0x40] sm:$0xff] %v361_v52  ;;  %394 = vst [vmem:[%s737_s29 + $0x48] sm:$0xff] %v362_v53  ;;  %v584_v0 = vunpack.c.l.bf16 %v618_v51  ;;  %v585_v2 = vunpack.c.h.bf16 %v618_v51 }
  0x1d   : > { %395 = vst [vmem:[%s737_s29 + $0x50] sm:$0xff] %v363_v54  ;;  %396 = vst [vmem:[%s737_s29 + $0x58] sm:$0xff] %v364_v55  ;;  %v588_v3 = vunpack.c.l.bf16 %v619_v56  ;;  %v589_v4 = vunpack.c.h.bf16 %v619_v56  ;;  %v592_v5 = vunpack.c.l.bf16 %v620_v57  ;;  %v593_v6 = vunpack.c.h.bf16 %v620_v57 }
  0x1e   : > { %397 = vst [vmem:[%s737_s29 + $0x60] sm:$0xff] %v365_v58  ;;  %398 = vst [vmem:[%s737_s29 + $0x68] sm:$0xff] %v366_v59  ;;  %v330_v7 = vmul.f32 %v580_v62, %v723_v1  ;;  %v331_v8 = vmul.f32 %v581_v63, %v723_v1  ;;  %v332_v10 = vmul.f32 %v584_v0, %v723_v1  ;;  %v596_v28 = vunpack.c.l.bf16 %v621_v16 }
  0x1f   : > { %399 = vst [vmem:[%s737_s29 + $0x70] sm:$0xff] %v367_v60  ;;  %400 = vst [vmem:[%s737_s29 + $0x78] sm:$0xff] %v368_v61  ;;  %v333_v11 = vmul.f32 %v585_v2, %v723_v1  ;;  %v334_v12 = vmul.f32 %v588_v3, %v723_v1  ;;  %v335_v13 = vmul.f32 %v589_v4, %v723_v1  ;;  %v597_v29 = vunpack.c.h.bf16 %v621_v16 }
  0x20   : > { %v336_v14 = vmul.f32 %v592_v5, %v723_v1  ;;  %v337_v15 = vmul.f32 %v593_v6, %v723_v1  ;;  %v369_v18 = vadd.f32 %v728_v9, %v330_v7  ;;  %v370_v19 = vadd.f32 %v728_v9, %v331_v8 }
  0x21   : > { %v371_v20 = vadd.f32 %v728_v9, %v332_v10  ;;  %v372_v21 = vadd.f32 %v728_v9, %v333_v11  ;;  %v373_v24 = vadd.f32 %v728_v9, %v334_v12  ;;  %v374_v25 = vadd.f32 %v728_v9, %v335_v13 }
  0x22   : > { %v375_v26 = vadd.f32 %v728_v9, %v336_v14  ;;  %v376_v27 = vadd.f32 %v728_v9, %v337_v15  ;;  %401 = vst [vmem:[%s737_s29 + $0x80] sm:$0xff] %v369_v18  ;;  %402 = vst [vmem:[%s737_s29 + $0x88] sm:$0xff] %v370_v19  ;;  %v600_v30 = vunpack.c.l.bf16 %v622_v17  ;;  %v601_v31 = vunpack.c.h.bf16 %v622_v17 }
  0x23   : > { %403 = vst [vmem:[%s737_s29 + $0x90] sm:$0xff] %v371_v20  ;;  %404 = vst [vmem:[%s737_s29 + $0x98] sm:$0xff] %v372_v21  ;;  %v604_v32 = vunpack.c.l.bf16 %v623_v22  ;;  %v605_v33 = vunpack.c.h.bf16 %v623_v22  ;;  %v608_v34 = vunpack.c.l.bf16 %v624_v23  ;;  %v609_v35 = vunpack.c.h.bf16 %v624_v23 }
  0x24   : > { %405 = vst [vmem:[%s737_s29 + $0xa0] sm:$0xff] %v373_v24  ;;  %406 = vst [vmem:[%s737_s29 + $0xa8] sm:$0xff] %v374_v25  ;;  %v338_v36 = vmul.f32 %v596_v28, %v723_v1  ;;  %v339_v37 = vmul.f32 %v597_v29, %v723_v1  ;;  %v340_v38 = vmul.f32 %v600_v30, %v723_v1 }
  0x25   : > { %407 = vst [vmem:[%s737_s29 + $0xb0] sm:$0xff] %v375_v26  ;;  %408 = vst [vmem:[%s737_s29 + $0xb8] sm:$0xff] %v376_v27  ;;  %v341_v39 = vmul.f32 %v601_v31, %v723_v1  ;;  %v342_v40 = vmul.f32 %v604_v32, %v723_v1  ;;  %v343_v41 = vmul.f32 %v605_v33, %v723_v1 }
  0x26   : > { %v344_v42 = vmul.f32 %v608_v34, %v723_v1  ;;  %v345_v43 = vmul.f32 %v609_v35, %v723_v1  ;;  %v377_v44 = vadd.f32 %v728_v9, %v338_v36  ;;  %v378_v45 = vadd.f32 %v728_v9, %v339_v37 }
  0x27   : > { %v379_v46 = vadd.f32 %v728_v9, %v340_v38  ;;  %v380_v47 = vadd.f32 %v728_v9, %v341_v39  ;;  %v381_v48 = vadd.f32 %v728_v9, %v342_v40  ;;  %v382_v49 = vadd.f32 %v728_v9, %v343_v41 }
  0x28   : > { %v383_v50 = vadd.f32 %v728_v9, %v344_v42  ;;  %v384_v51 = vadd.f32 %v728_v9, %v345_v43  ;;  %409 = vst [vmem:[%s737_s29 + $0xc0] sm:$0xff] %v377_v44  ;;  %410 = vst [vmem:[%s737_s29 + $0xc8] sm:$0xff] %v378_v45 }
  0x29   : > { %411 = vst [vmem:[%s737_s29 + $0xd0] sm:$0xff] %v379_v46  ;;  %412 = vst [vmem:[%s737_s29 + $0xd8] sm:$0xff] %v380_v47 }
  0x2a   : > { %413 = vst [vmem:[%s737_s29 + $0xe0] sm:$0xff] %v381_v48  ;;  %414 = vst [vmem:[%s737_s29 + $0xe8] sm:$0xff] %v382_v49 }
  0x2b   : > { %415 = vst [vmem:[%s737_s29 + $0xf0] sm:$0xff] %v383_v50  ;;  %416 = vst [vmem:[%s737_s29 + $0xf8] sm:$0xff] %v384_v51 }
  0x2c PF: > { %s13_s14 = sadd.s32 1, %s671_s14   ;;  %s856_s12 = smov %s667_s13 }
  0x2d   : > { %p10_p5 = scmp.ge.s32.totalorder %s13_s14, 4   ;;  %s857_s13 = smov %s859_s15 }
  0x2f   :  { %12 = sbr.rel (!%p10_p5) target bundleno = 2 (0x2), region = 68 }

// kernel: basic_block_forward.5
= control target key start
LH: loop header
LB: loop body
LE: loop exit
PB: predicated region body
PF: predicated region fallthrough
CT: control target
= control target key end

     0   :  { %s1012_s12 = smov 0   ;;  %s1014_s13 = smov 0   ;;  %s1172_s0 = inlined_call_operand.vmem [shape: bf16[2,16,16,128], index: 0, kind: input, shape index: {}, may-alias: {0,3}]   ;;  %s1173_s1 = inlined_call_operand.vmem [shape: f32[2,1,1,128], index: 1, kind: input, shape index: {}]   ;;  %s1174_s2 = inlined_call_operand.vmem [shape: f32[2,1,1,128], index: 2, kind: input, shape index: {}]   ;;  %s1175_s3 = inlined_call_operand.vmem [shape: bf16[2,16,16,128], index: 3, kind: output, shape index: {}, may-alias: {0,3}]  }
   0x1   :  { %s1016_s14 = smov 0  }
   0x2 LB: > { %s25_s15 = sadd.s32 1, %s986_s13  ;;  %p695_p0 = scmp.ge.s32.totalorder %s990_s14, 1  ;;  %s990_s14 = sphi %s1016_s14, %s13_s14   ;;  %s986_s13 = sphi %s1014_s13, %s1177_s13   ;;  %s982_s12 = sphi %s1012_s12, %s1176_s12  }
   0x3   : > { %p27_p1 = scmp.ge.s32.totalorder %s25_s15, 2  ;;  %p175_p2 = scmp.lt.s32.totalorder %s990_s14, 3 }
   0x5   : > { %s1179_s15 = smov (%p27_p1, %s25_s15), 0  ;;  %p176_p3 = pnand %p695_p0, %p175_p2 }
   0x6   : > { %p216_p4 = scmp.lt.s32.totalorder (!%p176_p3), %s982_s12, 1 }
   0x7   : > { %179 = sbr.rel (%p176_p3) target bundleno = 56 (0x38), region = 32 }
   0xc   : > { %s1181_s12 = smov (!%p216_p4, %s982_s12), 1 }
   0xd   : > { %s736_s16 = sshll.u32 %s1181_s12, 7  ;;  %s228_s22 = scalar_lea.vmem %s1173_s1, %s1181_s12 }
   0xe   : > { %s1038_s19 = scalar_lea.vmem %s1172_s0, %s736_s16  ;;  %v700_v40 = vld [vmem:[%s228_s22] ss:$0 sm:$0xff]  ;;  %s231_s25 = scalar_lea.vmem %s1174_s2, %s1181_s12 }
   0xf   : > { %v771_v0 = vld [vmem:[%s1038_s19] sm:$0xff]   ;;  %v914_v1 = vld [vmem:[%s1038_s19 + $0x8] sm:$0xff]   ;;  %v915_v2 = vld [vmem:[%s1038_s19 + $0x10] sm:$0xff]   ;;  %s1107_s28 = scalar_lea.vmem %s1175_s3, %s736_s16 }
  0x10   : > { %v772_v3 = vunpack.c.l.bf16 %v771_v0  ;;  %v773_v4 = vunpack.c.h.bf16 %v771_v0  ;;  %v776_v5 = vunpack.c.l.bf16 %v914_v1  ;;  %v777_v6 = vunpack.c.h.bf16 %v914_v1  ;;  %v916_v7 = vld [vmem:[%s1038_s19 + $0x18] sm:$0xff]   ;;  %v917_v8 = vld [vmem:[%s1038_s19 + $0x20] sm:$0xff]   ;;  %v918_v9 = vld [vmem:[%s1038_s19 + $0x28] sm:$0xff]  }
  0x11   : > { %v780_v10 = vunpack.c.l.bf16 %v915_v2  ;;  %v781_v11 = vunpack.c.h.bf16 %v915_v2  ;;  %v784_v12 = vunpack.c.l.bf16 %v916_v7  ;;  %v785_v13 = vunpack.c.h.bf16 %v916_v7  ;;  %v919_v14 = vld [vmem:[%s1038_s19 + $0x30] sm:$0xff]   ;;  %v920_v15 = vld [vmem:[%s1038_s19 + $0x38] sm:$0xff]   ;;  %v921_v16 = vld [vmem:[%s1038_s19 + $0x40] sm:$0xff]  }
  0x12   : > { %v788_v17 = vunpack.c.l.bf16 %v917_v8  ;;  %v789_v18 = vunpack.c.h.bf16 %v917_v8  ;;  %v792_v19 = vunpack.c.l.bf16 %v918_v9  ;;  %v793_v20 = vunpack.c.h.bf16 %v918_v9  ;;  %v922_v21 = vld [vmem:[%s1038_s19 + $0x48] sm:$0xff]   ;;  %v923_v22 = vld [vmem:[%s1038_s19 + $0x50] sm:$0xff]   ;;  %v924_v23 = vld [vmem:[%s1038_s19 + $0x58] sm:$0xff]  }
  0x13   : > { %v796_v24 = vunpack.c.l.bf16 %v919_v14  ;;  %v797_v25 = vunpack.c.h.bf16 %v919_v14  ;;  %v800_v26 = vunpack.c.l.bf16 %v920_v15  ;;  %v801_v27 = vunpack.c.h.bf16 %v920_v15  ;;  %v925_v28 = vld [vmem:[%s1038_s19 + $0x60] sm:$0xff]   ;;  %v926_v29 = vld [vmem:[%s1038_s19 + $0x68] sm:$0xff]   ;;  %v927_v34 = vld [vmem:[%s1038_s19 + $0x70] sm:$0xff]  }
  0x14   : > { %v804_v30 = vunpack.c.l.bf16 %v921_v16  ;;  %v805_v31 = vunpack.c.h.bf16 %v921_v16  ;;  %v808_v32 = vunpack.c.l.bf16 %v922_v21  ;;  %v809_v33 = vunpack.c.h.bf16 %v922_v21  ;;  %v928_v35 = vld [vmem:[%s1038_s19 + $0x78] sm:$0xff]   ;;  %v1076_v9 = vld [vmem:[%s231_s25] ss:$0 sm:$0xff] }
  0x15   : > { %v812_v36 = vunpack.c.l.bf16 %v923_v22  ;;  %v813_v37 = vunpack.c.h.bf16 %v923_v22  ;;  %v816_v38 = vunpack.c.l.bf16 %v924_v23  ;;  %v817_v39 = vunpack.c.h.bf16 %v924_v23 }
  0x16   : > { %v820_v41 = vunpack.c.l.bf16 %v925_v28  ;;  %v821_v42 = vunpack.c.h.bf16 %v925_v28  ;;  %v824_v43 = vunpack.c.l.bf16 %v926_v29  ;;  %v825_v44 = vunpack.c.h.bf16 %v926_v29 }
  0x17   : > { %v828_v45 = vunpack.c.l.bf16 %v927_v34  ;;  %v829_v46 = vunpack.c.h.bf16 %v927_v34  ;;  %v832_v47 = vunpack.c.l.bf16 %v928_v35  ;;  %v833_v48 = vunpack.c.h.bf16 %v928_v35 }
  0x18   : > { %v314_v49 = vmul.f32 %v772_v3, %v700_v40  ;;  %v315_v50 = vmul.f32 %v773_v4, %v700_v40  ;;  %v316_v51 = vmul.f32 %v776_v5, %v700_v40  ;;  %v317_v52 = vmul.f32 %v777_v6, %v700_v40 }
  0x19   : > { %v318_v53 = vmul.f32 %v780_v10, %v700_v40  ;;  %v319_v54 = vmul.f32 %v781_v11, %v700_v40  ;;  %v320_v55 = vmul.f32 %v784_v12, %v700_v40  ;;  %v321_v56 = vmul.f32 %v785_v13, %v700_v40 }
  0x1a   : > { %v322_v57 = vmul.f32 %v788_v17, %v700_v40  ;;  %v323_v58 = vmul.f32 %v789_v18, %v700_v40  ;;  %v324_v59 = vmul.f32 %v792_v19, %v700_v40  ;;  %v325_v60 = vmul.f32 %v793_v20, %v700_v40 }
  0x1b   : > { %v326_v61 = vmul.f32 %v796_v24, %v700_v40  ;;  %v327_v62 = vmul.f32 %v797_v25, %v700_v40  ;;  %v328_v63 = vmul.f32 %v800_v26, %v700_v40  ;;  %v329_v0 = vmul.f32 %v801_v27, %v700_v40 }
  0x1c   : > { %v330_v1 = vmul.f32 %v804_v30, %v700_v40  ;;  %v331_v2 = vmul.f32 %v805_v31, %v700_v40  ;;  %v1064_v3 = vmul.f32 %v808_v32, %v700_v40  ;;  %v1066_v4 = vmul.f32 %v809_v33, %v700_v40 }
  0x1d   : > { %v1068_v5 = vmul.f32 %v812_v36, %v700_v40  ;;  %v1070_v6 = vmul.f32 %v813_v37, %v700_v40  ;;  %v1072_v7 = vmul.f32 %v816_v38, %v700_v40  ;;  %v1074_v8 = vmul.f32 %v817_v39, %v700_v40 }
  0x1e   : > { %v1078_v10 = vmul.f32 %v820_v41, %v700_v40  ;;  %v1080_v11 = vmul.f32 %v821_v42, %v700_v40  ;;  %v1082_v12 = vmul.f32 %v824_v43, %v700_v40  ;;  %v1084_v13 = vmul.f32 %v825_v44, %v700_v40 }
  0x1f   : > { %v1086_v14 = vmul.f32 %v828_v45, %v700_v40  ;;  %v1088_v15 = vmul.f32 %v829_v46, %v700_v40  ;;  %v1090_v16 = vmul.f32 %v832_v47, %v700_v40  ;;  %v1092_v17 = vmul.f32 %v833_v48, %v700_v40 }
  0x20   : > { %v353_v18 = vadd.f32 %v1076_v9, %v314_v49  ;;  %v354_v19 = vadd.f32 %v1076_v9, %v315_v50  ;;  %v355_v20 = vadd.f32 %v1076_v9, %v316_v51  ;;  %v356_v21 = vadd.f32 %v1076_v9, %v317_v52 }
  0x21   : > { %v357_v22 = vadd.f32 %v1076_v9, %v318_v53  ;;  %v358_v23 = vadd.f32 %v1076_v9, %v319_v54  ;;  %v359_v24 = vadd.f32 %v1076_v9, %v320_v55  ;;  %v360_v25 = vadd.f32 %v1076_v9, %v321_v56 }
  0x22   : > { %v385_v26 = vmax.f32 %v353_v18, 0.0  ;;  %v386_v27 = vmax.f32 %v354_v19, 0.0  ;;  %v387_v28 = vmax.f32 %v355_v20, 0.0  ;;  %v388_v29 = vmax.f32 %v356_v21, 0.0 }
  0x23   : > { %v389_v30 = vmax.f32 %v357_v22, 0.0  ;;  %v390_v31 = vmax.f32 %v358_v23, 0.0  ;;  %v391_v32 = vmax.f32 %v359_v24, 0.0  ;;  %v392_v33 = vmax.f32 %v360_v25, 0.0 }
  0x24   : > { %v837_v34 = vpack.c.bf16 %v386_v27, %v385_v26  ;;  %v842_v35 = vpack.c.bf16 %v388_v29, %v387_v28  ;;  %v361_v36 = vadd.f32 %v1076_v9, %v322_v57  ;;  %v362_v37 = vadd.f32 %v1076_v9, %v323_v58 }
  0x25   : > { %v847_v38 = vpack.c.bf16 %v390_v31, %v389_v30  ;;  %v852_v39 = vpack.c.bf16 %v392_v33, %v391_v32  ;;  %v363_v40 = vadd.f32 %v1076_v9, %v324_v59  ;;  %v364_v41 = vadd.f32 %v1076_v9, %v325_v60 }
  0x26   : > { %838 = vst [vmem:[%s1107_s28] sm:$0xff] %v837_v34   ;;  %929 = vst [vmem:[%s1107_s28 + $0x8] sm:$0xff] %v842_v35   ;;  %v393_v42 = vmax.f32 %v361_v36, 0.0  ;;  %v394_v43 = vmax.f32 %v362_v37, 0.0  ;;  %v365_v44 = vadd.f32 %v1076_v9, %v326_v61  ;;  %v366_v45 = vadd.f32 %v1076_v9, %v327_v62 }
  0x27   : > { %930 = vst [vmem:[%s1107_s28 + $0x10] sm:$0xff] %v847_v38   ;;  %931 = vst [vmem:[%s1107_s28 + $0x18] sm:$0xff] %v852_v39   ;;  %v395_v46 = vmax.f32 %v363_v40, 0.0  ;;  %v396_v47 = vmax.f32 %v364_v41, 0.0  ;;  %v367_v48 = vadd.f32 %v1076_v9, %v328_v63  ;;  %v368_v49 = vadd.f32 %v1076_v9, %v329_v0 }
  0x28   : > { %v857_v50 = vpack.c.bf16 %v394_v43, %v393_v42  ;;  %v397_v51 = vmax.f32 %v365_v44, 0.0  ;;  %v398_v52 = vmax.f32 %v366_v45, 0.0  ;;  %v369_v53 = vadd.f32 %v1076_v9, %v330_v1 }
  0x29   : > { %v862_v54 = vpack.c.bf16 %v396_v47, %v395_v46  ;;  %v399_v55 = vmax.f32 %v367_v48, 0.0  ;;  %v400_v56 = vmax.f32 %v368_v49, 0.0  ;;  %v370_v57 = vadd.f32 %v1076_v9, %v331_v2 }
  0x2a   : > { %932 = vst [vmem:[%s1107_s28 + $0x20] sm:$0xff] %v857_v50   ;;  %v867_v58 = vpack.c.bf16 %v398_v52, %v397_v51  ;;  %v401_v59 = vmax.f32 %v369_v53, 0.0  ;;  %v371_v60 = vadd.f32 %v1076_v9, %v1064_v3  ;;  %v372_v61 = vadd.f32 %v1076_v9, %v1066_v4 }
  0x2b   : > { %933 = vst [vmem:[%s1107_s28 + $0x28] sm:$0xff] %v862_v54   ;;  %v872_v62 = vpack.c.bf16 %v400_v56, %v399_v55  ;;  %v402_v63 = vmax.f32 %v370_v57, 0.0  ;;  %v373_v0 = vadd.f32 %v1076_v9, %v1068_v5  ;;  %v374_v1 = vadd.f32 %v1076_v9, %v1070_v6 }
  0x2c   : > { %934 = vst [vmem:[%s1107_s28 + $0x30] sm:$0xff] %v867_v58   ;;  %v403_v2 = vmax.f32 %v371_v60, 0.0  ;;  %v404_v18 = vmax.f32 %v372_v61, 0.0  ;;  %v375_v19 = vadd.f32 %v1076_v9, %v1072_v7  ;;  %v376_v3 = vadd.f32 %v1076_v9, %v1074_v8 }
  0x2d   : > { %935 = vst [vmem:[%s1107_s28 + $0x38] sm:$0xff] %v872_v62   ;;  %v877_v4 = vpack.c.bf16 %v402_v63, %v401_v59  ;;  %v405_v20 = vmax.f32 %v373_v0, 0.0  ;;  %v406_v21 = vmax.f32 %v374_v1, 0.0  ;;  %v377_v5 = vadd.f32 %v1076_v9, %v1078_v10 }
  0x2e   : > { %v882_v22 = vpack.c.bf16 %v404_v18, %v403_v2  ;;  %v407_v6 = vmax.f32 %v375_v19, 0.0  ;;  %v408_v23 = vmax.f32 %v376_v3, 0.0  ;;  %v378_v24 = vadd.f32 %v1076_v9, %v1080_v11 }
  0x2f   : > { %936 = vst [vmem:[%s1107_s28 + $0x40] sm:$0xff] %v877_v4   ;;  %v887_v7 = vpack.c.bf16 %v406_v21, %v405_v20  ;;  %v409_v25 = vmax.f32 %v377_v5, 0.0  ;;  %v379_v8 = vadd.f32 %v1076_v9, %v1082_v12  ;;  %v380_v26 = vadd.f32 %v1076_v9, %v1084_v13 }
  0x30   : > { %937 = vst [vmem:[%s1107_s28 + $0x48] sm:$0xff] %v882_v22   ;;  %v892_v27 = vpack.c.bf16 %v408_v23, %v407_v6  ;;  %v410_v10 = vmax.f32 %v378_v24, 0.0  ;;  %v381_v28 = vadd.f32 %v1076_v9, %v1086_v14  ;;  %v382_v11 = vadd.f32 %v1076_v9, %v1088_v15 }
  0x31   : > { %938 = vst [vmem:[%s1107_s28 + $0x50] sm:$0xff] %v887_v7   ;;  %v411_v29 = vmax.f32 %v379_v8, 0.0  ;;  %v412_v30 = vmax.f32 %v380_v26, 0.0  ;;  %v383_v12 = vadd.f32 %v1076_v9, %v1090_v16  ;;  %v384_v13 = vadd.f32 %v1076_v9, %v1092_v17 }
  0x32   : > { %939 = vst [vmem:[%s1107_s28 + $0x58] sm:$0xff] %v892_v27   ;;  %v897_v31 = vpack.c.bf16 %v410_v10, %v409_v25  ;;  %v413_v32 = vmax.f32 %v381_v28, 0.0  ;;  %v414_v33 = vmax.f32 %v382_v11, 0.0 }
  0x33   : > { %v902_v14 = vpack.c.bf16 %v412_v30, %v411_v29  ;;  %v415_v34 = vmax.f32 %v383_v12, 0.0  ;;  %v416_v35 = vmax.f32 %v384_v13, 0.0 }
  0x34   : > { %940 = vst [vmem:[%s1107_s28 + $0x60] sm:$0xff] %v897_v31   ;;  %v907_v15 = vpack.c.bf16 %v414_v33, %v413_v32 }
  0x35   : > { %941 = vst [vmem:[%s1107_s28 + $0x68] sm:$0xff] %v902_v14   ;;  %v912_v36 = vpack.c.bf16 %v416_v35, %v415_v34 }
  0x36   : > { %942 = vst [vmem:[%s1107_s28 + $0x70] sm:$0xff] %v907_v15  }
  0x37   : > { %943 = vst [vmem:[%s1107_s28 + $0x78] sm:$0xff] %v912_v36  }
  0x38 PF: > { %s13_s14 = sadd.s32 1, %s990_s14   ;;  %s1176_s12 = smov %s986_s13 }
  0x39   : > { %p10_p5 = scmp.ge.s32.totalorder %s13_s14, 4   ;;  %s1177_s13 = smov %s1179_s15 }
  0x3b   :  { %12 = sbr.rel (!%p10_p5) target bundleno = 2 (0x2), region = 68 }

// kernel: basic_block_forward.4
= control target key start
LH: loop header
LB: loop body
LE: loop exit
PB: predicated region body
PF: predicated region fallthrough
CT: control target
= control target key end

     0   :  { %s7051_s12 = smov 0   ;;  %s7053_s13 = smov 0   ;;  %s9729_s0 = inlined_call_operand.vmem [shape: bf16[2,18,18,128], index: 0, kind: input, shape index: {}]   ;;  %s9730_s1 = inlined_call_operand.vmem [shape: bf16[9,128,128], index: 1, kind: input, shape index: {}]   ;;  %s9731_s2 = inlined_call_operand.vmem [shape: bf16[2,16,16,128], index: 2, kind: output, shape index: {0}]   ;;  %s9732_s3 = inlined_call_operand.vmem [shape: f32[2,2,128], index: 3, kind: output, shape index: {1}]  }
   0x1   :  { %s7055_s14 = smov 0  }
   0x2 LB: > { %s26_s15 = sadd.s32 1, %s7024_s13  ;;  %p5436_p0 = scmp.ge.s32.totalorder %s7028_s14, 1  ;;  %s7028_s14 = sphi %s7055_s14, %s14_s14   ;;  %s7024_s13 = sphi %s7053_s13, %s9953_s13   ;;  %s7020_s12 = sphi %s7051_s12, %s9952_s12  }
   0x3   : > { %p28_p1 = scmp.ge.s32.totalorder %s26_s15, 2  ;;  %p154_p2 = scmp.lt.s32.totalorder %s7028_s14, 3 }
   0x5   : > { %s9955_s15 = smov (%p28_p1, %s26_s15), 0  ;;  %p155_p3 = pnand %p5436_p0, %p154_p2 }
   0x7   : > { %158 = sbr.rel (%p155_p3) target bundleno = 576 (0x240), region = 28 }
   0xc   : > { %v6877_v0 = vld [vmem:[%s9730_s1 + $0x78] sm:$0xff]   ;;  %p187_p4 = scmp.lt.s32.totalorder %s7020_s12, 1  ;;  %v6878_v1 = vld [vmem:[%s9730_s1 + $0x70] sm:$0xff]   ;;  %v6879_v2 = vld [vmem:[%s9730_s1 + $0x68] sm:$0xff]   ;;  %vm281_vm0 = vsmask.f32 3328 }
   0xd   : > { %6403 = vmatprep.subr.bf16.mxu0 %v6877_v0  ;;  %6835 = vmatprep.subr.bf16.mxu1 %v6877_v0  ;;  %v6880_v3 = vld [vmem:[%s9730_s1 + $0x60] sm:$0xff]   ;;  %vm282_vm1 = vsmask.f32 7440  ;;  %v6881_v17 = vld [vmem:[%s9730_s1 + $0x58] sm:$0xff]   ;;  %v6882_v33 = vld [vmem:[%s9730_s1 + $0x50] sm:$0xff]   ;;  %vm1311_vm3 = vcmask 1042432  }
   0xe   : > { %s9957_s12 = smov (!%p187_p4, %s7020_s12), 1  ;;  %6404 = vmatpush3.bf16.msra.mxu0 %v6877_v0  ;;  %6843 = vmatpush3.bf16.msra.mxu1 %v6877_v0  ;;  %vm7115_vm2 = vmor %vm281_vm0, %vm282_vm1  ;;  %v6883_v58 = vld [vmem:[%s9730_s1 + $0x48] sm:$0xff]   ;;  %vm1312_vm4 = vcmask 1046532  }
   0xf   : > { %6405 = vmatprep.subr.bf16.mxu0 %v6878_v1  ;;  %6836 = vmatprep.subr.bf16.mxu1 %v6878_v1  ;;  %s6851_s22 = smul.u32 216, %s9957_s12  ;;  %vm7426_vm5 = vmor %vm1311_vm3, %vm1312_vm4  ;;  %s6059_s8 = sshll.u32 %s9957_s12, 7 }
  0x11   : > { %s7084_s25 = scalar_lea.vmem %s9729_s0, %s6851_s22 }
  0x12   : > { %6406 = vmatpush3.bf16.msra.mxu0 %v6878_v1  ;;  %6844 = vmatpush3.bf16.msra.mxu1 %v6878_v1  ;;  %v7090_v4 = vld [vmem:[%s7084_s25] sm:$0xf]  ;;  %v7093_v5 = vld [vmem:[%s7084_s25 + $0x4] sm:$0xf]  ;;  %v7096_v6 = vld [vmem:[%s7084_s25 + $0x8] sm:$0x1] }
  0x13   : > { %6407 = vmatprep.subr.bf16.mxu0 %v6879_v2  ;;  %6837 = vmatprep.subr.bf16.mxu1 %v6879_v2  ;;  %v285_v7 = vshrl.u32 %v7090_v4, 16  ;;  %v288_v8 = vshll.u32 %v7090_v4, 16  ;;  %v294_v9 = vshll.u32 %v7093_v5, 16  ;;  %v298_v10 = vshrl.u32 %v7093_v5, 16  ;;  %v233_v12 = vld [vmem:[%s7084_s25 + $0x60] sm:$0xf] }
  0x14   : > { %v304_v11 = vshll.u32 %v7096_v6, 16  ;;  %v234_v15 = vld [vmem:[%s7084_s25 + $0x64] sm:$0xf]  ;;  %v273_v16 = vld [vmem:[%s7084_s25 + $0x68] sm:$0x1]  ;;  %v477_v21 = vshrl.u32 %v233_v12, 16 }
  0x15   : > { %v287_v13 = vrot.slane %v285_v7, 4  ;;  %v290_v14 = vrot.slane %v288_v8, 5  ;;  %v296_v18 = vrot.slane %v294_v9, 5  ;;  %v300_v19 = vrot.slane %v298_v10, 4  ;;  %v7111_v26 = vld [vmem:[%s7084_s25 + $0xc] sm:$0xf] }
  0x16   : > { %6408 = vmatpush3.bf16.msra.mxu0 %v6879_v2  ;;  %6845 = vmatpush3.bf16.msra.mxu1 %v6879_v2  ;;  %v480_v23 = vshll.u32 %v233_v12, 16  ;;  %v486_v24 = vshll.u32 %v234_v15, 16  ;;  %v490_v25 = vshrl.u32 %v234_v15, 16  ;;  %v306_v29 = vrot.slane %v304_v11, 5  ;;  %v7120_v32 = vld [vmem:[%s7084_s25 + $0x10] sm:$0xf] }
  0x17   : > { %6409 = vmatprep.subr.bf16.mxu0 %v6880_v3  ;;  %6838 = vmatprep.subr.bf16.mxu1 %v6880_v3  ;;  %v291_v22 = vor.u32 %v290_v14, %v287_v13  ;;  %v301_v28 = vor.u32 %v300_v19, %v296_v18  ;;  %v479_v30 = vrot.slane %v477_v21, 4  ;;  %v496_v31 = vshll.u32 %v273_v16, 16  ;;  %v7126_v40 = vld [vmem:[%s7084_s25 + $0x14] sm:$0x1]  ;;  %v235_v47 = vld [vmem:[%s7084_s25 + $0x6c] sm:$0xf] }
  0x18   : > { %v482_v35 = vrot.slane %v480_v23, 5  ;;  %v488_v36 = vrot.slane %v486_v24, 5  ;;  %v492_v37 = vrot.slane %v490_v25, 4  ;;  %v309_v41 = vshrl.u32 %v7111_v26, 16  ;;  %v236_v52 = vld [vmem:[%s7084_s25 + $0x70] sm:$0xf] }
  0x19   : > { %v292_v34 = vrot.slane %v291_v22, 4  ;;  %v302_v38 = vrot.slane %v301_v28, 4  ;;  %v498_v39 = vrot.slane %v496_v31, 5  ;;  %v312_v42 = vshll.u32 %v7111_v26, 16  ;;  %v274_v57 = vld [vmem:[%s7084_s25 + $0x74] sm:$0x1] }
  0x1a   : > { %6410 = vmatpush3.bf16.msra.mxu0 %v6880_v3  ;;  %6846 = vmatpush3.bf16.msra.mxu1 %v6880_v3  ;;  %v483_v44 = vor.u32 %v482_v35, %v479_v30  ;;  %v493_v45 = vor.u32 %v492_v37, %v488_v36  ;;  %v318_v46 = vshll.u32 %v7120_v32, 16  ;;  %v311_v49 = vrot.slane %v309_v41, 4  ;;  %v7149_v14 = vld [vmem:[%s7084_s25 + $0x18] sm:$0xf]  ;;  %v6884_v15 = vld [vmem:[%s9730_s1 + $0x40] sm:$0xff]  }
  0x1b   : > { %6411 = vmatprep.subr.bf16.mxu0 %v6881_v17  ;;  %6839 = vmatprep.subr.bf16.mxu1 %v6881_v17  ;;  %v297_v43 = vsel %vm7115_vm2, %v292_v34, %v296_v18  ;;  %v307_v48 = vsel %vm7115_vm2, %v302_v38, %v306_v29  ;;  %v314_v50 = vrot.slane %v312_v42, 5  ;;  %v322_v51 = vshrl.u32 %v7120_v32, 16  ;;  %v7157_v19 = vld [vmem:[%s7084_s25 + $0x1c] sm:$0xf]  ;;  %v7162_v25 = vld [vmem:[%s7084_s25 + $0x20] sm:$0x1] }
  0x1c   : > { %v5457_v53 = vcombine.low %v297_v43, %v307_v48  ;;  %v484_v54 = vrot.slane %v483_v44, 4  ;;  %v494_v55 = vrot.slane %v493_v45, 4  ;;  %v320_v56 = vrot.slane %v318_v46, 5  ;;  %v237_v34 = vld [vmem:[%s7084_s25 + $0x78] sm:$0xf] }
  0x1d   : > { %v315_v59 = vor.u32 %v314_v50, %v311_v49  ;;  %v324_v60 = vrot.slane %v322_v51, 4  ;;  %v328_v61 = vshll.u32 %v7126_v40, 16  ;;  %v501_v1 = vshrl.u32 %v235_v47, 16  ;;  %v6885_v41 = vld [vmem:[%s9730_s1 + $0x38] sm:$0xff]   ;;  %v275_v49 = vld [vmem:[%s7084_s25 + $0x80] sm:$0x1] }
  0x1e   : > { %6412 = vmatpush3.bf16.msra.mxu0 %v6881_v17  ;;  %6847 = vmatpush3.bf16.msra.mxu1 %v6881_v17  ;;  %v489_v63 = vsel %vm7115_vm2, %v484_v54, %v488_v36  ;;  %v499_v0 = vsel %vm7115_vm2, %v494_v55, %v498_v39  ;;  %v504_v2 = vshll.u32 %v235_v47, 16  ;;  %v510_v12 = vshll.u32 %v236_v52, 16  ;;  %v7171_v39 = vld [vmem:[%s7084_s25 + $0x7c] sm:$0xf] }
  0x1f   : > { %6413 = vmatprep.subr.bf16.mxu0 %v6882_v33  ;;  %6840 = vmatprep.subr.bf16.mxu1 %v6882_v33  ;;  %v5465_v3 = vcombine.low %v489_v63, %v499_v0  ;;  %v316_v7 = vrot.slane %v315_v59, 4  ;;  %v325_v8 = vor.u32 %v324_v60, %v320_v56  ;;  %v330_v9 = vrot.slane %v328_v61, 5  ;;  %v6886_v42 = vld [vmem:[%s9730_s1 + $0xb8] sm:$0xff]   ;;  %v6888_v59 = vld [vmem:[%s9730_s1 + $0xb0] sm:$0xff]   ;;  %v7198_v0 = vld [vmem:[%s7084_s25 + $0x28] sm:$0xf] }
  0x20   : > { %6419 = vmatprep.mubr.bf16.mxu0 %v5457_v53  ;;  %v503_v10 = vrot.slane %v501_v1, 4  ;;  %v506_v11 = vrot.slane %v504_v2, 5  ;;  %v514_v13 = vshrl.u32 %v236_v52, 16  ;;  %v520_v18 = vshll.u32 %v274_v57, 16  ;;  %v6887_v52 = vld [vmem:[%s9730_s1 + $0x30] sm:$0xff]  }
  0x21   : > { %v321_v16 = vsel %vm7115_vm2, %v316_v7, %v320_v56  ;;  %v326_v17 = vrot.slane %v325_v8, 4  ;;  %6435 = vmatprep.mubr.bf16.mxu1 %v5465_v3  ;;  %v512_v23 = vrot.slane %v510_v12, 5  ;;  %v333_v28 = vshrl.u32 %v7149_v14, 16  ;;  %v7189_v57 = vld [vmem:[%s7084_s25 + $0x24] sm:$0xf] }
  0x22   : > { %6414 = vmatpush3.bf16.msra.mxu0 %v6882_v33  ;;  %6848 = vmatpush3.bf16.msra.mxu1 %v6882_v33  ;;  %v507_v22 = vor.u32 %v506_v11, %v503_v10  ;;  %v516_v24 = vrot.slane %v514_v13, 4  ;;  %v522_v30 = vrot.slane %v520_v18, 5  ;;  %v336_v31 = vshll.u32 %v7149_v14, 16  ;;  %v7201_v8 = vld [vmem:[%s7084_s25 + $0x2c] sm:$0x1] }
  0x23   : > { %6415 = vmatprep.subr.bf16.mxu0 %v6883_v58  ;;  %6841 = vmatprep.subr.bf16.mxu1 %v6883_v58  ;;  %v331_v29 = vsel %vm7115_vm2, %v326_v17, %v330_v9  ;;  %v342_v33 = vshll.u32 %v7157_v19, 16  ;;  %v335_v38 = vrot.slane %v333_v28, 4  ;;  %v346_v45 = vshrl.u32 %v7157_v19, 16  ;;  %v7205_v13 = vld [vmem:[%s7084_s25 + $0x84] sm:$0xf] }
  0x24   : > { %v5458_v35 = vcombine.low %v321_v16, %v331_v29  ;;  %v508_v36 = vrot.slane %v507_v22, 4  ;;  %v517_v37 = vor.u32 %v516_v24, %v512_v23  ;;  %v338_v43 = vrot.slane %v336_v31, 5  ;;  %v7212_v22 = vld [vmem:[%s7084_s25 + $0x88] sm:$0xf] }
  0x25   : > { %v344_v44 = vrot.slane %v342_v33, 5  ;;  %v352_v46 = vshll.u32 %v7162_v25, 16  ;;  %v525_v50 = vshrl.u32 %v237_v34, 16  ;;  %v528_v51 = vshll.u32 %v237_v34, 16 }
  0x26   : > { %6416 = vmatpush3.bf16.msra.mxu0 %v6883_v58  ;;  %6849 = vmatpush3.bf16.msra.mxu1 %v6883_v58  ;;  %v513_v47 = vsel %vm7115_vm2, %v508_v36, %v512_v23  ;;  %v518_v48 = vrot.slane %v517_v37, 4  ;;  %v339_v53 = vor.u32 %v338_v43, %v335_v38  ;;  %v348_v54 = vrot.slane %v346_v45, 4  ;;  %v7221_v36 = vld [vmem:[%s7084_s25 + $0x8c] sm:$0x1] }
  0x27   : > { %6417 = vmatprep.subr.bf16.mxu0 %v6884_v15  ;;  %6842 = vmatprep.subr.bf16.mxu1 %v6884_v15  ;;  %v354_v55 = vrot.slane %v352_v46, 5  ;;  %v534_v56 = vshll.u32 %v7171_v39, 16  ;;  %v527_v60 = vrot.slane %v525_v50, 4  ;;  %v530_v61 = vrot.slane %v528_v51, 5  ;;  %v6890_v37 = vld [vmem:[%s9730_s1 + $0xa8] sm:$0xff]  }
  0x28   : > { %v523_v58 = vsel %vm7115_vm2, %v518_v48, %v522_v30  ;;  %v538_v63 = vshrl.u32 %v7171_v39, 16  ;;  %v340_v2 = vrot.slane %v339_v53, 4  ;;  %v349_v3 = vor.u32 %v348_v54, %v344_v44  ;;  %v6889_v30 = vld [vmem:[%s9730_s1 + $0x28] sm:$0xff]   ;;  %v7236_v53 = vld [vmem:[%s7084_s25 + $0x30] sm:$0xf] }
  0x29   : > { %v5466_v1 = vcombine.low %v513_v47, %v523_v58  ;;  %v536_v7 = vrot.slane %v534_v56, 5  ;;  %v531_v9 = vor.u32 %v530_v61, %v527_v60  ;;  %v544_v11 = vshll.u32 %v275_v49, 16  ;;  %v7245_v60 = vld [vmem:[%s7084_s25 + $0x34] sm:$0xf] }
  0x2a   : > { %6418 = vmatpush3.bf16.msra.mxu0 %v6884_v15  ;;  %6850 = vmatpush3.bf16.msra.mxu1 %v6884_v15  ;;  %v540_v10 = vrot.slane %v538_v63, 4  ;;  %v357_v12 = vshrl.u32 %v7189_v57, 16  ;;  %v345_v15 = vsel %vm7115_vm2, %v340_v2, %v344_v44  ;;  %v350_v16 = vrot.slane %v349_v3, 4 }
  0x2b   : > { %6451 = vmatprep.subr.bf16.mxu1 %v6885_v41  ;;  %6499 = vmatprep.subr.bf16.mxu0 %v6886_v42  ;;  %v360_v17 = vshll.u32 %v7189_v57, 16  ;;  %v366_v18 = vshll.u32 %v7198_v0, 16  ;;  %v532_v23 = vrot.slane %v531_v9, 4  ;;  %v546_v28 = vrot.slane %v544_v11, 5 }
  0x2c   : > { %v541_v24 = vor.u32 %v540_v10, %v536_v7  ;;  %v359_v29 = vrot.slane %v357_v12, 4  ;;  %v355_v31 = vsel %vm7115_vm2, %v350_v16, %v354_v55  ;;  %v376_v43 = vshll.u32 %v7201_v8, 16  ;;  %v7253_v16 = vld [vmem:[%s7084_s25 + $0x38] sm:$0x1] }
  0x2d   : > { %6420 = vmatmul.mubr.bf16.vlgmr.msra.gmra.mxu0 %v5458_v35  ;;  %6436 = vmatmul.mubr.bf16.vlgmr.msra.gmra.mxu1 %v5466_v1  ;;  %v362_v33 = vrot.slane %v360_v17, 5  ;;  %v368_v34 = vrot.slane %v366_v18, 5  ;;  %v370_v35 = vshrl.u32 %v7198_v0, 16  ;;  %v5459_v38 = vcombine.low %v345_v15, %v355_v31  ;;  %v7257_v18 = vld [vmem:[%s7084_s25 + $0x90] sm:$0xf] }
  0x2e   : > { %6452 = vmatpush3.bf16.msra.mxu1 %v6885_v41  ;;  %6500 = vmatpush3.bf16.msra.mxu0 %v6886_v42  ;;  %v537_v41 = vsel %vm7115_vm2, %v532_v23, %v536_v7  ;;  %v542_v42 = vrot.slane %v541_v24, 4  ;;  %v549_v46 = vshrl.u32 %v7205_v13, 16  ;;  %v552_v47 = vshll.u32 %v7205_v13, 16  ;;  %v7263_v31 = vld [vmem:[%s7084_s25 + $0x94] sm:$0xf] }
  0x2f   : > { %6453 = vmatprep.subr.bf16.mxu1 %v6887_v52  ;;  %6501 = vmatprep.subr.bf16.mxu0 %v6888_v59  ;;  %v363_v44 = vor.u32 %v362_v33, %v359_v29  ;;  %v372_v45 = vrot.slane %v370_v35, 4  ;;  %v378_v49 = vrot.slane %v376_v43, 5  ;;  %v558_v50 = vshll.u32 %v7212_v22, 16 }
  0x30   : > { %v547_v48 = vsel %vm7115_vm2, %v542_v42, %v546_v28  ;;  %v562_v51 = vshrl.u32 %v7212_v22, 16  ;;  %6423 = vmatprep.mubr.bf16.mxu0 %v5459_v38  ;;  %v551_v58 = vrot.slane %v549_v46, 4  ;;  %v554_v61 = vrot.slane %v552_v47, 5  ;;  %v6894_v38 = vld [vmem:[%s9730_s1 + $0x98] sm:$0xff]   ;;  %v6895_v46 = vld [vmem:[%s9730_s1 + $0x10] sm:$0xff]  }
  0x31   : > { %v5467_v54 = vcombine.low %v537_v41, %v547_v48  ;;  %v364_v55 = vrot.slane %v363_v44, 4  ;;  %v373_v56 = vor.u32 %v372_v45, %v368_v34  ;;  %v560_v63 = vrot.slane %v558_v50, 5  ;;  %v7273_v44 = vld [vmem:[%s7084_s25 + $0x98] sm:$0x1] }
  0x32   : > { %6454 = vmatpush3.bf16.msra.mxu1 %v6887_v52  ;;  %6502 = vmatpush3.bf16.msra.mxu0 %v6888_v59  ;;  %v6891_v52 = vld [vmem:[%s9730_s1 + $0x20] sm:$0xff]   ;;  %v564_v1 = vrot.slane %v562_v51, 4  ;;  %v568_v2 = vshll.u32 %v7221_v36, 16  ;;  %v381_v9 = vshrl.u32 %v7236_v53, 16  ;;  %v384_v10 = vshll.u32 %v7236_v53, 16 }
  0x33   : > { %6455 = vmatprep.subr.bf16.mxu1 %v6889_v30  ;;  %v6892_v59 = vld [vmem:[%s9730_s1 + $0xa0] sm:$0xff]   ;;  %6503 = vmatprep.subr.bf16.mxu0 %v6890_v37  ;;  %v369_v3 = vsel %vm7115_vm2, %v364_v55, %v368_v34  ;;  %v374_v7 = vrot.slane %v373_v56, 4  ;;  %v555_v11 = vor.u32 %v554_v61, %v551_v58  ;;  %v390_v17 = vshll.u32 %v7245_v60, 16  ;;  %v7286_v51 = vld [vmem:[%s7084_s25 + $0x3c] sm:$0xf]  ;;  %v6896_v55 = vld [vmem:[%s9730_s1 + $0x90] sm:$0xff]  }
  0x34   : > { %6439 = vmatprep.mubr.bf16.mxu1 %v5467_v54  ;;  %v565_v12 = vor.u32 %v564_v1, %v560_v63  ;;  %v570_v15 = vrot.slane %v568_v2, 5  ;;  %v383_v24 = vrot.slane %v381_v9, 4  ;;  %v386_v28 = vrot.slane %v384_v10, 5  ;;  %v7289_v54 = vld [vmem:[%s7084_s25 + $0x40] sm:$0xf] }
  0x35   : > { %v379_v23 = vsel %vm7115_vm2, %v374_v7, %v378_v49  ;;  %v394_v29 = vshrl.u32 %v7245_v60, 16  ;;  %v556_v34 = vrot.slane %v555_v11, 4  ;;  %v400_v43 = vshll.u32 %v7253_v16, 16  ;;  %v7296_v7 = vld [vmem:[%s7084_s25 + $0x44] sm:$0x1] }
  0x36   : > { %6456 = vmatpush3.bf16.msra.mxu1 %v6889_v30  ;;  %6504 = vmatpush3.bf16.msra.mxu0 %v6890_v37  ;;  %v6893_v30 = vld [vmem:[%s9730_s1 + $0x18] sm:$0xff]   ;;  %v5460_v33 = vcombine.low %v369_v3, %v379_v23  ;;  %v566_v35 = vrot.slane %v565_v12, 4  ;;  %v392_v37 = vrot.slane %v390_v17, 5  ;;  %v387_v41 = vor.u32 %v386_v28, %v383_v24  ;;  %v7308_v28 = vld [vmem:[%s7084_s25 + $0xa0] sm:$0xf] }
  0x37   : > { %6457 = vmatprep.subr.bf16.mxu1 %v6891_v52  ;;  %6505 = vmatprep.subr.bf16.mxu0 %v6892_v59  ;;  %v396_v42 = vrot.slane %v394_v29, 4  ;;  %v573_v45 = vshrl.u32 %v7257_v18, 16  ;;  %v561_v47 = vsel %vm7115_vm2, %v556_v34, %v560_v63  ;;  %v576_v49 = vshll.u32 %v7257_v18, 16  ;;  %v7299_v9 = vld [vmem:[%s7084_s25 + $0x9c] sm:$0xf]  ;;  %v6897_v29 = vld [vmem:[%s9730_s1 + $0x8] sm:$0xff]  }
  0x38   : > { %6424 = vmatmul.mubr.bf16.gmra.mxu0 %v5460_v33  ;;  %v571_v48 = vsel %vm7115_vm2, %v566_v35, %v570_v15  ;;  %v582_v50 = vshll.u32 %v7263_v31, 16  ;;  %v388_v58 = vrot.slane %v387_v41, 4  ;;  %v402_v63 = vrot.slane %v400_v43, 5  ;;  %v6898_v41 = vld [vmem:[%s9730_s1 + $0x88] sm:$0xff]  }
  0x39   : > { %v5468_v56 = vcombine.low %v561_v47, %v571_v48  ;;  %v397_v61 = vor.u32 %v396_v42, %v392_v37  ;;  %v578_v1 = vrot.slane %v576_v49, 5  ;;  %v586_v3 = vshrl.u32 %v7263_v31, 16 }
  0x3a   : > { %6458 = vmatpush3.bf16.msra.mxu1 %v6891_v52  ;;  %6506 = vmatpush3.bf16.msra.mxu0 %v6892_v59  ;;  %v575_v52 = vrot.slane %v573_v45, 4  ;;  %v584_v2 = vrot.slane %v582_v50, 5  ;;  %v393_v10 = vsel %vm7115_vm2, %v388_v58, %v392_v37  ;;  %v592_v11 = vshll.u32 %v7273_v44, 16 }
  0x3b   : > { %6459 = vmatprep.subr.bf16.mxu1 %v6893_v30  ;;  %6507 = vmatprep.subr.bf16.mxu0 %v6894_v38  ;;  %v398_v59 = vrot.slane %v397_v61, 4  ;;  %v405_v12 = vshrl.u32 %v7286_v51, 16  ;;  %v588_v17 = vrot.slane %v586_v3, 4  ;;  %v408_v23 = vshll.u32 %v7286_v51, 16  ;;  %v7324_v61 = vld [vmem:[%s7084_s25 + $0xa4] sm:$0x1] }
  0x3c   : > { %6440 = vmatmul.mubr.bf16.gmra.mxu1 %v5468_v56  ;;  %v579_v15 = vor.u32 %v578_v1, %v575_v52  ;;  %v414_v24 = vshll.u32 %v7289_v54, 16  ;;  %v594_v34 = vrot.slane %v592_v11, 5  ;;  %v418_v37 = vshrl.u32 %v7289_v54, 16 }
  0x3d   : > { %v403_v33 = vsel %vm7115_vm2, %v398_v59, %v402_v63  ;;  %v407_v35 = vrot.slane %v405_v12, 4  ;;  %v589_v43 = vor.u32 %v588_v17, %v584_v2  ;;  %v410_v45 = vrot.slane %v408_v23, 5  ;;  %v7329_v59 = vld [vmem:[%s7084_s25 + $0x48] sm:$0xf]  ;;  %v7338_v17 = vld [vmem:[%s7084_s25 + $0x4c] sm:$0xf] }
  0x3e   : > { %6460 = vmatpush3.bf16.msra.mxu1 %v6893_v30  ;;  %6508 = vmatpush3.bf16.msra.mxu0 %v6894_v38  ;;  %v5461_v42 = vcombine.low %v393_v10, %v403_v33  ;;  %v580_v30 = vrot.slane %v579_v15, 4  ;;  %v416_v47 = vrot.slane %v414_v24, 5  ;;  %v420_v48 = vrot.slane %v418_v37, 4 }
  0x3f   : > { %6461 = vmatprep.subr.bf16.mxu1 %v6895_v46  ;;  %6509 = vmatprep.subr.bf16.mxu0 %v6896_v55  ;;  %v424_v49 = vshll.u32 %v7296_v7, 16  ;;  %v597_v50 = vshrl.u32 %v7299_v9, 16  ;;  %v590_v56 = vrot.slane %v589_v43, 4  ;;  %v411_v58 = vor.u32 %v410_v45, %v407_v35 }
  0x40   : > { %6427 = vmatprep.mubr.bf16.mxu0 %v5461_v42  ;;  %v585_v38 = vsel %vm7115_vm2, %v580_v30, %v584_v2  ;;  %v600_v63 = vshll.u32 %v7299_v9, 16  ;;  %v421_v52 = vor.u32 %v420_v48, %v416_v47  ;;  %v606_v10 = vshll.u32 %v7308_v28, 16  ;;  %v6899_v2 = vld [vmem:[%s9730_s1] sm:$0xff]   ;;  %v7347_v30 = vld [vmem:[%s7084_s25 + $0x50] sm:$0x1] }
  0x41   : > { %v426_v1 = vrot.slane %v424_v49, 5  ;;  %v599_v3 = vrot.slane %v597_v50, 4  ;;  %v595_v11 = vsel %vm7115_vm2, %v590_v56, %v594_v34  ;;  %v412_v12 = vrot.slane %v411_v58, 4 }
  0x42   : > { %6462 = vmatpush3.bf16.msra.mxu1 %v6895_v46  ;;  %6510 = vmatpush3.bf16.msra.mxu0 %v6896_v55  ;;  %v602_v15 = vrot.slane %v600_v63, 5  ;;  %v610_v46 = vshrl.u32 %v7308_v28, 16  ;;  %v6900_v55 = vld [vmem:[%s9730_s1 + $0x80] sm:$0xff]   ;;  %v5469_v23 = vcombine.low %v585_v38, %v595_v11  ;;  %v422_v24 = vrot.slane %v421_v52, 4  ;;  %v7355_v38 = vld [vmem:[%s7084_s25 + $0xa8] sm:$0xf] }
  0x43   : > { %6463 = vmatprep.subr.bf16.mxu1 %v6897_v29  ;;  %6511 = vmatprep.subr.bf16.mxu0 %v6898_v41  ;;  %v608_v33 = vrot.slane %v606_v10, 5  ;;  %v616_v35 = vshll.u32 %v7324_v61, 16  ;;  %v417_v34 = vsel %vm7115_vm2, %v412_v12, %v416_v47  ;;  %v429_v43 = vshrl.u32 %v7329_v59, 16  ;;  %9759 = vst [vmem:[#allocation2_spill] sm:$0xff] %v7355_v38  ;;  %v7360_v47 = vld [vmem:[%s9730_s1 + $0xf8] sm:$0xff]  }
  0x44   : > { %v603_v37 = vor.u32 %v602_v15, %v599_v3  ;;  %v612_v42 = vrot.slane %v610_v46, 4  ;;  %6443 = vmatprep.mubr.bf16.mxu1 %v5469_v23  ;;  %v427_v45 = vsel %vm7115_vm2, %v422_v24, %v426_v1  ;;  %v432_v49 = vshll.u32 %v7329_v59, 16  ;;  %v7363_v52 = vld [vmem:[%s7084_s25 + $0xac] sm:$0xf]  ;;  %v7368_v1 = vld [vmem:[%s9730_s1 + $0x138] sm:$0xff]  }
  0x45   : > { %v618_v48 = vrot.slane %v616_v35, 5  ;;  %v438_v50 = vshll.u32 %v7338_v17, 16  ;;  %v431_v63 = vrot.slane %v429_v43, 4  ;;  %v442_v10 = vshrl.u32 %v7338_v17, 16  ;;  %v7373_v12 = vld [vmem:[%s7084_s25 + $0xb0] sm:$0x1] }
  0x46   : > { %6464 = vmatpush3.bf16.msra.mxu1 %v6897_v29  ;;  %6512 = vmatpush3.bf16.msra.mxu0 %v6898_v41  ;;  %v5462_v29 = vcombine.low %v417_v34, %v427_v45  ;;  %v604_v56 = vrot.slane %v603_v37, 4  ;;  %v613_v58 = vor.u32 %v612_v42, %v608_v33  ;;  %v434_v41 = vrot.slane %v432_v49, 5  ;;  %9760 = vst [vmem:[#allocation3_spill] sm:$0xff] %v7373_v12  ;;  %v7376_v15 = vld [vmem:[%s7084_s25 + $0x54] sm:$0xf] }
  0x47   : > { %6465 = vmatprep.subr.bf16.mxu1 %v6899_v2  ;;  %6513 = vmatprep.subr.bf16.mxu0 %v6900_v55  ;;  %v440_v3 = vrot.slane %v438_v50, 5  ;;  %v448_v11 = vshll.u32 %v7347_v30, 16  ;;  %v621_v24 = vshrl.u32 %v7355_v38, 16  ;;  %v624_v35 = vshll.u32 %v7355_v38, 16  ;;  %v7383_v34 = vld [vmem:[%s7084_s25 + $0x58] sm:$0xf] }
  0x48   : > { %6428 = vmatmul.mubr.bf16.gmra.mxu0 %v5462_v29  ;;  %v609_v46 = vsel %vm7115_vm2, %v604_v56, %v608_v33  ;;  %v614_v23 = vrot.slane %v613_v58, 4  ;;  %v435_v37 = vor.u32 %v434_v41, %v431_v63  ;;  %v444_v42 = vrot.slane %v442_v10, 4 }
  0x49   : > { %v450_v43 = vrot.slane %v448_v11, 5  ;;  %v630_v45 = vshll.u32 %v7363_v52, 16  ;;  %v623_v49 = vrot.slane %v621_v24, 4  ;;  %v626_v50 = vrot.slane %v624_v35, 5 }
  0x4a   : > { %6466 = vmatpush3.bf16.msra.mxu1 %v6899_v2  ;;  %6514 = vmatpush3.bf16.msra.mxu0 %v6900_v55  ;;  %v619_v33 = vsel %vm7115_vm2, %v614_v23, %v618_v48  ;;  %v634_v29 = vshrl.u32 %v7363_v52, 16  ;;  %v436_v56 = vrot.slane %v435_v37, 4  ;;  %v445_v58 = vor.u32 %v444_v42, %v440_v3  ;;  %v7392_v55 = vld [vmem:[%s7084_s25 + $0x5c] sm:$0x1]  ;;  %v7397_v48 = vld [vmem:[%s7084_s25 + $0xb4] sm:$0xf] }
  0x4b   : > { %6547 = vmatprep.subr.bf16.mxu1 %v7360_v47  ;;  %6595 = vmatprep.subr.bf16.mxu0 %v7368_v1  ;;  %v5470_v2 = vcombine.low %v609_v46, %v619_v33  ;;  %v632_v63 = vrot.slane %v630_v45, 5  ;;  %v627_v41 = vor.u32 %v626_v50, %v623_v49  ;;  %v640_v11 = vshll.u32 %v7373_v12, 16  ;;  %9761 = vst [vmem:[#allocation4_spill] sm:$0xff] %v7397_v48  ;;  %v7404_v37 = vld [vmem:[%s7084_s25 + $0xb8] sm:$0xf] }
  0x4c   : > { %v636_v10 = vrot.slane %v634_v29, 4  ;;  %v453_v21 = vshrl.u32 %v7376_v15, 16  ;;  %v441_v23 = vsel %vm7115_vm2, %v436_v56, %v440_v3  ;;  %v446_v24 = vrot.slane %v445_v58, 4  ;;  %9762 = vst [vmem:[#allocation5_spill] sm:$0xff] %v7404_v37  ;;  %v7410_v3 = vld [vmem:[%s7084_s25 + $0xbc] sm:$0x1] }
  0x4d   : > { %6444 = vmatmul.mubr.bf16.gmra.mxu1 %v5470_v2  ;;  %v456_v46 = vshll.u32 %v7376_v15, 16  ;;  %v462_v35 = vshll.u32 %v7383_v34, 16  ;;  %v628_v42 = vrot.slane %v627_v41, 4  ;;  %v642_v33 = vrot.slane %v640_v11, 5  ;;  %9763 = vst [vmem:[#allocation6_spill] sm:$0xff] %v7410_v3 }
  0x4e   : > { %v637_v45 = vor.u32 %v636_v10, %v632_v63  ;;  %v455_v49 = vrot.slane %v453_v21, 4  ;;  %v451_v50 = vsel %vm7115_vm2, %v446_v24, %v450_v43  ;;  %v466_v62 = vshrl.u32 %v7383_v34, 16  ;;  %v1263_v10 = vld [vmem:[%s7084_s25] sm:$0xe] }
  0x4f   : > { %v458_v29 = vrot.slane %v456_v46, 5  ;;  %v464_v2 = vrot.slane %v462_v35, 5  ;;  %v5463_v56 = vcombine.low %v441_v23, %v451_v50  ;;  %v633_v58 = vsel %vm7115_vm2, %v628_v42, %v632_v63 }
  0x50   : > { %v638_v20 = vrot.slane %v637_v45, 4  ;;  %v472_v41 = vshll.u32 %v7392_v55, 16  ;;  %v468_v21 = vrot.slane %v466_v62, 4  ;;  %v645_v12 = vshrl.u32 %v7397_v48, 16 }
  0x51   : > { %v459_v11 = vor.u32 %v458_v29, %v455_v49  ;;  %v648_v43 = vshll.u32 %v7397_v48, 16  ;;  %6431 = vmatprep.mubr.bf16.mxu0 %v5463_v56  ;;  %v654_v46 = vshll.u32 %v7404_v37, 16  ;;  %v658_v63 = vshrl.u32 %v7404_v37, 16  ;;  %v1264_v49 = vld [vmem:[%s7084_s25 + $0xc] sm:$0xe] }
  0x52   : > { %v643_v24 = vsel %vm7115_vm2, %v638_v20, %v642_v33  ;;  %v474_v23 = vrot.slane %v472_v41, 5  ;;  %v469_v45 = vor.u32 %v468_v21, %v464_v2  ;;  %v647_v50 = vrot.slane %v645_v12, 4  ;;  %v1265_v20 = vld [vmem:[%s7084_s25 + $0x18] sm:$0xe] }
  0x53   : > { %v5471_v35 = vcombine.low %v633_v58, %v643_v24  ;;  %v460_v42 = vrot.slane %v459_v11, 4  ;;  %v650_v62 = vrot.slane %v648_v43, 5  ;;  %v656_v29 = vrot.slane %v654_v46, 5 }
  0x54   : > { %v660_v38 = vrot.slane %v658_v63, 4  ;;  %v664_v48 = vshll.u32 %v7410_v3, 16  ;;  %v470_v58 = vrot.slane %v469_v45, 4  ;;  %v5505_v41 = vrot.slane %v1263_v10, 9 }
  0x55   : > { %6447 = vmatprep.mubr.bf16.mxu1 %v5471_v35  ;;  %v465_v33 = vsel %vm7115_vm2, %v460_v42, %v464_v2  ;;  %v1316_v12 = vrot.slane %v7093_v5, 5  ;;  %v651_v11 = vor.u32 %v650_v62, %v647_v50  ;;  %v5506_v24 = vrot.slane %v1264_v49, 9 }
  0x56   : > { %v661_v21 = vor.u32 %v660_v38, %v656_v29  ;;  %v666_v43 = vrot.slane %v664_v48, 5  ;;  %v475_v46 = vsel %vm7115_vm2, %v470_v58, %v474_v23  ;;  %v1323_v35 = vrot.slane %v7120_v32, 5 }
  0x57   : > { %v1317_v63 = vsel %vm7426_vm5, %v5505_v41, %v1316_v12  ;;  %v1318_v3 = vrot.slane %v1316_v12, 4  ;;  %v5464_v37 = vcombine.low %v465_v33, %v475_v46  ;;  %v652_v2 = vrot.slane %v651_v11, 4  ;;  %v1267_v12 = vld [vmem:[%s7084_s25 + $0x30] sm:$0xe]  ;;  %v1269_v46 = vld [vmem:[%s7084_s25 + $0x48] sm:$0xe] }
  0x58   : > { %v662_v42 = vrot.slane %v661_v21, 4  ;;  %v5481_v10 = vcombine.low %v7090_v4, %v7093_v5  ;;  %v9766_v38 = vrot.slane %v7096_v6, 5  ;;  %v1325_v45 = vrot.slane %v1323_v35, 4 }
  0x59   : > { %v5507_v23 = vrot.slane %v1265_v20, 9  ;;  %6432 = vmatmul.mubr.bf16.gmra.mxu0 %v5464_v37  ;;  %v657_v50 = vsel %vm7115_vm2, %v652_v2, %v656_v29  ;;  %v1330_v33 = vrot.slane %v7157_v19, 5  ;;  %v1324_v4 = vsel %vm7426_vm5, %v5506_v24, %v1323_v35  ;;  %v1268_v24 = vld [vmem:[%s7084_s25 + $0x3c] sm:$0xe] }
  0x5a   : > { %v1320_v48 = vsel %vm7426_vm5, %v1318_v3, %v9766_v38  ;;  %v667_v49 = vsel %vm7115_vm2, %v662_v42, %v666_v43  ;;  %v9767_v5 = vrot.slane %v7126_v40, 5  ;;  %v1333_v37 = vrot.slane %v7162_v25, 5  ;;  %v1266_v3 = vld [vmem:[%s7084_s25 + $0x24] sm:$0xe]  ;;  %v6908_v25 = vld [vmem:[%s9730_s1 + $0x130] sm:$0xff]  }
  0x5b   : > { %v5537_v62 = vcombine.low %v1317_v63, %v1320_v48  ;;  %v5472_v58 = vcombine.low %v657_v50, %v667_v49  ;;  %v1331_v29 = vsel %vm7426_vm5, %v5507_v23, %v1330_v33  ;;  %v1332_v20 = vrot.slane %v1330_v33, 4  ;;  %v6907_v23 = vld [vmem:[%s9730_s1 + $0xf0] sm:$0xff]  }
  0x5c   : > { %v1327_v6 = vsel %vm7426_vm5, %v1325_v45, %v9767_v5  ;;  %v1337_v41 = vrot.slane %v7198_v0, 5  ;;  %v5508_v21 = vrot.slane %v1266_v3, 9  ;;  %v1344_v43 = vrot.slane %v7245_v60, 5  ;;  %v7501_v3 = vld [vmem:[%s7084_s25 + $0x68] sm:$0x1] }
  0x5d   : > { %6515 = vmatprep.mubr.bf16.mxu0 %v5537_v62  ;;  %6448 = vmatmul.mubr.bf16.gmra.mxu1 %v5472_v58  ;;  %v5538_v11 = vcombine.low %v1324_v4, %v1327_v6  ;;  %v1334_v40 = vsel %vm7426_vm5, %v1332_v20, %v1333_v37  ;;  %v1340_v2 = vrot.slane %v7201_v8, 5  ;;  %v5509_v42 = vrot.slane %v1267_v12, 9  ;;  %v1270_v37 = vld [vmem:[%s7084_s25 + $0x54] sm:$0xe]  ;;  %v7525_v12 = vld [vmem:[%s7084_s25 + $0x60] sm:$0xe] }
  0x5e   : > { %6467 = vmatprep.mubr.bf16.mxu1 %v5481_v10  ;;  %v5539_v63 = vcombine.low %v1331_v29, %v1334_v40  ;;  %v1339_v35 = vrot.slane %v1337_v41, 4  ;;  %v1346_v38 = vrot.slane %v1344_v43, 4  ;;  %v1347_v10 = vrot.slane %v7253_v16, 5 }
  0x5f   : > { %v1351_v48 = vrot.slane %v7289_v54, 5  ;;  %v5483_v45 = vcombine.low %v7149_v14, %v7157_v19  ;;  %v1358_v50 = vrot.slane %v7338_v17, 5  ;;  %v5510_v49 = vrot.slane %v1268_v24, 9  ;;  %v6916_v24 = vld [vmem:[%s9730_s1 + $0x120] sm:$0xff]  }
  0x60   : > { %v1354_v8 = vrot.slane %v7296_v7, 5  ;;  %v5511_v33 = vrot.slane %v1269_v46, 9  ;;  %v1338_v14 = vsel %vm7426_vm5, %v5508_v21, %v1337_v41  ;;  %v1341_v19 = vsel %vm7426_vm5, %v1339_v35, %v1340_v2  ;;  %v7537_v46 = vld [vmem:[%s7084_s25 + $0x78] sm:$0xe]  ;;  %v6915_v2 = vld [vmem:[%s9730_s1 + $0xe0] sm:$0xff]  }
  0x61   : > { %6516 = vmatmul.mubr.bf16.vlgmr.msra.gmra.mxu0 %v5538_v11  ;;  %v1353_v62 = vrot.slane %v1351_v48, 4  ;;  %v1360_v16 = vrot.slane %v1358_v50, 4  ;;  %v1361_v58 = vrot.slane %v7347_v30, 5  ;;  %v1345_v4 = vsel %vm7426_vm5, %v5509_v42, %v1344_v43  ;;  %v7528_v11 = vld [vmem:[%s7084_s25 + $0x6c] sm:$0xe] }
  0x62   : > { %6596 = vmatpush3.bf16.msra.mxu0 %v7368_v1  ;;  %6519 = vmatprep.mubr.bf16.mxu0 %v5539_v63  ;;  %v1348_v7 = vsel %vm7426_vm5, %v1346_v38, %v1347_v10  ;;  %v6912_v1 = vld [vmem:[%s9730_s1 + $0x128] sm:$0xff]   ;;  %v1365_v5 = vrot.slane %v7383_v34, 5  ;;  %v9768_v6 = vcombine.low %v7111_v26, %v7120_v32  ;;  %v5484_v30 = vcombine.low %v7189_v57, %v7198_v0  ;;  %v1274_v63 = vld [vmem:[%s7084_s25 + $0x84] sm:$0xe]  ;;  %v1275_v42 = vld [vmem:[%s7084_s25 + $0x90] sm:$0xe] }
  0x63   : > { %6597 = vmatprep.subr.bf16.mxu0 %v6908_v25  ;;  %v1375_v29 = vrot.slane %v7501_v3, 5  ;;  %v5540_v20 = vcombine.low %v1338_v14, %v1341_v19  ;;  %v7507_v41 = vsel %vm7426_vm5, %v5510_v49, %v1351_v48  ;;  %v7511_v26 = vsel %vm7426_vm5, %v1353_v62, %v1354_v8  ;;  %v6911_v32 = vld [vmem:[%s9730_s1 + $0xe8] sm:$0xff]   ;;  %v7556_v48 = vld [vmem:[%s7084_s25 + $0x64] sm:$0xf]  ;;  %v1276_v49 = vld [vmem:[%s7084_s25 + $0x9c] sm:$0xe] }
  0x64   : > { %v5541_v57 = vcombine.low %v1345_v4, %v1348_v7  ;;  %v7518_v0 = vsel %vm7426_vm5, %v5511_v33, %v1358_v50  ;;  %v5485_v40 = vcombine.low %v7236_v53, %v7245_v60  ;;  %v5512_v21 = vrot.slane %v1270_v37, 9  ;;  %v7578_v4 = vld [vmem:[%s7084_s25 + $0x74] sm:$0x1] }
  0x65   : > { %6468 = vmatmul.mubr.bf16.vlgmr.msra.gmra.mxu1 %v9768_v6  ;;  %v1368_v43 = vrot.slane %v7392_v55, 5  ;;  %v5486_v35 = vcombine.low %v7286_v51, %v7289_v54  ;;  %v5542_v53 = vcombine.low %v7507_v41, %v7511_v26  ;;  %v5487_v60 = vcombine.low %v7329_v59, %v7338_v17  ;;  %v7001_v54 = vld [vmem:[%s7084_s25 + $0x80] sm:$0x1] }
  0x66   : > { %6548 = vmatpush3.bf16.msra.mxu1 %v7360_v47  ;;  %6471 = vmatprep.mubr.bf16.mxu1 %v5483_v45  ;;  %v7522_v47 = vsel %vm7426_vm5, %v1360_v16, %v1361_v58  ;;  %v5488_v55 = vcombine.low %v7376_v15, %v7383_v34  ;;  %v5513_v10 = vrot.slane %v7525_v12, 9  ;;  %v1372_v45 = vrot.slane %v7556_v48, 5  ;;  %v7574_v16 = vld [vmem:[%s7084_s25 + $0x70] sm:$0xf]  ;;  %v7002_v17 = vld [vmem:[%s7084_s25 + $0x60] sm:$0xf] }
  0x67   : > { %6549 = vmatprep.subr.bf16.mxu1 %v6907_v23  ;;  %6598 = vmatpush3.bf16.msra.mxu0 %v6908_v25  ;;  %v1367_v25 = vrot.slane %v1365_v5, 4  ;;  %v5543_v38 = vcombine.low %v7518_v0, %v7522_v47  ;;  %v5514_v62 = vrot.slane %v7528_v11, 9  ;;  %v1393_v8 = vrot.slane %v7212_v22, 5  ;;  %v1277_v0 = vld [vmem:[%s7084_s25 + $0xa8] sm:$0xe]  ;;  %v7758_v15 = vld [vmem:[%s9730_s1 + $0x1b8] sm:$0xff]  }
  0x68   : > { %6599 = vmatprep.subr.bf16.mxu0 %v6912_v1  ;;  %v1396_v33 = vrot.slane %v7221_v36, 5  ;;  %v7567_v14 = vsel %vm7426_vm5, %v5512_v21, %v1365_v5  ;;  %v1379_v58 = vrot.slane %v7574_v16, 5  ;;  %v1382_v7 = vrot.slane %v7578_v4, 5  ;;  %v6919_v36 = vld [vmem:[%s9730_s1 + $0xd8] sm:$0xff]  }
  0x69   : > { %6520 = vmatmul.mubr.bf16.gmra.mxu0 %v5540_v20  ;;  %v7571_v19 = vsel %vm7426_vm5, %v1367_v25, %v1368_v43  ;;  %v5515_v5 = vrot.slane %v7537_v46, 9  ;;  %v1395_v37 = vrot.slane %v1393_v8, 4  ;;  %v5517_v41 = vrot.slane %v1275_v42, 9  ;;  %v5633_v42 = vld [vmem:[%s7084_s25 + $0xc] sm:$0xf] }
  0x6a   : > { %6550 = vmatpush3.bf16.msra.mxu1 %v6907_v23  ;;  %6523 = vmatprep.mubr.bf16.mxu0 %v5541_v57  ;;  %v5516_v23 = vrot.slane %v1274_v63, 9  ;;  %v1400_v26 = vrot.slane %v7263_v31, 5  ;;  %v1403_v57 = vrot.slane %v7273_v44, 5  ;;  %v1386_v47 = vrot.slane %v7171_v39, 5 }
  0x6b   : > { %6551 = vmatprep.subr.bf16.mxu1 %v6911_v32  ;;  %6600 = vmatpush3.bf16.msra.mxu0 %v6912_v1  ;;  %v6920_v1 = vld [vmem:[%s9730_s1 + $0x118] sm:$0xff]   ;;  %v7602_v21 = vsel %vm7426_vm5, %v1395_v37, %v1396_v33  ;;  %v1407_v63 = vrot.slane %v7308_v28, 5  ;;  %v5519_v33 = vrot.slane %v1277_v0, 9  ;;  %v1414_v37 = vrot.slane %v7363_v52, 5  ;;  %v6923_v0 = vld [vmem:[%s9730_s1 + $0xd0] sm:$0xff]  }
  0x6c   : > { %6601 = vmatprep.subr.bf16.mxu0 %v6916_v24  ;;  %v7590_v6 = vsel %vm7426_vm5, %v5516_v23, %v1393_v8  ;;  %v7610_v44 = vsel %vm7426_vm5, %v5517_v41, %v1400_v26  ;;  %v1402_v43 = vrot.slane %v1400_v26, 4  ;;  %v6924_v23 = vld [vmem:[%s9730_s1 + $0x110] sm:$0xff]   ;;  %v1410_v8 = vrot.slane %v7324_v61, 5  ;;  %v9770_v61 = vld [vmem:[#allocation3_spill] sm:$0xff] }
  0x6d   : > { %6472 = vmatmul.mubr.bf16.gmra.mxu1 %v5484_v30  ;;  %v1374_v30 = vrot.slane %v1372_v45, 4  ;;  %v1409_v20 = vrot.slane %v1407_v63, 4  ;;  %v1417_v50 = vrot.slane %v9770_v61, 5  ;;  %v1373_v61 = vsel %vm7426_vm5, %v5513_v10, %v1372_v45  ;;  %v5636_v45 = vld [vmem:[%s7084_s25 + $0x18] sm:$0xf] }
  0x6e   : > { %6475 = vmatprep.mubr.bf16.mxu1 %v5485_v40  ;;  %6552 = vmatpush3.bf16.msra.mxu1 %v6911_v32  ;;  %v5518_v40 = vrot.slane %v1276_v49, 9  ;;  %v7622_v32 = vld [vmem:[%s7084_s25 + $0x10] sm:$0xf]  ;;  %v7626_v41 = vsel %vm7426_vm5, %v1402_v43, %v1403_v57  ;;  %v1416_v57 = vrot.slane %v1414_v37, 4  ;;  %v2187_v12 = vshrl.u32 %v5633_v42, 16 }
  0x6f   : > { %6553 = vmatprep.subr.bf16.mxu1 %v6915_v2  ;;  %6602 = vmatpush3.bf16.msra.mxu0 %v6916_v24  ;;  %v9769_v24 = vld [vmem:[#allocation2_spill] sm:$0xff]  ;;  %v9772_v43 = vld [vmem:[#allocation4_spill] sm:$0xff]  ;;  %v2190_v10 = vshll.u32 %v5633_v42, 16  ;;  %v1381_v51 = vrot.slane %v1379_v58, 4  ;;  %v2196_v59 = vshll.u32 %v7622_v32, 16  ;;  %v1387_v4 = vsel %vm7426_vm5, %v5515_v5, %v1386_v47 }
  0x70   : > { %6603 = vmatprep.subr.bf16.mxu0 %v6920_v1  ;;  %v7630_v26 = vsel %vm7426_vm5, %v5518_v40, %v1407_v63  ;;  %v9771_v40 = vld [vmem:[#allocation5_spill] sm:$0xff]  ;;  %v7696_v42 = vld [vmem:[%s7084_s25 + $0x14] sm:$0x1]  ;;  %v2189_v63 = vrot.slane %v2187_v12, 4  ;;  %v9774_v5 = vld [vmem:[#allocation6_spill] sm:$0xff] }
  0x71   : > { %6524 = vmatmul.mubr.bf16.gmra.mxu0 %v5542_v53  ;;  %v2192_v49 = vrot.slane %v2190_v10, 5  ;;  %v5639_v53 = vld [vmem:[%s7084_s25 + $0x24] sm:$0xf]  ;;  %v1383_v11 = vsel %vm7426_vm5, %v1381_v51, %v1382_v7 }
  0x72   : > { %6554 = vmatpush3.bf16.msra.mxu1 %v6915_v2  ;;  %6527 = vmatprep.mubr.bf16.mxu0 %v5543_v38  ;;  %v7640_v2 = vsel %vm7426_vm5, %v5519_v33, %v1414_v37  ;;  %v5544_v38 = vcombine.low %v7567_v14, %v7571_v19  ;;  %v1376_v33 = vsel %vm7426_vm5, %v1374_v30, %v1375_v29  ;;  %v6928_v14 = vld [vmem:[%s9730_s1 + $0x108] sm:$0xff]   ;;  %v6932_v30 = vld [vmem:[%s9730_s1 + $0x100] sm:$0xff]   ;;  %v7715_v19 = vrot.slane %v2196_v59, 5 }
  0x73   : > { %6555 = vmatprep.subr.bf16.mxu1 %v6919_v36  ;;  %6604 = vmatpush3.bf16.msra.mxu0 %v6920_v1  ;;  %v7658_v37 = vsel %vm7426_vm5, %v1409_v20, %v1410_v8  ;;  %v7670_v29 = vsel %vm7426_vm5, %v1416_v57, %v1417_v50  ;;  %v6927_v50 = vld [vmem:[%s9730_s1 + $0xc8] sm:$0xff]   ;;  %v7685_v1 = vld [vmem:[%s7084_s25 + $0xb4] sm:$0xe]  ;;  %v5545_v20 = vcombine.low %v1373_v61, %v1376_v33  ;;  %v2200_v8 = vshrl.u32 %v7622_v32, 16  ;;  %v7713_v61 = vld [vmem:[%s7084_s25 + $0x1c] sm:$0xf] }
  0x74   : > { %6605 = vmatprep.subr.bf16.mxu0 %v6924_v23  ;;  %v7700_v57 = vld [vmem:[%s7084_s25 + $0x6c] sm:$0xf]  ;;  %v2211_v33 = vshrl.u32 %v5636_v45, 16  ;;  %v2220_v51 = vshll.u32 %v7713_v61, 16  ;;  %v2224_v39 = vshrl.u32 %v7713_v61, 16  ;;  %v2235_v59 = vshrl.u32 %v5639_v53, 16 }
  0x75   : > { %6476 = vmatmul.mubr.bf16.gmra.mxu1 %v5486_v35  ;;  %v1389_v35 = vrot.slane %v7001_v54, 5  ;;  %v5490_v54 = vcombine.low %v7700_v57, %v7574_v16  ;;  %v2202_v3 = vrot.slane %v2200_v8, 4  ;;  %v2238_v46 = vshll.u32 %v5639_v53, 16  ;;  %v7005_v8 = vld [vmem:[%s7084_s25 + $0x7c] sm:$0xf] }
  0x76   : > { %6479 = vmatprep.mubr.bf16.mxu1 %v5487_v60  ;;  %6556 = vmatpush3.bf16.msra.mxu1 %v6919_v36  ;;  %v5489_v60 = vcombine.low %v7002_v17, %v7556_v48  ;;  %v1388_v36 = vrot.slane %v1386_v47, 4  ;;  %v7710_v48 = vsel %vm7426_vm5, %v5514_v62, %v1379_v58  ;;  %v2214_v17 = vshll.u32 %v5636_v45, 16  ;;  %v6931_v58 = vld [vmem:[%s9730_s1 + $0xc0] sm:$0xff]   ;;  %v7740_v45 = vld [vmem:[%s7084_s25 + $0x28] sm:$0xf] }
  0x77   : > { %6557 = vmatprep.subr.bf16.mxu1 %v6923_v0  ;;  %6606 = vmatpush3.bf16.msra.mxu0 %v6924_v23  ;;  %v9742_v62 = vrot.slane %v9771_v40, 5  ;;  %v7727_v23 = vld [vmem:[%s7084_s25 + $0x20] sm:$0x1]  ;;  %v2213_v12 = vrot.slane %v2211_v33, 4  ;;  %9773 = vst [vmem:[#allocation2_spill] sm:$0xff] %v7740_v45  ;;  %v5546_v34 = vcombine.low %v7710_v48, %v1383_v11  ;;  %v2244_v53 = vshll.u32 %v7740_v45, 16 }
  0x78   : > { %6607 = vmatprep.subr.bf16.mxu0 %v6928_v14  ;;  %v2216_v10 = vrot.slane %v2214_v17, 5  ;;  %v1390_v7 = vsel %vm7426_vm5, %v1388_v36, %v1389_v35  ;;  %v2193_v35 = vor.u32 %v2192_v49, %v2189_v63  ;;  %v7753_v36 = vld [vmem:[%s9730_s1 + $0x178] sm:$0xff]   ;;  %v5642_v63 = vld [vmem:[%s7084_s25 + $0x30] sm:$0xf]  ;;  %v7774_v48 = vld [vmem:[%s7084_s25 + $0x34] sm:$0xf] }
  0x79   : > { %6528 = vmatmul.mubr.bf16.gmra.mxu0 %v5544_v38  ;;  %v2206_v38 = vshll.u32 %v7696_v42, 16  ;;  %v5547_v17 = vcombine.low %v1387_v4, %v1390_v7  ;;  %9776 = vst [vmem:[#allocation5_spill] sm:$0xff] %v7774_v48  ;;  %v7776_v11 = vrot.slane %v2220_v51, 5  ;;  %v2240_v47 = vrot.slane %v2238_v46, 5  ;;  %v7795_v46 = vld [vmem:[%s7084_s25 + $0x40] sm:$0xf] }
  0x7a   : > { %6558 = vmatpush3.bf16.msra.mxu1 %v6923_v0  ;;  %6531 = vmatprep.mubr.bf16.mxu0 %v5545_v20  ;;  %v2203_v20 = vor.u32 %v2202_v3, %v7715_v19  ;;  %v2217_v49 = vor.u32 %v2216_v10, %v2213_v12  ;;  %v7004_v3 = vld [vmem:[%s7084_s25 + $0x78] sm:$0xf]  ;;  %v2226_v12 = vrot.slane %v2224_v39, 4  ;;  %v2237_v10 = vrot.slane %v2235_v59, 4  ;;  %9777 = vst [vmem:[#allocation4_spill] sm:$0xff] %v7795_v46 }
  0x7b   : > { %6559 = vmatprep.subr.bf16.mxu1 %v6927_v50  ;;  %6608 = vmatpush3.bf16.msra.mxu0 %v6928_v14  ;;  %v2230_v14 = vshll.u32 %v7727_v23, 16  ;;  %v5491_v33 = vcombine.low %v7004_v3, %v7005_v8  ;;  %v7767_v25 = vrot.slane %v2206_v38, 5  ;;  %v7779_v0 = vld [vmem:[%s7084_s25 + $0x38] sm:$0x1]  ;;  %v7781_v4 = vrot.slane %v2193_v35, 4 }
  0x7c   : > { %6609 = vmatprep.subr.bf16.mxu0 %v6932_v30  ;;  %v7783_v7 = vrot.slane %v2203_v20, 4  ;;  %v2259_v3 = vshrl.u32 %v5642_v63, 16  ;;  %v5645_v8 = vld [vmem:[%s7084_s25 + $0x3c] sm:$0xf]  ;;  %v7791_v51 = vrot.slane %v2244_v53, 5  ;;  %v2262_v39 = vshll.u32 %v5642_v63, 16 }
  0x7d   : > { %6480 = vmatmul.mubr.bf16.gmra.mxu1 %v5488_v55  ;;  %v1423_v55 = vrot.slane %v9742_v62, 4  ;;  %v7785_v38 = vrot.slane %v2230_v14, 5  ;;  %v2268_v59 = vshll.u32 %v7774_v48, 16  ;;  %v2272_v20 = vshrl.u32 %v7774_v48, 16 }
  0x7e   : > { %6483 = vmatprep.mubr.bf16.mxu1 %v5489_v60  ;;  %6560 = vmatpush3.bf16.msra.mxu1 %v6927_v50  ;;  %v7770_v60 = vld [vmem:[%s7084_s25 + $0x2c] sm:$0x1]  ;;  %v2248_v50 = vshrl.u32 %v7740_v45, 16  ;;  %v2227_v14 = vor.u32 %v2226_v12, %v7776_v11  ;;  %v2261_v53 = vrot.slane %v2259_v3, 4  ;;  %v2264_v63 = vrot.slane %v2262_v39, 5 }
  0x7f   : > { %6561 = vmatprep.subr.bf16.mxu1 %v6931_v58  ;;  %9775 = vst [vmem:[#allocation3_spill] sm:$0xff] %v7770_v60  ;;  %6610 = vmatpush3.bf16.msra.mxu0 %v6932_v30  ;;  %v7789_v30 = vrot.slane %v2217_v49, 4  ;;  %v2283_v49 = vshrl.u32 %v5645_v8, 16  ;;  %v2286_v62 = vshll.u32 %v5645_v8, 16  ;;  %v2274_v48 = vrot.slane %v2272_v20, 4 }
  0x80   : > { %6691 = vmatprep.subr.bf16.mxu0 %v7758_v15  ;;  %v2250_v35 = vrot.slane %v2248_v50, 4  ;;  %v7805_v50 = vrot.slane %v2268_v59, 5  ;;  %v7808_v45 = vld [vmem:[%s7084_s25 + $0x44] sm:$0x1]  ;;  %v2296_v12 = vshrl.u32 %v7795_v46, 16  ;;  %v9778_v16 = vrot.slane %v9771_v40, 5 }
  0x81   : > { %6532 = vmatmul.mubr.bf16.gmra.mxu0 %v5546_v34  ;;  %v2254_v34 = vshll.u32 %v7770_v60, 16  ;;  %v9779_v57 = vrot.slane %v7685_v1, 9  ;;  %v7829_v39 = vld [vmem:[%s7084_s25 + $0x4c] sm:$0xf]  ;;  %v2285_v59 = vrot.slane %v2283_v49, 4  ;;  %v2288_v20 = vrot.slane %v2286_v62, 5 }
  0x82   : > { %6562 = vmatpush3.bf16.msra.mxu1 %v6931_v58  ;;  %6535 = vmatprep.mubr.bf16.mxu0 %v5547_v17  ;;  %v2241_v58 = vor.u32 %v2240_v47, %v2237_v10  ;;  %v2278_v17 = vshll.u32 %v7779_v0, 16  ;;  %v2292_v47 = vshll.u32 %v7795_v46, 16  ;;  %v5648_v10 = vld [vmem:[%s7084_s25 + $0x48] sm:$0xf]  ;;  %v2251_v8 = vor.u32 %v2250_v35, %v7791_v51 }
  0x83   : > { %6643 = vmatprep.subr.bf16.mxu1 %v7753_v36  ;;  %v2298_v1 = vrot.slane %v2296_v12, 4  ;;  %v7833_v46 = vrot.slane %v2227_v14, 4  ;;  %v2199_v62 = vsel %vm7115_vm2, %v7781_v4, %v7715_v19  ;;  %v2209_v35 = vsel %vm7115_vm2, %v7783_v7, %v7767_v25  ;;  %v5651_v4 = vld [vmem:[%s7084_s25 + $0x54] sm:$0xf] }
  0x84   : > { %v7831_v60 = vrot.slane %v2292_v47, 5  ;;  %v2310_v14 = vshll.u32 %v5648_v10, 16  ;;  %v2302_v49 = vshll.u32 %v7808_v45, 16  ;;  %v2320_v19 = vshrl.u32 %v7829_v39, 16 }
  0x85   : > { %6484 = vmatmul.mubr.bf16.gmra.mxu1 %v5490_v54  ;;  %v7819_v54 = vsel %vm7426_vm5, %v9779_v57, %v9778_v16  ;;  %v7835_v16 = vrot.slane %v2241_v58, 4  ;;  %v7837_v57 = vrot.slane %v2254_v34, 5  ;;  %v2316_v58 = vshll.u32 %v7829_v39, 16 }
  0x86   : > { %6487 = vmatprep.mubr.bf16.mxu1 %v5491_v33  ;;  %v9780_v33 = vrot.slane %v9774_v5, 5  ;;  %v2307_v5 = vshrl.u32 %v5648_v10, 16  ;;  %v9782_v34 = vcombine.low %v7610_v44, %v7626_v41  ;;  %v7858_v47 = vrot.slane %v2251_v8, 4  ;;  %v7864_v10 = vld [vmem:[%s7084_s25 + $0x58] sm:$0xf] }
  0x87   : > { %v7860_v12 = vrot.slane %v2278_v17, 5  ;;  %v2289_v25 = vor.u32 %v2288_v20, %v2285_v59  ;;  %v2299_v7 = vor.u32 %v2298_v1, %v7831_v60  ;;  %v9783_v44 = vcombine.low %v7205_v13, %v7212_v22  ;;  %v7870_v41 = vld [vmem:[%s7084_s25 + $0x50] sm:$0x1] }
  0x88   : > { %v7825_v3 = vsel %vm7426_vm5, %v1423_v55, %v9780_v33  ;;  %v9781_v55 = vcombine.low %v7590_v6, %v7602_v21  ;;  %v2265_v6 = vor.u32 %v2264_v63, %v2261_v53  ;;  %v2275_v21 = vor.u32 %v2274_v48, %v7805_v50 }
  0x89   : > { %v2309_v48 = vrot.slane %v2307_v5, 4  ;;  %v2312_v53 = vrot.slane %v2310_v14, 5  ;;  %v7872_v63 = vrot.slane %v2316_v58, 5  ;;  %v2322_v17 = vrot.slane %v2320_v19, 4  ;;  %v5654_v5 = vld [vmem:[%s7084_s25 + $0x60] sm:$0xf] }
  0x8a   : > { %6536 = vmatmul.mubr.bf16.gmra.mxu0 %v9781_v55  ;;  %v9784_v33 = vcombine.low %v7257_v18, %v7263_v31  ;;  %v2331_v8 = vshrl.u32 %v5651_v4, 16  ;;  %v2334_v59 = vshll.u32 %v5651_v4, 16  ;;  %v7877_v20 = vrot.slane %v2265_v6, 4  ;;  %v7894_v31 = vld [vmem:[%s7084_s25 + $0x64] sm:$0xf] }
  0x8b   : > { %6539 = vmatprep.mubr.bf16.mxu0 %v9782_v34  ;;  %v7879_v1 = vrot.slane %v2275_v21, 4  ;;  %v7881_v13 = vrot.slane %v2302_v49, 5  ;;  %v2340_v22 = vshll.u32 %v7864_v10, 16  ;;  %v5552_v55 = vcombine.low %v7819_v54, %v7825_v3  ;;  %v7890_v34 = vld [vmem:[%s7084_s25 + $0x5c] sm:$0x1] }
  0x8c   : > { %v5697_v14 = vcombine.low %v2199_v62, %v2209_v35  ;;  %v7887_v58 = vrot.slane %v2289_v25, 4  ;;  %v2344_v18 = vshrl.u32 %v7864_v10, 16  ;;  %v7896_v6 = vrot.slane %v2299_v7, 4 }
  0x8d   : > { %6488 = vmatmul.mubr.bf16.gmra.mxu1 %v9783_v44  ;;  %v2326_v21 = vshll.u32 %v7870_v41, 16  ;;  %v2355_v49 = vshrl.u32 %v5654_v5, 16  ;;  %v2358_v19 = vshll.u32 %v5654_v5, 16  ;;  %v9785_v4 = vcombine.low %v7630_v26, %v7658_v37 }
  0x8e   : > { %6491 = vmatprep.mubr.bf16.mxu1 %v9784_v33  ;;  %v2313_v54 = vor.u32 %v2312_v53, %v2309_v48  ;;  %v2323_v3 = vor.u32 %v2322_v17, %v7872_v63  ;;  %v2333_v62 = vrot.slane %v2331_v8, 4  ;;  %v2336_v35 = vrot.slane %v2334_v59, 5  ;;  %v7934_v8 = vld [vmem:[%s7084_s25 + $0x70] sm:$0xf] }
  0x8f   : > { %v9786_v25 = vcombine.low %v7640_v2, %v7670_v29  ;;  %v7906_v7 = vrot.slane %v2340_v22, 5  ;;  %v2346_v44 = vrot.slane %v2344_v18, 4  ;;  %v2350_v33 = vshll.u32 %v7890_v34, 16 }
  0x90   : > { %v2364_v26 = vshll.u32 %v7894_v31, 16  ;;  %v2223_v37 = vsel %vm7115_vm2, %v7789_v30, %v7776_v11  ;;  %v2233_v2 = vsel %vm7115_vm2, %v7833_v46, %v7785_v38  ;;  %v2357_v29 = vrot.slane %v2355_v49, 4  ;;  %v5657_v46 = vld [vmem:[%s7084_s25 + $0x6c] sm:$0xf] }
  0x91   : > { %v2360_v48 = vrot.slane %v2358_v19, 5  ;;  %v9787_v53 = vcombine.low %v7299_v9, %v7308_v28  ;;  %v2247_v17 = vsel %vm7115_vm2, %v7835_v16, %v7791_v51  ;;  %v2257_v11 = vsel %vm7115_vm2, %v7858_v47, %v7837_v57  ;;  %v7942_v16 = vld [vmem:[%s7084_s25 + $0x68] sm:$0x1] }
  0x92   : > { %6540 = vmatmul.mubr.bf16.gmra.mxu0 %v9785_v4  ;;  %v7929_v30 = vrot.slane %v2326_v21, 5  ;;  %v2368_v38 = vshrl.u32 %v7894_v31, 16  ;;  %v9788_v9 = vcombine.low %v9769_v24, %v7363_v52  ;;  %v7939_v28 = vrot.slane %v2313_v54, 4  ;;  %v6933_v52 = vld [vmem:[%s7084_s25 + $0xc] sm:$0xff]  }
  0x93   : > { %6543 = vmatprep.mubr.bf16.mxu0 %v9786_v25  ;;  %v2337_v51 = vor.u32 %v2336_v35, %v2333_v62  ;;  %v2379_v59 = vshrl.u32 %v5657_v46, 16  ;;  %v2382_v57 = vshll.u32 %v5657_v46, 16  ;;  %v7944_v47 = vrot.slane %v2323_v3, 4  ;;  %v7955_v62 = vld [vmem:[%s7084_s25 + $0x74] sm:$0x1] }
  0x94   : > { %v2347_v22 = vor.u32 %v2346_v44, %v7906_v7  ;;  %v7947_v5 = vrot.slane %v2350_v33, 5  ;;  %v2388_v18 = vshll.u32 %v7934_v8, 16  ;;  %v2361_v24 = vor.u32 %v2360_v48, %v2357_v29  ;;  %v5660_v25 = vld [vmem:[%s7084_s25 + $0x78] sm:$0xf]  ;;  %v7959_v44 = vld [vmem:[%s7084_s25 + $0x7c] sm:$0xf] }
  0x95   : > { %6492 = vmatmul.mubr.bf16.gmra.mxu1 %v9787_v53  ;;  %v7951_v21 = vrot.slane %v2364_v26, 5  ;;  %v2370_v49 = vrot.slane %v2368_v38, 4  ;;  %v2392_v19 = vshrl.u32 %v7934_v8, 16  ;;  %v5698_v4 = vcombine.low %v2223_v37, %v2233_v2  ;;  %v7966_v26 = vld [vmem:[%s7084_s25 + $0x80] sm:$0x1] }
  0x96   : > { %6495 = vmatprep.mubr.bf16.mxu1 %v9788_v9  ;;  %v5699_v54 = vcombine.low %v2247_v17, %v2257_v11  ;;  %v2381_v3 = vrot.slane %v2379_v59, 4  ;;  %v2384_v35 = vrot.slane %v2382_v57, 5  ;;  %v7961_v33 = vrot.slane %v2337_v51, 4 }
  0x97   : > { %v7963_v53 = vrot.slane %v2388_v18, 5  ;;  %v2394_v29 = vrot.slane %v2392_v19, 4  ;;  %v2403_v48 = vshrl.u32 %v5660_v25, 16  ;;  %v2374_v37 = vshll.u32 %v7942_v16, 16  ;;  %v5663_v19 = vld [vmem:[%s7084_s25 + $0x84] sm:$0xf] }
  0x98   : > { %v2406_v2 = vshll.u32 %v5660_v25, 16  ;;  %v2412_v17 = vshll.u32 %v7959_v44, 16  ;;  %v2416_v11 = vshrl.u32 %v7959_v44, 16  ;;  %v7971_v38 = vrot.slane %v2347_v22, 4  ;;  %v6937_v25 = vld [vmem:[%s7084_s25 + $0x24] sm:$0xff]  }
  0x99   : > { %v7973_v46 = vrot.slane %v2361_v24, 4  ;;  %v2405_v9 = vrot.slane %v2403_v48, 4  ;;  %v9789_v51 = vcombine.low %v9772_v43, %v9771_v40  ;;  %v2271_v22 = vsel %vm7115_vm2, %v7877_v20, %v7805_v50 }
  0x9a   : > { %6544 = vmatmul.mubr.bf16.gmra.mxu0 %v5552_v55  ;;  %v2371_v55 = vor.u32 %v2370_v49, %v7951_v21  ;;  %v2408_v59 = vrot.slane %v2406_v2, 5  ;;  %v7979_v57 = vrot.slane %v2412_v17, 5  ;;  %v2418_v18 = vrot.slane %v2416_v11, 4  ;;  %v8028_v17 = vld [vmem:[%s7084_s25 + $0x8c] sm:$0x1] }
  0x9b   : > { %6611 = vmatprep.mubr.bf16.mxu0 %v5697_v14  ;;  %v2385_v14 = vor.u32 %v2384_v35, %v2381_v3  ;;  %v2395_v24 = vor.u32 %v2394_v29, %v7963_v53  ;;  %v2398_v49 = vshll.u32 %v7955_v62, 16  ;;  %v2422_v40 = vshll.u32 %v7966_v26, 16  ;;  %v8002_v3 = vld [vmem:[%s7084_s25 + $0x88] sm:$0xf]  ;;  %v6934_v35 = vld [vmem:[%s7084_s25 + $0x18] sm:$0xff]  }
  0x9c   : > { %v2281_v43 = vsel %vm7115_vm2, %v7879_v1, %v7860_v12  ;;  %v2305_v50 = vsel %vm7115_vm2, %v7896_v6, %v7881_v13  ;;  %v2409_v20 = vor.u32 %v2408_v59, %v2405_v9  ;;  %v6940_v12 = vld [vmem:[%s9730_s1 + $0x1b0] sm:$0xff]   ;;  %v8009_v1 = vrot.slane %v2374_v37, 5  ;;  %v8033_v11 = vld [vmem:[%s9730_s1 + $0x1a8] sm:$0xff]  }
  0x9d   : > { %6496 = vmatmul.mubr.bf16.gmra.mxu1 %v9789_v51  ;;  %v2430_v29 = vshll.u32 %v5663_v19, 16  ;;  %v6939_v13 = vld [vmem:[%s9730_s1 + $0x170] sm:$0xff]   ;;  %v2319_v6 = vsel %vm7115_vm2, %v7939_v28, %v7872_v63  ;;  %v2329_v48 = vsel %vm7115_vm2, %v7944_v47, %v7929_v30  ;;  %v8023_v37 = vrot.slane %v2371_v55, 4 }
  0x9e   : > { %6563 = vmatprep.mubr.bf16.mxu1 %v6933_v52  ;;  %v2295_v52 = vsel %vm7115_vm2, %v7887_v58, %v7831_v60  ;;  %v2419_v60 = vor.u32 %v2418_v18, %v7979_v57  ;;  %v2427_v58 = vshrl.u32 %v5663_v19, 16  ;;  %v8025_v2 = vrot.slane %v2385_v14, 4  ;;  %v5666_v14 = vld [vmem:[%s7084_s25 + $0x90] sm:$0xf]  ;;  %v8056_v59 = vld [vmem:[%s7084_s25 + $0x94] sm:$0xf] }
  0x9f   : > { %v8035_v63 = vrot.slane %v2395_v24, 4  ;;  %v8037_v28 = vrot.slane %v2398_v49, 5  ;;  %v2436_v30 = vshll.u32 %v8002_v3, 16  ;;  %v2440_v47 = vshrl.u32 %v8002_v3, 16  ;;  %9790 = vst [vmem:[#allocation6_spill] sm:$0xff] %v8056_v59 }
  0xa0   : > { %v2353_v55 = vsel %vm7115_vm2, %v7971_v38, %v7947_v5  ;;  %v8050_v9 = vrot.slane %v2409_v20, 4  ;;  %v8052_v51 = vrot.slane %v2422_v40, 5  ;;  %v2432_v18 = vrot.slane %v2430_v29, 5  ;;  %v6943_v5 = vld [vmem:[%s9730_s1 + $0x168] sm:$0xff]  }
  0xa1   : > { %v2454_v38 = vshll.u32 %v5666_v14, 16  ;;  %v2460_v24 = vshll.u32 %v8056_v59, 16  ;;  %v2464_v49 = vshrl.u32 %v8056_v59, 16  ;;  %v5700_v40 = vcombine.low %v2271_v22, %v2281_v43 }
  0xa2   : > { %6612 = vmatmul.mubr.bf16.vlgmr.msra.gmra.mxu0 %v5698_v4  ;;  %v2343_v4 = vsel %vm7115_vm2, %v7961_v33, %v7906_v7  ;;  %v2446_v7 = vshll.u32 %v8028_v17, 16  ;;  %v2451_v33 = vshrl.u32 %v5666_v14, 16  ;;  %v5701_v20 = vcombine.low %v2295_v52, %v2305_v50 }
  0xa3   : > { %6692 = vmatpush3.bf16.msra.mxu0 %v7758_v15  ;;  %6615 = vmatprep.mubr.bf16.mxu0 %v5699_v54  ;;  %v8058_v15 = vrot.slane %v2419_v60, 4  ;;  %v2429_v54 = vrot.slane %v2427_v58, 4  ;;  %v8067_v19 = vrot.slane %v2436_v30, 5  ;;  %v6938_v60 = vld [vmem:[%s7084_s25 + $0x30] sm:$0xff]   ;;  %v6948_v58 = vld [vmem:[%s9730_s1 + $0x1a0] sm:$0xff]   ;;  %v2456_v14 = vrot.slane %v2454_v38, 5 }
  0xa4   : > { %6693 = vmatprep.subr.bf16.mxu0 %v6940_v12  ;;  %v2453_v29 = vrot.slane %v2451_v33, 4  ;;  %v2466_v22 = vrot.slane %v2464_v49, 4  ;;  %v8075_v43 = vcombine.low %v2319_v6, %v2329_v48  ;;  %v8078_v52 = vcombine.low %v2343_v4, %v2353_v55  ;;  %v5669_v30 = vld [vmem:[%s7084_s25 + $0x9c] sm:$0xf]  ;;  %v8100_v4 = vld [vmem:[%s7084_s25 + $0xa4] sm:$0x1] }
  0xa5   : > { %6564 = vmatmul.mubr.bf16.vlgmr.msra.gmra.mxu1 %v6934_v35  ;;  %v2442_v35 = vrot.slane %v2440_v47, 4  ;;  %v2433_v48 = vor.u32 %v2432_v18, %v2429_v54  ;;  %v8097_v47 = vld [vmem:[%s7084_s25 + $0xa0] sm:$0xf]  ;;  %9793 = vst [vmem:[#allocation9_spill] sm:$0xff] %v8100_v4  ;;  %v2475_v55 = vshrl.u32 %v5669_v30, 16  ;;  %v2478_v33 = vshll.u32 %v5669_v30, 16 }
  0xa6   : > { %6644 = vmatpush3.bf16.msra.mxu1 %v7753_v36  ;;  %6567 = vmatprep.mubr.bf16.mxu1 %v6937_v25  ;;  %v8073_v36 = vrot.slane %v2460_v24, 5  ;;  %v2377_v25 = vsel %vm7115_vm2, %v8023_v37, %v8009_v1  ;;  %9792 = vst [vmem:[#allocation8_spill] sm:$0xff] %v8097_v47  ;;  %v6941_v38 = vld [vmem:[%s7084_s25 + $0x3c] sm:$0xff]   ;;  %v2484_v37 = vshll.u32 %v8097_v47, 16  ;;  %v2488_v24 = vshrl.u32 %v8097_v47, 16 }
  0xa7   : > { %6645 = vmatprep.subr.bf16.mxu1 %v6939_v13  ;;  %6694 = vmatpush3.bf16.msra.mxu0 %v6940_v12  ;;  %v8089_v12 = vld [vmem:[%s7084_s25 + $0x98] sm:$0x1]  ;;  %v2443_v1 = vor.u32 %v2442_v35, %v8067_v19  ;;  %v6947_v54 = vld [vmem:[%s9730_s1 + $0x160] sm:$0xff]   ;;  %v2457_v18 = vor.u32 %v2456_v14, %v2453_v29  ;;  %v2477_v30 = vrot.slane %v2475_v55, 4  ;;  %v2480_v49 = vrot.slane %v2478_v33, 5 }
  0xa8   : > { %6695 = vmatprep.subr.bf16.mxu0 %v8033_v11  ;;  %9791 = vst [vmem:[#allocation7_spill] sm:$0xff] %v8089_v12  ;;  %v2470_v35 = vshll.u32 %v8089_v12, 16  ;;  %v2490_v6 = vrot.slane %v2488_v24, 4  ;;  %v2494_v50 = vshll.u32 %v8100_v4, 16  ;;  %v5672_v47 = vld [vmem:[%s7084_s25 + $0xa8] sm:$0xf] }
  0xa9   : > { %v6951_v29 = vld [vmem:[%s9730_s1 + $0x158] sm:$0xff]   ;;  %v8123_v14 = vrot.slane %v2433_v48, 4  ;;  %v2499_v55 = vshrl.u32 %v5672_v47, 16  ;;  %v2502_v33 = vshll.u32 %v5672_v47, 16  ;;  %v8136_v4 = vld [vmem:[%s7084_s25 + $0xb0] sm:$0x1] }
  0xaa   : > { %6616 = vmatmul.mubr.bf16.gmra.mxu0 %v5700_v40  ;;  %6646 = vmatpush3.bf16.msra.mxu1 %v6939_v13  ;;  %v6952_v13 = vld [vmem:[%s9730_s1 + $0x198] sm:$0xff]   ;;  %v2467_v40 = vor.u32 %v2466_v22, %v8073_v36  ;;  %v8125_v22 = vrot.slane %v2446_v7, 5  ;;  %v6942_v48 = vld [vmem:[%s7084_s25 + $0x48] sm:$0xff]   ;;  %v8139_v7 = vrot.slane %v2443_v1, 4  ;;  %v8141_v12 = vrot.slane %v2457_v18, 4 }
  0xab   : > { %6619 = vmatprep.mubr.bf16.mxu0 %v5701_v20  ;;  %6647 = vmatprep.subr.bf16.mxu1 %v6943_v5  ;;  %v8116_v20 = vrot.slane %v2484_v37, 5  ;;  %v2481_v37 = vor.u32 %v2480_v49, %v2477_v30  ;;  %v8143_v59 = vrot.slane %v2470_v35, 5  ;;  %v6955_v49 = vld [vmem:[%s9730_s1 + $0x150] sm:$0xff]   ;;  %v8160_v18 = vrot.slane %v2502_v33, 5 }
  0xac   : > { %6696 = vmatpush3.bf16.msra.mxu0 %v8033_v11  ;;  %v8128_v11 = vld [vmem:[%s7084_s25 + $0xac] sm:$0xf]  ;;  %v2518_v35 = vshll.u32 %v8136_v4, 16 }
  0xad   : > { %6568 = vmatmul.mubr.bf16.gmra.mxu1 %v6938_v60  ;;  %6697 = vmatprep.subr.bf16.mxu0 %v6948_v58  ;;  %9794 = vst [vmem:[#allocation10_spill] sm:$0xff] %v8128_v11  ;;  %v2401_v60 = vsel %vm7115_vm2, %v8035_v63, %v8037_v28  ;;  %v2491_v24 = vor.u32 %v2490_v6, %v8116_v20  ;;  %v2508_v47 = vshll.u32 %v8128_v11, 16  ;;  %v6945_v63 = vld [vmem:[%s7084_s25 + $0x54] sm:$0xff]   ;;  %v8150_v28 = vrot.slane %v2467_v40, 4 }
  0xae   : > { %6571 = vmatprep.mubr.bf16.mxu1 %v6941_v38  ;;  %6648 = vmatpush3.bf16.msra.mxu1 %v6943_v5  ;;  %v6956_v5 = vld [vmem:[%s9730_s1 + $0x190] sm:$0xff]   ;;  %v8152_v6 = vrot.slane %v2494_v50, 5  ;;  %v8154_v38 = vrot.slane %v2499_v55, 4  ;;  %v2512_v1 = vshrl.u32 %v8128_v11, 16  ;;  %v8169_v40 = vrot.slane %v2481_v37, 4 }
  0xaf   : > { %6649 = vmatprep.subr.bf16.mxu1 %v6947_v54  ;;  %v8171_v30 = vrot.slane %v2491_v24, 4  ;;  %v5675_v55 = vld [vmem:[%s7084_s25 + $0xb4] sm:$0xf]  ;;  %v8175_v11 = vld [vmem:[%s7084_s25 + $0xb8] sm:$0xf]  ;;  %v6959_v24 = vld [vmem:[%s9730_s1 + $0x148] sm:$0xff]  }
  0xb0   : > { %6698 = vmatpush3.bf16.msra.mxu0 %v6948_v58  ;;  %v9795_v58 = vsel %vm7115_vm2, %v7973_v46, %v7951_v21  ;;  %9796 = vst [vmem:[#allocation11_spill] sm:$0xff] %v8175_v11  ;;  %v2415_v21 = vsel %vm7115_vm2, %v8050_v9, %v7979_v57  ;;  %v8187_v46 = vrot.slane %v2508_v47, 5  ;;  %v5678_v37 = vld [vmem:[%s7084_s25 + $0xc0] sm:$0xf]  ;;  %v2425_v57 = vsel %vm7115_vm2, %v8058_v15, %v8052_v51  ;;  %v8214_v47 = vld [vmem:[%s7084_s25 + $0xc4] sm:$0xf] }
  0xb1   : > { %6699 = vmatprep.subr.bf16.mxu0 %v6952_v13  ;;  %v5704_v50 = vcombine.low %v9795_v58, %v2377_v25  ;;  %v2523_v25 = vshrl.u32 %v5675_v55, 16  ;;  %v2439_v9 = vsel %vm7115_vm2, %v8123_v14, %v8067_v19  ;;  %9799 = vst [vmem:[#allocation13_spill] sm:$0xff] %v8214_v47  ;;  %v8217_v51 = vld [vmem:[%s7084_s25 + $0xc8] sm:$0x1]  ;;  %v2556_v58 = vshll.u32 %v8214_v47, 16 }
  0xb2   : > { %6620 = vmatmul.mubr.bf16.gmra.mxu0 %v8075_v43  ;;  %6650 = vmatpush3.bf16.msra.mxu1 %v6947_v54  ;;  %v9797_v43 = vsel %vm7115_vm2, %v8025_v2, %v7963_v53  ;;  %v2514_v54 = vrot.slane %v2512_v1, 4  ;;  %v2526_v53 = vshll.u32 %v5675_v55, 16  ;;  %v2532_v2 = vshll.u32 %v8175_v11, 16 }
  0xb3   : > { %6623 = vmatprep.mubr.bf16.mxu0 %v8078_v52  ;;  %v5705_v33 = vcombine.low %v9797_v43, %v2401_v60  ;;  %6651 = vmatprep.subr.bf16.mxu1 %v6951_v29  ;;  %v6960_v52 = vld [vmem:[%s9730_s1 + $0x188] sm:$0xff]   ;;  %v2536_v60 = vshrl.u32 %v8175_v11, 16  ;;  %v2525_v15 = vrot.slane %v2523_v25, 4  ;;  %v9800_v55 = vrot.slane %v7622_v32, 5 }
  0xb4   : > { %6700 = vmatpush3.bf16.msra.mxu0 %v6952_v13  ;;  %v2449_v13 = vsel %vm7115_vm2, %v8139_v7, %v8125_v22  ;;  %v2528_v19 = vrot.slane %v2526_v53, 5  ;;  %v8219_v14 = vrot.slane %v2532_v2, 5  ;;  %v2547_v22 = vshrl.u32 %v5678_v37, 16  ;;  %v6946_v2 = vld [vmem:[%s7084_s25 + $0x60] sm:$0xff]  }
  0xb5   : > { %6572 = vmatmul.mubr.bf16.gmra.mxu1 %v6942_v48  ;;  %6701 = vmatprep.subr.bf16.mxu0 %v6956_v5  ;;  %v8211_v48 = vld [vmem:[%s7084_s25 + $0xbc] sm:$0x1]  ;;  %v2538_v1 = vrot.slane %v2536_v60, 4  ;;  %v2550_v7 = vshll.u32 %v5678_v37, 16  ;;  %v8224_v43 = vrot.slane %v9800_v55, 4  ;;  %v8229_v25 = vrot.slane %v2518_v35, 5 }
  0xb6   : > { %9798 = vst [vmem:[#allocation12_spill] sm:$0xff] %v8211_v48  ;;  %6575 = vmatprep.mubr.bf16.mxu1 %v6945_v63  ;;  %6652 = vmatpush3.bf16.msra.mxu1 %v6951_v29  ;;  %v2505_v63 = vor.u32 %v8160_v18, %v8154_v38  ;;  %v2515_v29 = vor.u32 %v2514_v54, %v8187_v46  ;;  %v2560_v53 = vshrl.u32 %v8214_v47, 16  ;;  %v2542_v60 = vshll.u32 %v8211_v48, 16  ;;  %v6949_v38 = vld [vmem:[%s7084_s25 + $0x6c] sm:$0xff]   ;;  %v8249_v48 = vld [vmem:[%s7084_s25 + $0x18] sm:$0xe] }
  0xb7   : > { %6653 = vmatprep.subr.bf16.mxu1 %v6955_v49  ;;  %v2549_v37 = vrot.slane %v2547_v22, 4  ;;  %v2552_v11 = vrot.slane %v2550_v7, 5  ;;  %v8234_v55 = vrot.slane %v2556_v58, 5  ;;  %v2529_v18 = vor.u32 %v2528_v19, %v2525_v15  ;;  %v6963_v22 = vld [vmem:[%s9730_s1 + $0x140] sm:$0xff]   ;;  %v8246_v58 = vld [vmem:[%s7084_s25 + $0xc] sm:$0xe] }
  0xb8   : > { %6702 = vmatpush3.bf16.msra.mxu0 %v6956_v5  ;;  %v6964_v5 = vld [vmem:[%s9730_s1 + $0x180] sm:$0xff]   ;;  %v2539_v35 = vor.u32 %v2538_v1, %v8219_v14  ;;  %v2562_v54 = vrot.slane %v2560_v53, 4  ;;  %v2566_v47 = vshll.u32 %v8217_v51, 16  ;;  %v5706_v15 = vcombine.low %v2415_v21, %v2425_v57 }
  0xb9   : > { %6703 = vmatprep.subr.bf16.mxu0 %v6960_v52  ;;  %v2553_v7 = vor.u32 %v2552_v11, %v2549_v37  ;;  %v5707_v19 = vcombine.low %v2439_v9, %v2449_v13  ;;  %v8257_v1 = vrot.slane %v2505_v63, 4  ;;  %v8259_v11 = vrot.slane %v2515_v29, 4  ;;  %v6950_v9 = vld [vmem:[%s7084_s25 + $0x78] sm:$0xff]   ;;  %v6953_v37 = vld [vmem:[%s7084_s25 + $0x84] sm:$0xff]  }
  0xba   : > { %6624 = vmatmul.mubr.bf16.gmra.mxu0 %v5704_v50  ;;  %6654 = vmatpush3.bf16.msra.mxu1 %v6955_v49  ;;  %v8254_v49 = vld [vmem:[%s9730_s1 + $0x238] sm:$0xff]   ;;  %v2563_v50 = vor.u32 %v2562_v54, %v8234_v55  ;;  %v8268_v53 = vrot.slane %v2539_v35, 4  ;;  %v8270_v21 = vrot.slane %v2542_v60, 5  ;;  %v8276_v63 = vrot.slane %v2566_v47, 5  ;;  %v5724_v60 = vld [vmem:[%s7084_s25 + $0x30] sm:$0xe] }
  0xbb   : > { %6627 = vmatprep.mubr.bf16.mxu0 %v5705_v33  ;;  %6655 = vmatprep.subr.bf16.mxu1 %v6959_v24  ;;  %v8264_v33 = vld [vmem:[%s9730_s1 + $0x1f8] sm:$0xff]   ;;  %v8274_v13 = vrot.slane %v2553_v7, 4  ;;  %v2961_v29 = vrot.slane %v7696_v42, 5  ;;  %v9801_v35 = vld [vmem:[#allocation2_spill] sm:$0xff]  ;;  %v5740_v47 = vrot.slane %v5724_v60, 9  ;;  %v9804_v60 = vld [vmem:[#allocation3_spill] sm:$0xff] }
  0xbc   : > { %6704 = vmatpush3.bf16.msra.mxu0 %v6960_v52  ;;  %v8266_v52 = vrot.slane %v2529_v18, 4  ;;  %v9802_v7 = vld [vmem:[#allocation5_spill] sm:$0xff]  ;;  %v2982_v18 = vrot.slane %v7779_v0, 5  ;;  %v2497_v0 = vsel %vm7115_vm2, %v8171_v30, %v8152_v6  ;;  %v2996_v30 = vrot.slane %v7870_v41, 5 }
  0xbd   : > { %6576 = vmatmul.mubr.bf16.gmra.mxu1 %v6946_v2  ;;  %6705 = vmatprep.subr.bf16.mxu0 %v6964_v5  ;;  %v2979_v57 = vrot.slane %v9802_v7, 5  ;;  %v9803_v2 = vld [vmem:[#allocation4_spill] sm:$0xff] }
  0xbe   : > { %6579 = vmatprep.mubr.bf16.mxu1 %v6949_v38  ;;  %6656 = vmatpush3.bf16.msra.mxu1 %v6959_v24  ;;  %v8281_v24 = vrot.slane %v2563_v50, 4  ;;  %v2965_v38 = vrot.slane %v7713_v61, 5  ;;  %v2463_v50 = vsel %vm7115_vm2, %v8141_v12, %v8073_v36  ;;  %v2986_v54 = vrot.slane %v9803_v2, 5  ;;  %v5725_v12 = vld [vmem:[%s7084_s25 + $0x3c] sm:$0xe] }
  0xbf   : > { %6657 = vmatprep.subr.bf16.mxu1 %v6963_v22  ;;  %v8303_v7 = vsel %vm7426_vm5, %v5740_v47, %v2979_v57  ;;  %v2981_v36 = vrot.slane %v2979_v57, 4  ;;  %v5741_v2 = vrot.slane %v5725_v12, 9  ;;  %v6954_v47 = vld [vmem:[%s7084_s25 + $0x90] sm:$0xff]   ;;  %v3003_v12 = vrot.slane %v7890_v34, 5 }
  0xc0   : > { %6706 = vmatpush3.bf16.msra.mxu0 %v6964_v5  ;;  %v2473_v5 = vsel %vm7115_vm2, %v8150_v28, %v8143_v59  ;;  %v2487_v59 = vsel %vm7115_vm2, %v8169_v40, %v8116_v20  ;;  %v2988_v28 = vrot.slane %v2986_v54, 4  ;;  %v2993_v20 = vrot.slane %v7829_v39, 5 }
  0xc1   : > { %6787 = vmatprep.subr.bf16.mxu0 %v8254_v49  ;;  %v8317_v57 = vsel %vm7426_vm5, %v2981_v36, %v2982_v18  ;;  %v5709_v18 = vcombine.low %v2487_v59, %v2497_v0  ;;  %v8332_v39 = vsel %vm7426_vm5, %v5741_v2, %v2986_v54  ;;  %v2511_v36 = vsel %vm7115_vm2, %v8257_v1, %v8187_v46  ;;  %v5727_v54 = vld [vmem:[%s7084_s25 + $0x54] sm:$0xe] }
  0xc2   : > { %6628 = vmatmul.mubr.bf16.gmra.mxu0 %v5706_v15  ;;  %6658 = vmatpush3.bf16.msra.mxu1 %v6963_v22  ;;  %v2975_v15 = vrot.slane %v9804_v60, 5  ;;  %v2989_v22 = vrot.slane %v7808_v45, 5  ;;  %v5772_v40 = vcombine.low %v8303_v7, %v8317_v57  ;;  %v5726_v45 = vld [vmem:[%s7084_s25 + $0x48] sm:$0xe]  ;;  %v2521_v46 = vsel %vm7115_vm2, %v8259_v11, %v8229_v25  ;;  %v6974_v7 = vld [vmem:[%s7084_s25 + $0x54] sm:$0xff]  }
  0xc3   : > { %6631 = vmatprep.mubr.bf16.mxu0 %v5707_v19  ;;  %6739 = vmatprep.subr.bf16.mxu1 %v8264_v33  ;;  %v5708_v19 = vcombine.low %v2463_v50, %v2473_v5  ;;  %v2995_v50 = vrot.slane %v2993_v20, 4  ;;  %v6957_v5 = vld [vmem:[%s7084_s25 + $0x9c] sm:$0xff]   ;;  %v3007_v2 = vrot.slane %v7894_v31, 5  ;;  %v2535_v34 = vsel %vm7115_vm2, %v8266_v52, %v8219_v14 }
  0xc4   : > { %v8324_v6 = vsel %vm7426_vm5, %v2988_v28, %v2989_v22  ;;  %v5743_v28 = vrot.slane %v5727_v54, 9  ;;  %v5728_v22 = vld [vmem:[%s7084_s25 + $0x60] sm:$0xe]  ;;  %v3010_v25 = vrot.slane %v7942_v16, 5  ;;  %v2545_v11 = vsel %vm7115_vm2, %v8268_v53, %v8270_v21 }
  0xc5   : > { %6580 = vmatmul.mubr.bf16.gmra.mxu1 %v6950_v9  ;;  %v3000_v9 = vrot.slane %v7864_v10, 5  ;;  %v5773_v41 = vcombine.low %v8332_v39, %v8324_v6  ;;  %v8347_v59 = vsel %vm7426_vm5, %v2995_v50, %v2996_v30  ;;  %v3014_v14 = vrot.slane %v7934_v8, 5  ;;  %v5954_v6 = vld [vmem:[%s7084_s25 + $0x24] sm:$0xe] }
  0xc6   : > { %6583 = vmatprep.mubr.bf16.mxu1 %v6953_v37  ;;  %v5742_v37 = vrot.slane %v5726_v45, 9  ;;  %v3009_v45 = vrot.slane %v3007_v2, 4  ;;  %v5710_v52 = vcombine.low %v2511_v36, %v2521_v46  ;;  %v3017_v8 = vrot.slane %v7955_v62, 5  ;;  %v5730_v36 = vld [vmem:[%s7084_s25 + $0x78] sm:$0xe] }
  0xc7   : > { %v3002_v0 = vrot.slane %v3000_v9, 4  ;;  %v8374_v31 = vsel %vm7426_vm5, %v5743_v28, %v3000_v9  ;;  %v3016_v9 = vrot.slane %v3014_v14, 4  ;;  %v3021_v54 = vrot.slane %v7959_v44, 5 }
  0xc8   : > { %v8343_v10 = vsel %vm7426_vm5, %v5742_v37, %v2993_v20  ;;  %v5744_v20 = vrot.slane %v5728_v22, 9  ;;  %v8386_v53 = vsel %vm7426_vm5, %v3009_v45, %v3010_v25  ;;  %v5711_v37 = vcombine.low %v2535_v34, %v2545_v11 }
  0xc9   : > { %v8402_v46 = vsel %vm7426_vm5, %v3016_v9, %v3017_v8  ;;  %v5746_v62 = vrot.slane %v5730_v36, 9  ;;  %v3028_v28 = vrot.slane %v8002_v3, 5  ;;  %v3023_v44 = vrot.slane %v3021_v54, 4  ;;  %v6965_v8 = vld [vmem:[%s7084_s25 + $0x18] sm:$0xff]   ;;  %v9809_v36 = vld [vmem:[#allocation8_spill] sm:$0xff] }
  0xca   : > { %6632 = vmatmul.mubr.bf16.gmra.mxu0 %v5708_v19  ;;  %v8365_v19 = vsel %vm7426_vm5, %v3002_v0, %v3003_v12  ;;  %v8381_v16 = vsel %vm7426_vm5, %v5744_v20, %v3007_v2  ;;  %v3024_v0 = vrot.slane %v7966_v26, 5  ;;  %v3031_v26 = vrot.slane %v8028_v17, 5  ;;  %v5731_v20 = vld [vmem:[%s7084_s25 + $0x84] sm:$0xe] }
  0xcb   : > { %6635 = vmatprep.mubr.bf16.mxu0 %v5709_v18  ;;  %v5729_v18 = vld [vmem:[%s7084_s25 + $0x6c] sm:$0xe]  ;;  %v2559_v2 = vsel %vm7115_vm2, %v8274_v13, %v8234_v55  ;;  %v8414_v34 = vsel %vm7426_vm5, %v5746_v62, %v3021_v54  ;;  %v2569_v3 = vsel %vm7115_vm2, %v8281_v24, %v8276_v63  ;;  %v5747_v25 = vrot.slane %v5731_v20, 9  ;;  %v9807_v63 = vld [vmem:[#allocation6_spill] sm:$0xff] }
  0xcc   : > { %v5745_v21 = vrot.slane %v5729_v18, 9  ;;  %v8423_v17 = vsel %vm7426_vm5, %v3023_v44, %v3024_v0  ;;  %v3030_v11 = vrot.slane %v3028_v28, 4  ;;  %v9805_v45 = vrot.slane %v7622_v32, 5  ;;  %v5732_v18 = vld [vmem:[%s7084_s25 + $0x90] sm:$0xe]  ;;  %v6977_v62 = vld [vmem:[%s7084_s25 + $0x60] sm:$0xff]  }
  0xcd   : > { %6584 = vmatmul.mubr.bf16.gmra.mxu1 %v6954_v47  ;;  %v6958_v47 = vld [vmem:[%s7084_s25 + $0xa8] sm:$0xff]   ;;  %v9806_v55 = vrot.slane %v8246_v58, 9  ;;  %v3035_v24 = vrot.slane %v9807_v63, 5  ;;  %v8440_v32 = vsel %vm7426_vm5, %v5747_v25, %v3028_v28  ;;  %v3042_v54 = vrot.slane %v9809_v36, 5 }
  0xce   : > { %6587 = vmatprep.mubr.bf16.mxu1 %v6957_v5  ;;  %v6961_v5 = vld [vmem:[%s7084_s25 + $0xb4] sm:$0xff]   ;;  %v8398_v12 = vsel %vm7426_vm5, %v5745_v21, %v3014_v14  ;;  %v5723_v14 = vld [vmem:[%s7084_s25 + $0x24] sm:$0xe]  ;;  %v9808_v21 = vld [vmem:[#allocation7_spill] sm:$0xff]  ;;  %v8444_v58 = vsel %vm7426_vm5, %v3030_v11, %v3031_v26  ;;  %v5712_v0 = vcombine.low %v2559_v2, %v2569_v3  ;;  %v2962_v28 = vsel %vm7426_vm5, %v8224_v43, %v2961_v29 }
  0xcf   : > { %v2959_v13 = vsel %vm7426_vm5, %v9806_v55, %v9805_v45  ;;  %v3038_v9 = vrot.slane %v9808_v21, 5  ;;  %v3037_v44 = vrot.slane %v3035_v24, 4  ;;  %v6962_v45 = vld [vmem:[%s7084_s25 + $0xc0] sm:$0xff]   ;;  %v2967_v26 = vrot.slane %v2965_v38, 4  ;;  %v5733_v2 = vld [vmem:[%s7084_s25 + $0x9c] sm:$0xe] }
  0xd0   : > { %v3044_v3 = vrot.slane %v3042_v54, 4  ;;  %v5749_v11 = vrot.slane %v5733_v2, 9  ;;  %v9811_v55 = vld [vmem:[#allocation10_spill] sm:$0xff]  ;;  %v5734_v63 = vld [vmem:[%s7084_s25 + $0xa8] sm:$0xe]  ;;  %v5769_v21 = vcombine.low %v2959_v13, %v2962_v28  ;;  %v9815_v28 = vrot.slane %v8249_v48, 9 }
  0xd1   : > { %v8465_v25 = vsel %vm7426_vm5, %v3037_v44, %v3038_v9  ;;  %v3049_v42 = vrot.slane %v9811_v55, 5  ;;  %v8588_v43 = vld [vmem:[%s7084_s25 + $0x34] sm:$0xf] }
  0xd2   : > { %6636 = vmatmul.mubr.bf16.gmra.mxu0 %v5710_v52  ;;  %v8478_v9 = vsel %vm7426_vm5, %v5749_v11, %v3042_v54  ;;  %v5735_v54 = vld [vmem:[%s7084_s25 + $0xb4] sm:$0xe]  ;;  %v3886_v39 = vshll.u32 %v8588_v43, 16 }
  0xd3   : > { %6639 = vmatprep.mubr.bf16.mxu0 %v5711_v37  ;;  %v5748_v37 = vrot.slane %v5732_v18, 9  ;;  %v5739_v18 = vrot.slane %v5723_v14, 9  ;;  %v3051_v36 = vrot.slane %v3049_v42, 4  ;;  %v9812_v14 = vrot.slane %v9801_v35, 5 }
  0xd4   : > { %v5751_v55 = vrot.slane %v5735_v54, 9 }
  0xd5   : > { %6588 = vmatmul.mubr.bf16.gmra.mxu1 %v6958_v47  ;;  %v9810_v47 = vld [vmem:[#allocation9_spill] sm:$0xff]  ;;  %v2974_v44 = vrot.slane %v9812_v14, 4  ;;  %v9817_v61 = vmov %v9812_v14  ;;  %v3066_v14 = vrot.slane %v8217_v51, 5  ;;  %v5871_v51 = vld [vmem:[%s7084_s25 + $0x30] sm:$0xf] }
  0xd6   : > { %6591 = vmatprep.mubr.bf16.mxu1 %v6961_v5  ;;  %v3045_v20 = vrot.slane %v9810_v47, 5  ;;  %v8460_v5 = vsel %vm7426_vm5, %v5748_v37, %v3035_v24  ;;  %v3052_v24 = vrot.slane %v8136_v4, 5  ;;  %v5750_v37 = vrot.slane %v5734_v63, 9 }
  0xd7   : > { %v9816_v63 = vrot.slane %v7727_v23, 5  ;;  %v2973_v48 = vsel %vm7426_vm5, %v5739_v18, %v9817_v61  ;;  %v2976_v23 = vsel %vm7426_vm5, %v2974_v44, %v2975_v15  ;;  %v8558_v61 = vld [vmem:[%s7084_s25 + $0x28] sm:$0xf] }
  0xd8   : > { %v8472_v29 = vsel %vm7426_vm5, %v3044_v3, %v3045_v20  ;;  %v9813_v20 = vld [vmem:[#allocation11_spill] sm:$0xff]  ;;  %v8487_v4 = vsel %vm7426_vm5, %v5750_v37, %v3049_v42  ;;  %v8491_v13 = vsel %vm7426_vm5, %v3051_v36, %v3052_v24  ;;  %v2966_v3 = vsel %vm7426_vm5, %v9815_v28, %v2965_v38  ;;  %v5736_v37 = vld [vmem:[%s7084_s25 + $0xc0] sm:$0xe]  ;;  %v9818_v38 = vld [vmem:[#allocation13_spill] sm:$0xff] }
  0xd9   : > { %v3056_v2 = vrot.slane %v9813_v20, 5  ;;  %v2969_v24 = vsel %vm7426_vm5, %v2967_v26, %v9816_v63  ;;  %v3063_v36 = vrot.slane %v9818_v38, 5  ;;  %v5752_v18 = vrot.slane %v5736_v37, 9  ;;  %v6972_v20 = vld [vmem:[%s9730_s1 + $0x230] sm:$0xff]   ;;  %v5868_v63 = vld [vmem:[%s7084_s25 + $0x24] sm:$0xf] }
  0xda   : > { %6640 = vmatmul.mubr.bf16.gmra.mxu0 %v5712_v0  ;;  %v5770_v15 = vcombine.low %v2966_v3, %v2969_v24  ;;  %v5771_v54 = vcombine.low %v2973_v48, %v2976_v23  ;;  %v6971_v28 = vld [vmem:[%s9730_s1 + $0x1f0] sm:$0xff]   ;;  %v6970_v48 = vld [vmem:[%s7084_s25 + $0x3c] sm:$0xff]   ;;  %v3853_v37 = vshrl.u32 %v5868_v63, 16  ;;  %v6973_v38 = vld [vmem:[%s7084_s25 + $0x48] sm:$0xff]   ;;  %v3862_v23 = vshll.u32 %v8558_v61, 16 }
  0xdb   : > { %6707 = vmatprep.mubr.bf16.mxu0 %v6965_v8  ;;  %v9814_v8 = vld [vmem:[#allocation12_spill] sm:$0xff]  ;;  %v3058_v42 = vrot.slane %v3056_v2, 4  ;;  %v8522_v26 = vsel %vm7426_vm5, %v5751_v55, %v3056_v2  ;;  %v3065_v60 = vrot.slane %v3063_v36, 4  ;;  %v8535_v44 = vsel %vm7426_vm5, %v5752_v18, %v3063_v36  ;;  %v5865_v2 = vld [vmem:[%s7084_s25 + $0x18] sm:$0xf]  ;;  %v6976_v55 = vld [vmem:[%s9730_s1 + $0x228] sm:$0xff]  }
  0xdc   : > { %v3059_v0 = vrot.slane %v9814_v8, 5  ;;  %v3832_v24 = vshll.u32 %v5865_v2, 16  ;;  %v6975_v36 = vld [vmem:[%s9730_s1 + $0x1e8] sm:$0xff]   ;;  %v5867_v18 = vld [vmem:[%s7084_s25 + $0x20] sm:$0x1]  ;;  %v3855_v11 = vrot.slane %v3853_v37, 4 }
  0xdd   : > { %6592 = vmatmul.mubr.bf16.gmra.mxu1 %v6962_v45  ;;  %v6966_v45 = vld [vmem:[%s7084_s25 + $0x24] sm:$0xff]   ;;  %v8540_v8 = vsel %vm7426_vm5, %v3065_v60, %v3066_v14  ;;  %v3856_v14 = vshll.u32 %v5868_v63, 16  ;;  %v8578_v63 = vld [vmem:[%s7084_s25 + $0x2c] sm:$0x1]  ;;  %v3877_v37 = vshrl.u32 %v5871_v51, 16 }
  0xde   : > { %6659 = vmatprep.mubr.bf16.mxu1 %v5769_v21  ;;  %v6969_v21 = vld [vmem:[%s7084_s25 + $0x30] sm:$0xff]   ;;  %v8526_v35 = vsel %vm7426_vm5, %v3058_v42, %v3059_v0  ;;  %v8543_v0 = vld [vmem:[%s7084_s25 + $0x1c] sm:$0xf]  ;;  %v3829_v42 = vshrl.u32 %v5865_v2, 16 }
  0xdf   : > { %v4600_v3 = vrot.slane %v8543_v0, 5  ;;  %v3858_v47 = vrot.slane %v3856_v14, 5 }
  0xe0   : > { %v3831_v60 = vrot.slane %v3829_v42, 4  ;;  %v6979_v42 = vld [vmem:[%s9730_s1 + $0x1e0] sm:$0xff]  }
  0xe2   : > { %6708 = vmatmul.mubr.bf16.vlgmr.msra.gmra.mxu0 %v6966_v45  ;;  %v3842_v45 = vshrl.u32 %v8543_v0, 16 }
  0xe3   : > { %6788 = vmatpush3.bf16.msra.mxu0 %v8254_v49  ;;  %6711 = vmatprep.mubr.bf16.mxu0 %v6969_v21  ;;  %v3838_v49 = vshll.u32 %v8543_v0, 16  ;;  %v3866_v21 = vshrl.u32 %v8558_v61, 16 }
  0xe4   : > { %6789 = vmatprep.subr.bf16.mxu0 %v6972_v20 }
  0xe5   : > { %6660 = vmatmul.mubr.bf16.vlgmr.msra.gmra.mxu1 %v5770_v15  ;;  %v5953_v15 = vld [vmem:[%s7084_s25 + $0x18] sm:$0xe]  ;;  %v8573_v2 = vrot.slane %v3838_v49, 5  ;;  %v3848_v49 = vshll.u32 %v5867_v18, 16  ;;  %v3868_v0 = vrot.slane %v3866_v21, 4 }
  0xe6   : > { %6740 = vmatpush3.bf16.msra.mxu1 %v8264_v33  ;;  %6663 = vmatprep.mubr.bf16.mxu1 %v5771_v54  ;;  %v6980_v33 = vld [vmem:[%s9730_s1 + $0x220] sm:$0xff]   ;;  %v3844_v54 = vrot.slane %v3842_v45, 4  ;;  %v8585_v45 = vrot.slane %v3862_v23, 5  ;;  %v6984_v23 = vld [vmem:[%s9730_s1 + $0x218] sm:$0xff]  }
  0xe7   : > { %6741 = vmatprep.subr.bf16.mxu1 %v6971_v28  ;;  %6790 = vmatpush3.bf16.msra.mxu0 %v6972_v20  ;;  %v3834_v20 = vrot.slane %v3832_v24, 5 }
  0xe8   : > { %6791 = vmatprep.subr.bf16.mxu0 %v6976_v55  ;;  %v3845_v21 = vor.u32 %v3844_v54, %v8573_v2  ;;  %v3869_v54 = vor.u32 %v3868_v0, %v8585_v45 }
  0xea   : > { %6712 = vmatmul.mubr.bf16.gmra.mxu0 %v6970_v48  ;;  %6742 = vmatpush3.bf16.msra.mxu1 %v6971_v28  ;;  %v5969_v48 = vrot.slane %v5953_v15, 9  ;;  %v4603_v28 = vrot.slane %v5867_v18, 5  ;;  %v4602_v18 = vrot.slane %v4600_v3, 4  ;;  %v3872_v15 = vshll.u32 %v8578_v63, 16 }
  0xeb   : > { %6715 = vmatprep.mubr.bf16.mxu0 %v6973_v38  ;;  %6743 = vmatprep.subr.bf16.mxu1 %v6975_v36  ;;  %v3880_v38 = vshll.u32 %v5871_v51, 16  ;;  %v4607_v51 = vrot.slane %v8558_v61, 5  ;;  %v3890_v61 = vshrl.u32 %v8588_v43, 16 }
  0xec   : > { %6792 = vmatpush3.bf16.msra.mxu0 %v6976_v55  ;;  %v3835_v55 = vor.u32 %v3834_v20, %v3831_v60  ;;  %v6983_v60 = vld [vmem:[%s9730_s1 + $0x1d8] sm:$0xff]   ;;  %v8611_v20 = vrot.slane %v3848_v49, 5  ;;  %v6988_v49 = vld [vmem:[%s9730_s1 + $0x210] sm:$0xff]  }
  0xed   : > { %v8583_v24 = vpop.f32.mrf.mxu0  ;;  %6664 = vmatmul.mubr.bf16.gmra.mxu1 %v5772_v40  ;;  %6793 = vmatprep.subr.bf16.mxu0 %v6980_v33  ;;  %v8593_v14 = vpop.f32.mrf.mxu1  ;;  %v3859_v40 = vor.u32 %v3858_v47, %v3855_v11  ;;  %v3879_v47 = vrot.slane %v3877_v37, 4  ;;  %v3882_v11 = vrot.slane %v3880_v38, 5  ;;  %v8638_v37 = vld [vmem:[%s7084_s25 + $0x40] sm:$0xf]  ;;  %v4609_v50 = vrot.slane %v4607_v51, 4 }
  0xee   : > { %9819 = vst [vmem:[#allocation2_spill] sm:$0xff] %v8593_v14  ;;  %6667 = vmatprep.mubr.bf16.mxu1 %v5773_v41  ;;  %6744 = vmatpush3.bf16.msra.mxu1 %v6975_v36  ;;  %v8618_v41 = vsel %vm7426_vm5, %v5969_v48, %v4600_v3  ;;  %v5874_v36 = vld [vmem:[%s7084_s25 + $0x3c] sm:$0xf]  ;;  %v8627_v0 = vrot.slane %v3835_v55, 4  ;;  %v8633_v3 = vsel %vm7426_vm5, %v4602_v18, %v4603_v28  ;;  %v8635_v48 = vrot.slane %v3872_v15, 5  ;;  %v6987_v55 = vld [vmem:[%s9730_s1 + $0x1d0] sm:$0xff]  }
  0xef   : > { %v8604_v57 = vpop.f32.mrf.mxu0  ;;  %6745 = vmatprep.subr.bf16.mxu1 %v6979_v42  ;;  %v8622_v52 = vpop.f32.mrf.mxu1  ;;  %v8645_v22 = vrot.slane %v3859_v40, 4  ;;  %v4610_v28 = vrot.slane %v8578_v63, 5  ;;  %v3870_v18 = vrot.slane %v3869_v54, 4  ;;  %v8649_v15 = vld [vmem:[%s7084_s25 + $0x38] sm:$0x1]  ;;  %v3904_v30 = vshll.u32 %v5874_v36, 16 }
  0xf0   : > { %6794 = vmatpush3.bf16.msra.mxu0 %v6980_v33  ;;  %9820 = vst [vmem:[#allocation5_spill] sm:$0xff] %v8622_v52  ;;  %v8629_v33 = vrot.slane %v3845_v21, 4  ;;  %v5970_v21 = vrot.slane %v5954_v6, 9  ;;  %v3883_v1 = vor.u32 %v3882_v11, %v3879_v47  ;;  %v8653_v52 = vrot.slane %v3890_v61, 4  ;;  %v5955_v40 = vld [vmem:[%s7084_s25 + $0x30] sm:$0xe] }
  0xf1   : > { %6795 = vmatprep.subr.bf16.mxu0 %v6984_v23  ;;  %v8640_v38 = vpop.f32.mrf.mxu0  ;;  %v3910_v6 = vshll.u32 %v8638_v37, 16  ;;  %v3914_v63 = vshrl.u32 %v8638_v37, 16  ;;  %v8661_v54 = vpop.f32.mrf.mxu1  ;;  %v9823_v11 = vcombine.low %v8374_v31, %v8365_v19  ;;  %v6978_v61 = vld [vmem:[%s7084_s25 + $0x6c] sm:$0xff]   ;;  %v8694_v19 = vsel %vm7426_vm5, %v4609_v50, %v4610_v28  ;;  %v8712_v28 = vld [vmem:[%s7084_s25 + $0x44] sm:$0x1] }
  0xf2   : > { %6716 = vmatmul.mubr.bf16.gmra.mxu0 %v6974_v7  ;;  %6746 = vmatpush3.bf16.msra.mxu1 %v6979_v42  ;;  %v8651_v7 = vrot.slane %v3886_v39, 5  ;;  %v3901_v42 = vshrl.u32 %v5874_v36, 16  ;;  %9822 = vst [vmem:[#allocation4_spill] sm:$0xff] %v8661_v54  ;;  %v3841_v39 = vsel %vm7115_vm2, %v8627_v0, %v8573_v2  ;;  %v3851_v47 = vsel %vm7115_vm2, %v8629_v33, %v8611_v20  ;;  %v6981_v36 = vld [vmem:[%s7084_s25 + $0x78] sm:$0xff]   ;;  %v8705_v33 = vld [vmem:[%s7084_s25 + $0x4c] sm:$0xf] }
  0xf3   : > { %6719 = vmatprep.mubr.bf16.mxu0 %v6977_v62  ;;  %6747 = vmatprep.subr.bf16.mxu1 %v6983_v60  ;;  %v9821_v62 = vcombine.low %v8343_v10, %v8347_v59  ;;  %v4614_v59 = vrot.slane %v8588_v43, 5  ;;  %v3865_v2 = vsel %vm7115_vm2, %v8645_v22, %v8585_v45  ;;  %v8690_v20 = vsel %vm7426_vm5, %v5970_v21, %v4607_v51  ;;  %v5877_v43 = vld [vmem:[%s7084_s25 + $0x48] sm:$0xf]  ;;  %v8716_v54 = vpop.f32.mrf.mxu1  ;;  %v5956_v14 = vld [vmem:[%s7084_s25 + $0x3c] sm:$0xe] }
  0xf4   : > { %6796 = vmatpush3.bf16.msra.mxu0 %v6984_v23  ;;  %v6992_v23 = vld [vmem:[%s9730_s1 + $0x208] sm:$0xff]   ;;  %v3896_v31 = vshll.u32 %v8649_v15, 16  ;;  %v3875_v22 = vsel %vm7115_vm2, %v3870_v18, %v8635_v48  ;;  %v5971_v45 = vrot.slane %v5955_v40, 9  ;;  %v3903_v0 = vrot.slane %v3901_v42, 4  ;;  %9825 = vst [vmem:[#allocation6_spill] sm:$0xff] %v8716_v54  ;;  %v6995_v42 = vld [vmem:[%s9730_s1 + $0x1c0] sm:$0xff]  }
  0xf5   : > { %6668 = vmatmul.mubr.bf16.gmra.mxu1 %v9821_v62  ;;  %6797 = vmatprep.subr.bf16.mxu0 %v6988_v49  ;;  %v8682_v62 = vpop.f32.mrf.mxu0  ;;  %v3906_v51 = vrot.slane %v3904_v30, 5  ;;  %v8707_v50 = vrot.slane %v3883_v1, 4  ;;  %v3893_v21 = vor.u32 %v8653_v52, %v8651_v7  ;;  %v3916_v10 = vrot.slane %v3914_v63, 4  ;;  %v6996_v30 = vld [vmem:[%s9730_s1 + $0x200] sm:$0xff]  }
  0xf6   : > { %6671 = vmatprep.mubr.bf16.mxu1 %v9823_v11  ;;  %6748 = vmatpush3.bf16.msra.mxu1 %v6983_v60  ;;  %9824 = vst [vmem:[#allocation3_spill] sm:$0xff] %v8682_v62  ;;  %v6991_v60 = vld [vmem:[%s9730_s1 + $0x1c8] sm:$0xff]   ;;  %v8714_v11 = vrot.slane %v3910_v6, 5  ;;  %v4616_v48 = vrot.slane %v4614_v59, 4  ;;  %v3925_v1 = vshrl.u32 %v5877_v43, 16  ;;  %v3928_v18 = vshll.u32 %v5877_v43, 16 }
  0xf7   : > { %6749 = vmatprep.subr.bf16.mxu1 %v6987_v55  ;;  %v8727_v40 = vcombine.low %v3841_v39, %v3851_v47  ;;  %v3938_v63 = vshrl.u32 %v8705_v33, 16  ;;  %v8735_v43 = vrot.slane %v3896_v31, 5  ;;  %v3920_v54 = vshll.u32 %v8712_v28, 16  ;;  %v5880_v39 = vld [vmem:[%s7084_s25 + $0x54] sm:$0xf]  ;;  %v6982_v6 = vld [vmem:[%s7084_s25 + $0x84] sm:$0xff]  }
  0xf8   : > { %6798 = vmatpush3.bf16.msra.mxu0 %v6988_v49  ;;  %v4617_v49 = vrot.slane %v8649_v15, 5  ;;  %v8722_v52 = vpop.f32.mrf.mxu0  ;;  %v3934_v15 = vshll.u32 %v8705_v33, 16  ;;  %v4621_v31 = vrot.slane %v8638_v37, 5  ;;  %v9829_v37 = vcombine.low %v8398_v12, %v8402_v46  ;;  %v6985_v47 = vld [vmem:[%s7084_s25 + $0x90] sm:$0xff]  }
  0xf9   : > { %6799 = vmatprep.subr.bf16.mxu0 %v6992_v23  ;;  %9826 = vst [vmem:[#allocation7_spill] sm:$0xff] %v8722_v52 }
  0xfa   : > { %6720 = vmatmul.mubr.bf16.gmra.mxu0 %v6978_v61  ;;  %6750 = vmatpush3.bf16.msra.mxu1 %v6987_v55  ;;  %v8733_v61 = vcombine.low %v3865_v2, %v3875_v22  ;;  %v3907_v55 = vor.u32 %v3906_v51, %v3903_v0  ;;  %v3917_v2 = vor.u32 %v3916_v10, %v8714_v11  ;;  %v8751_v22 = vld [vmem:[%s7084_s25 + $0x58] sm:$0xf]  ;;  %v8758_v51 = vrot.slane %v3893_v21, 4 }
  0xfb   : > { %6723 = vmatprep.mubr.bf16.mxu0 %v6981_v36  ;;  %6751 = vmatprep.subr.bf16.mxu1 %v6991_v60  ;;  %v8746_v36 = vsel %vm7426_vm5, %v5971_v45, %v4614_v59  ;;  %v9827_v0 = vcombine.low %v8381_v16, %v8386_v53  ;;  %v8762_v59 = vsel %vm7426_vm5, %v4616_v48, %v4617_v49  ;;  %v3927_v45 = vrot.slane %v3925_v1, 4  ;;  %v8769_v16 = vpop.f32.mrf.mxu0  ;;  %v5879_v1 = vld [vmem:[%s7084_s25 + $0x50] sm:$0x1] }
  0xfc   : > { %6800 = vmatpush3.bf16.msra.mxu0 %v6992_v23  ;;  %v8756_v23 = vpop.f32.mrf.mxu1  ;;  %v3930_v10 = vrot.slane %v3928_v18, 5  ;;  %9830 = vst [vmem:[#allocation9_spill] sm:$0xff] %v8769_v16  ;;  %v5972_v53 = vrot.slane %v5956_v14, 9  ;;  %v3940_v21 = vrot.slane %v3938_v63, 4  ;;  %v3908_v48 = vrot.slane %v3907_v55, 4 }
  0xfd   : > { %6672 = vmatmul.mubr.bf16.gmra.mxu1 %v9827_v0  ;;  %9828 = vst [vmem:[#allocation8_spill] sm:$0xff] %v8756_v23  ;;  %6801 = vmatprep.subr.bf16.mxu0 %v6996_v30  ;;  %v8771_v0 = vrot.slane %v3934_v15, 5  ;;  %v3949_v23 = vshrl.u32 %v5880_v39, 16  ;;  %v3922_v49 = vrot.slane %v3920_v54, 5  ;;  %v3952_v18 = vshll.u32 %v5880_v39, 16  ;;  %v8787_v39 = vpop.f32.mrf.mxu0 }
  0xfe   : > { %6675 = vmatprep.mubr.bf16.mxu1 %v9829_v37  ;;  %6752 = vmatpush3.bf16.msra.mxu1 %v6991_v60  ;;  %v3958_v52 = vshll.u32 %v8751_v22, 16  ;;  %v3918_v12 = vrot.slane %v3917_v2, 4  ;;  %v4623_v46 = vrot.slane %v4621_v31, 4  ;;  %v4624_v37 = vrot.slane %v8712_v28, 5  ;;  %v8777_v60 = vpop.f32.mrf.mxu1  ;;  %v5883_v55 = vld [vmem:[%s7084_s25 + $0x60] sm:$0xf] }
  0xff   : > { %6753 = vmatprep.subr.bf16.mxu1 %v6995_v42  ;;  %v3962_v14 = vshrl.u32 %v8751_v22, 16  ;;  %9831 = vst [vmem:[#allocation10_spill] sm:$0xff] %v8777_v60  ;;  %v3899_v15 = vsel %vm7115_vm2, %v8758_v51, %v8735_v43  ;;  %v3931_v63 = vor.u32 %v3930_v10, %v3927_v45  ;;  %v3941_v28 = vor.u32 %v3940_v21, %v8771_v0  ;;  %v5957_v60 = vld [vmem:[%s7084_s25 + $0x48] sm:$0xe] }
 0x100   : > { %6802 = vmatpush3.bf16.msra.mxu0 %v6996_v30  ;;  %v4628_v30 = vrot.slane %v8705_v33, 5  ;;  %v3944_v2 = vshll.u32 %v5879_v1, 16  ;;  %v3951_v16 = vrot.slane %v3949_v23, 4  ;;  %v3954_v62 = vrot.slane %v3952_v18, 5  ;;  %v8812_v10 = vpop.f32.mrf.mxu1 }
 0x101   : > { %v3913_v43 = vsel %vm7115_vm2, %v3908_v48, %v8714_v11  ;;  %v8796_v33 = vsel %vm7426_vm5, %v5972_v53, %v4621_v31  ;;  %v3923_v51 = vsel %vm7115_vm2, %v3918_v12, %v3922_v49  ;;  %v8804_v23 = vsel %vm7426_vm5, %v4623_v46, %v4624_v37  ;;  %9833 = vst [vmem:[#allocation11_spill] sm:$0xff] %v8812_v10  ;;  %v8815_v49 = vld [vmem:[%s7084_s25 + $0x64] sm:$0xf]  ;;  %v6986_v12 = vld [vmem:[%s7084_s25 + $0x9c] sm:$0xff]   ;;  %v8821_v46 = vpop.f32.mrf.mxu0 }
 0x102   : > { %6724 = vmatmul.mubr.bf16.gmra.mxu0 %v6982_v6  ;;  %6754 = vmatpush3.bf16.msra.mxu1 %v6995_v42  ;;  %v8798_v6 = vrot.slane %v3958_v52, 5  ;;  %v3964_v42 = vrot.slane %v3962_v14, 4  ;;  %v3973_v45 = vshrl.u32 %v5883_v55, 16  ;;  %v3976_v11 = vshll.u32 %v5883_v55, 16  ;;  %v6989_v55 = vld [vmem:[%s7084_s25 + $0xa8] sm:$0xff]  }
 0x103   : > { %6727 = vmatprep.mubr.bf16.mxu0 %v6985_v47  ;;  %v8807_v47 = vld [vmem:[%s7084_s25 + $0x5c] sm:$0x1]  ;;  %v9832_v31 = vcombine.low %v8414_v34, %v8423_v17  ;;  %v3932_v52 = vrot.slane %v3931_v63, 4  ;;  %v5973_v53 = vrot.slane %v5957_v60, 9  ;;  %v4630_v21 = vrot.slane %v4628_v30, 4 }
 0x104   : > { %v4631_v48 = vrot.slane %v5879_v1, 5  ;;  %v9834_v18 = vcombine.low %v8440_v32, %v8444_v58  ;;  %v3942_v37 = vrot.slane %v3941_v28, 4  ;;  %v3946_v14 = vrot.slane %v3944_v2, 5  ;;  %v5958_v63 = vld [vmem:[%s7084_s25 + $0x54] sm:$0xe]  ;;  %v8839_v28 = vpop.f32.mrf.mxu1 }
 0x105   : > { %6676 = vmatmul.mubr.bf16.gmra.mxu1 %v9832_v31  ;;  %v3955_v34 = vor.u32 %v3954_v62, %v3951_v16  ;;  %v4635_v17 = vrot.slane %v8751_v22, 5  ;;  %v3965_v60 = vor.u32 %v3964_v42, %v8798_v6  ;;  %v3968_v1 = vshll.u32 %v8807_v47, 16  ;;  %9836 = vst [vmem:[#allocation12_spill] sm:$0xff] %v8839_v28  ;;  %v5959_v62 = vld [vmem:[%s7084_s25 + $0x60] sm:$0xe] }
 0x106   : > { %6679 = vmatprep.mubr.bf16.mxu1 %v9834_v18  ;;  %v3975_v31 = vrot.slane %v3973_v45, 4  ;;  %v3978_v54 = vrot.slane %v3976_v11, 5  ;;  %v9835_v32 = vsel %vm7115_vm2, %v8707_v50, %v8651_v7  ;;  %v3982_v22 = vshll.u32 %v8815_v49, 16 }
 0x107   : > { %v8833_v58 = vcombine.low %v9835_v32, %v3899_v15  ;;  %v3986_v16 = vshrl.u32 %v8815_v49, 16  ;;  %v8841_v2 = vcombine.low %v3913_v43, %v3923_v51  ;;  %v3937_v42 = vsel %vm7115_vm2, %v3932_v52, %v8771_v0  ;;  %v5886_v15 = vld [vmem:[%s7084_s25 + $0x6c] sm:$0xf]  ;;  %v8859_v32 = vld [vmem:[%s7084_s25 + $0x70] sm:$0xf] }
 0x108   : > { %v8848_v7 = vsel %vm7426_vm5, %v5973_v53, %v4628_v30  ;;  %v8852_v50 = vsel %vm7426_vm5, %v4630_v21, %v4631_v48  ;;  %v8855_v45 = vpop.f32.mrf.mxu0  ;;  %v3956_v43 = vrot.slane %v3955_v34, 4  ;;  %v5974_v51 = vrot.slane %v5958_v63, 9  ;;  %v5885_v53 = vld [vmem:[%s7084_s25 + $0x68] sm:$0x1] }
 0x109   : > { %9837 = vst [vmem:[#allocation13_spill] sm:$0xff] %v8855_v45  ;;  %v4637_v11 = vrot.slane %v4635_v17, 4  ;;  %v4638_v18 = vrot.slane %v8807_v47, 5  ;;  %v3947_v0 = vsel %vm7115_vm2, %v3942_v37, %v3946_v14  ;;  %v3966_v30 = vrot.slane %v3965_v60, 4  ;;  %v5961_v45 = vld [vmem:[%s7084_s25 + $0x78] sm:$0xe] }
 0x10a   : > { %6728 = vmatmul.mubr.bf16.gmra.mxu0 %v6986_v12  ;;  %v3970_v52 = vrot.slane %v3968_v1, 5  ;;  %v3979_v21 = vor.u32 %v3978_v54, %v3975_v31  ;;  %v8864_v48 = vrot.slane %v3982_v22, 5  ;;  %v3988_v12 = vrot.slane %v3986_v16, 4  ;;  %v6990_v31 = vld [vmem:[%s7084_s25 + $0xb4] sm:$0xff]  }
 0x10b   : > { %6731 = vmatprep.mubr.bf16.mxu0 %v6989_v55  ;;  %v3997_v34 = vshrl.u32 %v5886_v15, 16  ;;  %v4000_v63 = vshll.u32 %v5886_v15, 16  ;;  %v9838_v47 = vcombine.low %v8460_v5, %v8465_v25  ;;  %v4642_v14 = vrot.slane %v8815_v49, 5  ;;  %v8881_v5 = vpop.f32.mrf.mxu0 }
 0x10c   : > { %v4006_v54 = vshll.u32 %v8859_v32, 16  ;;  %v4010_v60 = vshrl.u32 %v8859_v32, 16  ;;  %v9840_v1 = vcombine.low %v8478_v9, %v8472_v29  ;;  %9841 = vst [vmem:[#allocation15_spill] sm:$0xff] %v8881_v5  ;;  %v8883_v25 = vcombine.low %v3937_v42, %v3947_v0  ;;  %v5889_v29 = vld [vmem:[%s7084_s25 + $0x78] sm:$0xf]  ;;  %v6993_v9 = vld [vmem:[%s7084_s25 + $0xc0] sm:$0xff]  }
 0x10d   : > { %6680 = vmatmul.mubr.bf16.gmra.mxu1 %v9838_v47  ;;  %v8870_v55 = vpop.f32.mrf.mxu1  ;;  %v3961_v22 = vsel %vm7115_vm2, %v3956_v43, %v8798_v6  ;;  %v8890_v49 = vsel %vm7426_vm5, %v5974_v51, %v4635_v17  ;;  %v8894_v16 = vsel %vm7426_vm5, %v4637_v11, %v4638_v18  ;;  %v3971_v15 = vsel %vm7115_vm2, %v3966_v30, %v3970_v52  ;;  %v8907_v43 = vld [vmem:[%s7084_s25 + $0x74] sm:$0x1]  ;;  %v8964_v5 = vld [vmem:[%s7084_s25 + $0x8c] sm:$0x1] }
 0x10e   : > { %9839 = vst [vmem:[#allocation14_spill] sm:$0xff] %v8870_v55  ;;  %6683 = vmatprep.mubr.bf16.mxu1 %v9840_v1  ;;  %v8900_v47 = vrot.slane %v3979_v21, 4  ;;  %v3992_v42 = vshll.u32 %v5885_v53, 16  ;;  %v5975_v0 = vrot.slane %v5959_v62, 9  ;;  %v8903_v1 = vld [vmem:[%s7084_s25 + $0x7c] sm:$0xf]  ;;  %v3989_v6 = vor.u32 %v3988_v12, %v8864_v48  ;;  %v8913_v21 = vpop.f32.mrf.mxu0 }
 0x10f   : > { %v4645_v17 = vrot.slane %v5885_v53, 5  ;;  %v3999_v51 = vrot.slane %v3997_v34, 4  ;;  %v4002_v11 = vrot.slane %v4000_v63, 5  ;;  %v8909_v18 = vpop.f32.mrf.mxu1  ;;  %v4644_v37 = vrot.slane %v4642_v14, 4  ;;  %9843 = vst [vmem:[#allocation17_spill] sm:$0xff] %v8913_v21 }
 0x110   : > { %9842 = vst [vmem:[#allocation16_spill] sm:$0xff] %v8909_v18  ;;  %v8911_v55 = vrot.slane %v4006_v54, 5  ;;  %v4012_v30 = vrot.slane %v4010_v60, 4  ;;  %v4021_v52 = vshrl.u32 %v5889_v29, 16  ;;  %v5960_v53 = vld [vmem:[%s7084_s25 + $0x6c] sm:$0xe]  ;;  %v8920_v18 = vcombine.low %v3961_v22, %v3971_v15 }
 0x111   : > { %v4024_v12 = vshll.u32 %v5889_v29, 16  ;;  %v4030_v34 = vshll.u32 %v8903_v1, 16  ;;  %v4034_v63 = vshrl.u32 %v8903_v1, 16  ;;  %v8922_v54 = vrot.slane %v3992_v42, 5  ;;  %v5892_v62 = vld [vmem:[%s7084_s25 + $0x84] sm:$0xf]  ;;  %v8943_v42 = vpop.f32.mrf.mxu1 }
 0x112   : > { %6732 = vmatmul.mubr.bf16.gmra.mxu0 %v6990_v31  ;;  %9844 = vst [vmem:[#allocation18_spill] sm:$0xff] %v8920_v18  ;;  %v8926_v60 = vsel %vm7426_vm5, %v5975_v0, %v4642_v14  ;;  %v4016_v31 = vshll.u32 %v8907_v43, 16  ;;  %v8934_v28 = vrot.slane %v3989_v6, 4  ;;  %v4649_v22 = vrot.slane %v8859_v32, 5  ;;  %v8938_v15 = vld [vmem:[%s7084_s25 + $0x88] sm:$0xf] }
 0x113   : > { %6735 = vmatprep.mubr.bf16.mxu0 %v6993_v9  ;;  %v4003_v9 = vor.u32 %v4002_v11, %v3999_v51  ;;  %v9845_v14 = vcombine.low %v8487_v4, %v8491_v13  ;;  %9846 = vst [vmem:[#allocation19_spill] sm:$0xff] %v8943_v42  ;;  %v6994_v0 = vld [vmem:[%s7084_s25 + $0xcc] sm:$0xff]   ;;  %v8948_v10 = vsel %vm7426_vm5, %v4644_v37, %v4645_v17  ;;  %v5976_v6 = vrot.slane %v5960_v53, 9  ;;  %v8951_v11 = vpop.f32.mrf.mxu0  ;;  %v8957_v4 = vld [vmem:[%s7084_s25 + $0x80] sm:$0x1] }
 0x114   : > { %v4013_v29 = vor.u32 %v4012_v30, %v8911_v55  ;;  %v4023_v51 = vrot.slane %v4021_v52, 4  ;;  %9847 = vst [vmem:[#allocation20_spill] sm:$0xff] %v8951_v11  ;;  %v9848_v32 = vcombine.low %v8522_v26, %v8526_v35  ;;  %v4026_v13 = vrot.slane %v4024_v12, 5 }
 0x115   : > { %6684 = vmatmul.mubr.bf16.gmra.mxu1 %v9845_v14  ;;  %v8959_v14 = vrot.slane %v4030_v34, 5  ;;  %v4036_v42 = vrot.slane %v4034_v63, 4  ;;  %v4045_v21 = vshrl.u32 %v5892_v62, 16  ;;  %v4018_v37 = vrot.slane %v4016_v31, 5 }
 0x116   : > { %6687 = vmatprep.mubr.bf16.mxu1 %v9848_v32  ;;  %v4652_v17 = vrot.slane %v8907_v43, 5  ;;  %v4048_v30 = vshll.u32 %v5892_v62, 16  ;;  %v4054_v52 = vshll.u32 %v8938_v15, 16  ;;  %v4004_v53 = vrot.slane %v4003_v9, 4  ;;  %v8967_v32 = vpop.f32.mrf.mxu1 }
 0x117   : > { %v4651_v11 = vrot.slane %v4649_v22, 4  ;;  %v4047_v26 = vrot.slane %v4045_v21, 4  ;;  %v4058_v35 = vshrl.u32 %v8938_v15, 16  ;;  %v4014_v12 = vrot.slane %v4013_v29, 4 }
 0x118   : > { %v4040_v34 = vshll.u32 %v8957_v4, 16  ;;  %v4050_v63 = vrot.slane %v4048_v30, 5  ;;  %v8970_v31 = vrot.slane %v4054_v52, 5  ;;  %v4027_v62 = vor.u32 %v4026_v13, %v4023_v51  ;;  %v5962_v52 = vld [vmem:[%s7084_s25 + $0x84] sm:$0xe] }
 0x119   : > { %v8972_v43 = vpop.f32.mrf.mxu0  ;;  %v4037_v9 = vor.u32 %v4036_v42, %v8959_v14  ;;  %v4656_v21 = vrot.slane %v8903_v1, 5  ;;  %v4060_v18 = vrot.slane %v4058_v35, 4  ;;  %v9849_v29 = vcombine.low %v8618_v41, %v8633_v3 }
 0x11a   : > { %6736 = vmatmul.mubr.bf16.gmra.mxu0 %v6994_v0  ;;  %v3995_v30 = vsel %vm7115_vm2, %v8934_v28, %v8922_v54  ;;  %v8988_v51 = vsel %vm7426_vm5, %v5976_v6, %v4649_v22  ;;  %v4064_v42 = vshll.u32 %v8964_v5, 16  ;;  %v4009_v41 = vsel %vm7115_vm2, %v4004_v53, %v8911_v55  ;;  %v5895_v54 = vld [vmem:[%s7084_s25 + $0x90] sm:$0xf] }
 0x11b   : > { %6803 = vmatprep.mubr.bf16.mxu0 %v9849_v29  ;;  %v8991_v1 = vpop.f32.mrf.mxu0  ;;  %v4051_v3 = vor.u32 %v4050_v63, %v4047_v26  ;;  %v4061_v13 = vor.u32 %v4060_v18, %v8970_v31  ;;  %v4663_v28 = vrot.slane %v8938_v15, 5  ;;  %v9851_v22 = vcombine.low %v8535_v44, %v8540_v8 }
 0x11c   : > { %v4019_v6 = vsel %vm7115_vm2, %v4014_v12, %v4018_v37  ;;  %v9009_v55 = vsel %vm7426_vm5, %v4651_v11, %v4652_v17  ;;  %v4042_v53 = vrot.slane %v4040_v34, 5  ;;  %v5977_v18 = vrot.slane %v5961_v45, 9  ;;  %v9018_v12 = vld [vmem:[%s7084_s25 + $0x94] sm:$0xf] }
 0x11d   : > { %v9000_v35 = vpop.f32.mrf.mxu1  ;;  %6688 = vmatmul.mubr.bf16.gmra.mxu1 %v9851_v22  ;;  %v9011_v26 = vpop.f32.mrf.mxu0  ;;  %v4028_v15 = vrot.slane %v4027_v62, 4  ;;  %v4038_v63 = vrot.slane %v4037_v9, 4  ;;  %v4658_v29 = vrot.slane %v4656_v21, 4  ;;  %v4659_v0 = vrot.slane %v8957_v4, 5 }
 0x11e   : > { %9850 = vst [vmem:[#allocation21_spill] sm:$0xff] %v9000_v35  ;;  %6755 = vmatprep.mubr.bf16.mxu1 %v8727_v40  ;;  %v4066_v8 = vrot.slane %v4064_v42, 5  ;;  %v5978_v37 = vrot.slane %v5962_v52, 9  ;;  %v4069_v11 = vshrl.u32 %v5895_v54, 16  ;;  %v4072_v17 = vshll.u32 %v5895_v54, 16 }
 0x11f   : > { %v9015_v44 = vpop.f32.mrf.mxu1  ;;  %v9020_v34 = vpop.f32.mrf.mxu0  ;;  %v4052_v45 = vrot.slane %v4051_v3, 4  ;;  %v4062_v22 = vrot.slane %v4061_v13, 4  ;;  %v4665_v40 = vrot.slane %v4663_v28, 4  ;;  %v4666_v62 = vrot.slane %v8964_v5, 5  ;;  %v9041_v54 = vld [vmem:[%s7084_s25 + $0x98] sm:$0x1] }
 0x120   : > { %9852 = vst [vmem:[#allocation22_spill] sm:$0xff] %v9015_v44  ;;  %v9854_v4 = vsel %vm7115_vm2, %v8900_v47, %v8864_v48  ;;  %v9032_v52 = vcombine.low %v4009_v41, %v4019_v6  ;;  %v9038_v13 = vsel %vm7426_vm5, %v5977_v18, %v4656_v21  ;;  %v4033_v48 = vsel %vm7115_vm2, %v4028_v15, %v8959_v14  ;;  %v5898_v41 = vld [vmem:[%s7084_s25 + $0x9c] sm:$0xf]  ;;  %v9058_v6 = vld [vmem:[%s7084_s25 + $0xa0] sm:$0xf] }
 0x121   : > { %v9023_v9 = vpop.f32.mrf.mxu1  ;;  %v9030_v42 = vcombine.low %v9854_v4, %v3995_v30  ;;  %v6517_v5 = vpop.f32.mrf.mxu0  ;;  %v4043_v47 = vsel %vm7115_vm2, %v4038_v63, %v4042_v53  ;;  %v9053_v30 = vsel %vm7426_vm5, %v4658_v29, %v4659_v0  ;;  %v4078_v21 = vshll.u32 %v9018_v12, 16  ;;  %v9145_v35 = vld [vmem:[%s7084_s25 + $0xb0] sm:$0x1] }
 0x122   : > { %9853 = vst [vmem:[#allocation23_spill] sm:$0xff] %v9023_v9  ;;  %v9855_v9 = vcombine.low %v8690_v20, %v8694_v19  ;;  %v9857_v20 = vcombine.low %v8746_v36, %v8762_v59  ;;  %v9067_v19 = vsel %vm7426_vm5, %v5978_v37, %v4663_v28  ;;  %v4071_v14 = vrot.slane %v4069_v11, 4  ;;  %v9082_v37 = vld [vmem:[%s7084_s25 + $0x90] sm:$0xe] }
 0x123   : > { %v9060_v18 = vpop.f32.mrf.mxu1  ;;  %v4074_v53 = vrot.slane %v4072_v17, 5  ;;  %v4082_v0 = vshrl.u32 %v9018_v12, 16  ;;  %v1589_v15 = vpop.f32.mrf.mxu0  ;;  %v4057_v63 = vsel %vm7115_vm2, %v4052_v45, %v8970_v31  ;;  %v4067_v29 = vsel %vm7115_vm2, %v4062_v22, %v4066_v8 }
 0x124   : > { %6804 = vmatmul.mubr.bf16.vlgmr.msra.gmra.mxu0 %v9855_v9  ;;  %9856 = vst [vmem:[#allocation24_spill] sm:$0xff] %v9060_v18  ;;  %v9077_v36 = vsel %vm7426_vm5, %v4665_v40, %v4666_v62  ;;  %v4088_v59 = vshll.u32 %v9041_v54, 16  ;;  %v4093_v11 = vshrl.u32 %v5898_v41, 16  ;;  %v4096_v17 = vshll.u32 %v5898_v41, 16 }
 0x125   : > { %6807 = vmatprep.mubr.bf16.mxu0 %v9857_v20  ;;  %v6469_v28 = vpop.f32.mrf.mxu1  ;;  %6756 = vmatmul.mubr.bf16.vlgmr.msra.gmra.mxu1 %v8733_v61  ;;  %v4102_v9 = vshll.u32 %v9058_v6, 16  ;;  %v4106_v31 = vshrl.u32 %v9058_v6, 16  ;;  %v6518_v45 = vpop.f32.mrf.mxu0  ;;  %v9088_v22 = vcombine.low %v4033_v48, %v4043_v47  ;;  %v9092_v40 = vrot.slane %v4078_v21, 5  ;;  %v9106_v61 = vld [vmem:[%s7084_s25 + $0xa4] sm:$0x1] }
 0x126   : > { %v1145_v8 = vadd.f32 %v6469_v28, %v8583_v24  ;;  %6759 = vmatprep.mubr.bf16.mxu1 %v8833_v58  ;;  %v9094_v4 = vcombine.low %v4057_v63, %v4067_v29  ;;  %v4075_v20 = vor.u32 %v4074_v53, %v4071_v14  ;;  %v4084_v24 = vrot.slane %v4082_v0, 4  ;;  %v5901_v28 = vld [vmem:[%s7084_s25 + $0xa8] sm:$0xf]  ;;  %v9111_v14 = vld [vmem:[%s7084_s25 + $0xac] sm:$0xf] }
 0x127   : > { %v1136_v62 = vpop.f32.mrf.mxu1  ;;  %v1592_v48 = vpop.f32.mrf.mxu0  ;;  %v9102_v47 = vrot.slane %v4088_v59, 5  ;;  %v5979_v21 = vrot.slane %v9082_v37, 9  ;;  %v4095_v29 = vrot.slane %v4093_v11, 4  ;;  %v4098_v18 = vrot.slane %v4096_v17, 5 }
 0x128   : > { %v9099_v3 = vadd.f32 %v6517_v5, %v1145_v8  ;;  %v1137_v58 = vadd.f32 %v1136_v62, %v8604_v57  ;;  %v9108_v44 = vrot.slane %v4102_v9, 5  ;;  %v4108_v41 = vrot.slane %v4106_v31, 4  ;;  %v9863_v62 = vld [vmem:[#allocation3_spill] sm:$0xff] }
 0x129   : > { %v6470_v63 = vpop.f32.mrf.mxu1  ;;  %v6521_v5 = vpop.f32.mrf.mxu0  ;;  %v9860_v0 = vcombine.low %v8796_v33, %v8804_v23  ;;  %v4117_v59 = vshrl.u32 %v5901_v28, 16  ;;  %v4120_v37 = vshll.u32 %v5901_v28, 16  ;;  %v9861_v11 = vcombine.low %v8848_v7, %v8852_v50 }
 0x12a   : > { %9858 = vst [vmem:[#allocation25_spill] sm:$0xff] %v9099_v3  ;;  %v9113_v53 = vadd.f32 %v1589_v15, %v1137_v58  ;;  %v1148_v57 = vadd.f32 %v6470_v63, %v8640_v38  ;;  %v9122_v17 = vrot.slane %v4075_v20, 4  ;;  %v4085_v15 = vor.u32 %v4084_v24, %v9092_v40  ;;  %v5964_v58 = vld [vmem:[%s7084_s25 + $0x9c] sm:$0xe] }
 0x12b   : > { %v1139_v8 = vpop.f32.mrf.mxu1  ;;  %v4670_v9 = vrot.slane %v9018_v12, 5  ;;  %v4112_v38 = vshll.u32 %v9106_v61, 16  ;;  %v1605_v23 = vpop.f32.mrf.mxu0  ;;  %v4673_v28 = vrot.slane %v9041_v54, 5  ;;  %v4126_v63 = vshll.u32 %v9111_v14, 16 }
 0x12c   : > { %9859 = vst [vmem:[#allocation26_spill] sm:$0xff] %v9113_v53  ;;  %6808 = vmatmul.mubr.bf16.gmra.mxu0 %v9860_v0  ;;  %v9127_v31 = vadd.f32 %v6518_v45, %v1148_v57  ;;  %v1140_v33 = vadd.f32 %v1139_v8, %v9863_v62  ;;  %v4099_v50 = vor.u32 %v4098_v18, %v4095_v29  ;;  %v4677_v12 = vrot.slane %v9058_v6, 5  ;;  %v9864_v57 = vld [vmem:[#allocation7_spill] sm:$0xff]  ;;  %v9865_v6 = vld [vmem:[#allocation9_spill] sm:$0xff] }
 0x12d   : > { %6811 = vmatprep.mubr.bf16.mxu0 %v9861_v11  ;;  %v6473_v7 = vpop.f32.mrf.mxu1  ;;  %6760 = vmatmul.mubr.bf16.gmra.mxu1 %v8841_v2  ;;  %v4109_v20 = vor.u32 %v4108_v41, %v9108_v44  ;;  %v4130_v45 = vshrl.u32 %v9111_v14, 16  ;;  %v6522_v8 = vpop.f32.mrf.mxu0  ;;  %v4119_v54 = vrot.slane %v4117_v59, 4  ;;  %v4122_v11 = vrot.slane %v4120_v37, 5 }
 0x12e   : > { %9862 = vst [vmem:[#allocation27_spill] sm:$0xff] %v9127_v31  ;;  %v9137_v24 = vadd.f32 %v1592_v48, %v1140_v33  ;;  %v1161_v0 = vadd.f32 %v6473_v7, %v9864_v57  ;;  %6763 = vmatprep.mubr.bf16.mxu1 %v8883_v25  ;;  %v4086_v31 = vrot.slane %v4085_v15, 4  ;;  %v4672_v2 = vrot.slane %v4670_v9, 4 }
 0x12f   : > { %v1152_v62 = vpop.f32.mrf.mxu1  ;;  %v4114_v18 = vrot.slane %v4112_v38, 5  ;;  %v5980_v29 = vrot.slane %v5964_v58, 9  ;;  %v1608_v3 = vpop.f32.mrf.mxu0  ;;  %v9147_v48 = vrot.slane %v4126_v63, 5  ;;  %v4132_v33 = vrot.slane %v4130_v45, 4 }
 0x130   : > { %v9141_v41 = vadd.f32 %v6521_v5, %v1161_v0  ;;  %v1153_v53 = vadd.f32 %v1152_v62, %v9865_v6  ;;  %v4100_v57 = vrot.slane %v4099_v50, 4  ;;  %v4110_v25 = vrot.slane %v4109_v20, 4 }
 0x131   : > { %v6474_v7 = vpop.f32.mrf.mxu1  ;;  %v4679_v59 = vrot.slane %v4677_v12, 4  ;;  %v4680_v37 = vrot.slane %v9106_v61, 5  ;;  %v6525_v38 = vpop.f32.mrf.mxu0  ;;  %v9866_v58 = vcombine.low %v8890_v49, %v8894_v16  ;;  %v9158_v63 = vsel %vm7426_vm5, %v5979_v21, %v4670_v9  ;;  %v5965_v21 = vld [vmem:[%s7084_s25 + $0xa8] sm:$0xe] }
 0x132   : > { %v9150_v15 = vadd.f32 %v1605_v23, %v1153_v53  ;;  %v1164_v5 = vadd.f32 %v6474_v7, %v8787_v39  ;;  %v4123_v50 = vor.u32 %v4122_v11, %v4119_v54  ;;  %v9867_v20 = vcombine.low %v8926_v60, %v8948_v10 }
 0x133   : > { %v1155_v45 = vpop.f32.mrf.mxu1  ;;  %v4081_v39 = vsel %vm7115_vm2, %v9122_v17, %v9092_v40  ;;  %v4091_v49 = vsel %vm7115_vm2, %v4086_v31, %v9102_v47  ;;  %v9172_v16 = vsel %vm7426_vm5, %v4672_v2, %v4673_v28  ;;  %v4136_v61 = vshll.u32 %v9145_v35, 16  ;;  %v1621_v60 = vpop.f32.mrf.mxu0  ;;  %v5904_v17 = vld [vmem:[%s7084_s25 + $0xb4] sm:$0xf]  ;;  %v9868_v47 = vld [vmem:[#allocation18_spill] sm:$0xff]  ;;  %v9201_v2 = vld [vmem:[%s7084_s25 + $0xb8] sm:$0xf] }
 0x134   : > { %6812 = vmatmul.mubr.bf16.gmra.mxu0 %v9866_v58  ;;  %v9176_v53 = vadd.f32 %v6522_v8, %v1164_v5  ;;  %v1156_v10 = vadd.f32 %v1155_v45, %v8821_v46  ;;  %v4133_v9 = vor.u32 %v4132_v33, %v9147_v48  ;;  %v4684_v40 = vrot.slane %v9111_v14, 5  ;;  %v9869_v8 = vld [vmem:[#allocation13_spill] sm:$0xff] }
 0x135   : > { %6815 = vmatprep.mubr.bf16.mxu0 %v9867_v20  ;;  %v6477_v23 = vpop.f32.mrf.mxu1  ;;  %6764 = vmatmul.mubr.bf16.gmra.mxu1 %v9868_v47  ;;  %v4105_v31 = vsel %vm7115_vm2, %v4100_v57, %v9108_v44  ;;  %v4115_v28 = vsel %vm7115_vm2, %v4110_v25, %v4114_v18  ;;  %v9190_v46 = vsel %vm7426_vm5, %v5980_v29, %v4677_v12  ;;  %v6526_v11 = vpop.f32.mrf.mxu0  ;;  %v4124_v62 = vrot.slane %v4123_v50, 4  ;;  %v9870_v57 = vld [vmem:[#allocation15_spill] sm:$0xff]  ;;  %v9874_v47 = vld [vmem:[#allocation20_spill] sm:$0xff] }
 0x136   : > { %v9194_v0 = vsel %vm7426_vm5, %v4679_v59, %v4680_v37  ;;  %v9196_v14 = vadd.f32 %v1608_v3, %v1156_v10  ;;  %v1177_v54 = vadd.f32 %v6477_v23, %v9869_v8  ;;  %6767 = vmatprep.mubr.bf16.mxu1 %v9030_v42  ;;  %v5981_v44 = vrot.slane %v5965_v21, 9 }
 0x137   : > { %v1168_v18 = vpop.f32.mrf.mxu1  ;;  %v4138_v6 = vrot.slane %v4136_v61, 5  ;;  %v4687_v12 = vrot.slane %v9145_v35, 5  ;;  %v4141_v29 = vshrl.u32 %v5904_v17, 16  ;;  %v4144_v33 = vshll.u32 %v5904_v17, 16  ;;  %v1624_v25 = vpop.f32.mrf.mxu0 }
 0x138   : > { %v9204_v7 = vadd.f32 %v6525_v38, %v1177_v54  ;;  %v1169_v3 = vadd.f32 %v1168_v18, %v9870_v57  ;;  %v4134_v59 = vrot.slane %v4133_v9, 4  ;;  %v4686_v37 = vrot.slane %v4684_v40, 4  ;;  %v9871_v38 = vld [vmem:[#allocation17_spill] sm:$0xff] }
 0x139   : > { %v6478_v42 = vpop.f32.mrf.mxu1  ;;  %v9207_v5 = vcombine.low %v4081_v39, %v4091_v49  ;;  %v6011_v58 = vcombine.low %v9158_v63, %v9172_v16  ;;  %v9211_v50 = vcombine.low %v4105_v31, %v4115_v28  ;;  %v4150_v35 = vshll.u32 %v9201_v2, 16  ;;  %v6529_v61 = vpop.f32.mrf.mxu0  ;;  %v5907_v49 = vld [vmem:[%s7084_s25 + $0xc0] sm:$0xf]  ;;  %v9225_v16 = vld [vmem:[%s7084_s25 + $0xc4] sm:$0xf] }
 0x13a   : > { %v9214_v45 = vadd.f32 %v1621_v60, %v1169_v3  ;;  %v1180_v20 = vadd.f32 %v6478_v42, %v9871_v38  ;;  %v9872_v21 = vcombine.low %v8988_v51, %v9009_v55  ;;  %v6012_v39 = vcombine.low %v9190_v46, %v9194_v0  ;;  %v9879_v46 = vld [vmem:[#allocation6_spill] sm:$0xff] }
 0x13b   : > { %v4154_v63 = vshrl.u32 %v9201_v2, 16  ;;  %v1171_v10 = vpop.f32.mrf.mxu1  ;;  %v9873_v60 = vcombine.low %v9038_v13, %v9053_v30  ;;  %v4129_v51 = vsel %vm7115_vm2, %v4124_v62, %v9147_v48  ;;  %v9235_v55 = vsel %vm7426_vm5, %v5981_v44, %v4684_v40  ;;  %v1637_v28 = vpop.f32.mrf.mxu0  ;;  %v9247_v30 = vld [vmem:[%s7084_s25 + $0xbc] sm:$0x1]  ;;  %v5966_v48 = vld [vmem:[%s7084_s25 + $0xb4] sm:$0xe] }
 0x13c   : > { %6816 = vmatmul.mubr.bf16.gmra.mxu0 %v9872_v21  ;;  %v4143_v9 = vrot.slane %v4141_v29, 4  ;;  %v4146_v17 = vrot.slane %v4144_v33, 5  ;;  %v9237_v23 = vadd.f32 %v6526_v11, %v1180_v20  ;;  %v1172_v31 = vadd.f32 %v1171_v10, %v9874_v47  ;;  %v9269_v20 = vld [vmem:[%s7084_s25 + $0xc8] sm:$0x1] }
 0x13d   : > { %6819 = vmatprep.mubr.bf16.mxu0 %v9873_v60  ;;  %v4139_v8 = vsel %vm7115_vm2, %v4134_v59, %v4138_v6  ;;  %v9244_v13 = vsel %vm7426_vm5, %v4686_v37, %v4687_v12  ;;  %v6481_v54 = vpop.f32.mrf.mxu1  ;;  %6768 = vmatmul.mubr.bf16.gmra.mxu1 %v9032_v52  ;;  %v9251_v40 = vrot.slane %v4150_v35, 5  ;;  %v4165_v11 = vshrl.u32 %v5907_v49, 16  ;;  %v6530_v29 = vpop.f32.mrf.mxu0 }
 0x13e   : > { %v4168_v62 = vshll.u32 %v5907_v49, 16  ;;  %v4174_v44 = vshll.u32 %v9225_v16, 16  ;;  %v9254_v18 = vadd.f32 %v1624_v25, %v1172_v31  ;;  %v1193_v6 = vadd.f32 %v6481_v54, %v8972_v43  ;;  %6771 = vmatprep.mubr.bf16.mxu1 %v9088_v22 }
 0x13f   : > { %v4156_v12 = vrot.slane %v4154_v63, 4  ;;  %v4178_v33 = vshrl.u32 %v9225_v16, 16  ;;  %v1184_v57 = vpop.f32.mrf.mxu1  ;;  %v4147_v3 = vor.u32 %v4146_v17, %v4143_v9  ;;  %v4160_v52 = vshll.u32 %v9247_v30, 16  ;;  %v1640_v43 = vpop.f32.mrf.mxu0  ;;  %v5910_v9 = vld [vmem:[%s7084_s25 + $0xcc] sm:$0xf] }
 0x140   : > { %v5982_v59 = vrot.slane %v5966_v48, 9  ;;  %v4691_v37 = vrot.slane %v9201_v2, 5  ;;  %v9261_v42 = vadd.f32 %v6529_v61, %v1193_v6  ;;  %v1185_v25 = vadd.f32 %v1184_v57, %v8991_v1  ;;  %v5967_v48 = vld [vmem:[%s7084_s25 + $0xc0] sm:$0xe] }
 0x141   : > { %v9264_v35 = vcombine.low %v4129_v51, %v4139_v8  ;;  %v6013_v22 = vcombine.low %v9235_v55, %v9244_v13  ;;  %v6482_v38 = vpop.f32.mrf.mxu1  ;;  %v4167_v21 = vrot.slane %v4165_v11, 4  ;;  %v4170_v63 = vrot.slane %v4168_v62, 5  ;;  %v6533_v10 = vpop.f32.mrf.mxu0  ;;  %v9291_v8 = vld [vmem:[%s7084_s25 + $0xd0] sm:$0xf] }
 0x142   : > { %v9271_v49 = vrot.slane %v4174_v44, 5  ;;  %v4180_v2 = vrot.slane %v4178_v33, 4  ;;  %v9273_v61 = vadd.f32 %v1637_v28, %v1185_v25  ;;  %v1196_v1 = vadd.f32 %v6482_v38, %v9011_v26 }
 0x143   : > { %v9875_v60 = vcombine.low %v9067_v19, %v9077_v36  ;;  %v4157_v51 = vor.u32 %v4156_v12, %v9251_v40  ;;  %v4694_v55 = vrot.slane %v9247_v30, 5  ;;  %v1187_v17 = vpop.f32.mrf.mxu1  ;;  %v9282_v47 = vrot.slane %v4147_v3, 4  ;;  %v1653_v13 = vpop.f32.mrf.mxu0 }
 0x144   : > { %v9284_v31 = vrot.slane %v4160_v52, 5  ;;  %v9288_v26 = vsel %vm7426_vm5, %v5982_v59, %v4691_v37  ;;  %v4693_v28 = vrot.slane %v4691_v37, 4  ;;  %v9293_v19 = vadd.f32 %v6530_v29, %v1196_v1  ;;  %v9876_v29 = vld [vmem:[#allocation2_spill] sm:$0xff] }
 0x145   : > { %6820 = vmatmul.mubr.bf16.gmra.mxu0 %v9875_v60  ;;  %v1188_v36 = vadd.f32 %v1187_v17, %v9020_v34  ;;  %v4184_v30 = vshll.u32 %v9269_v20, 16  ;;  %v6485_v54 = vpop.f32.mrf.mxu1  ;;  %6772 = vmatmul.mubr.bf16.gmra.mxu1 %v9094_v4  ;;  %v4171_v11 = vor.u32 %v4170_v63, %v4167_v21  ;;  %v4181_v62 = vor.u32 %v4180_v2, %v9271_v49  ;;  %v6534_v57 = vpop.f32.mrf.mxu0 }
 0x146   : > { %6823 = vmatprep.mubr.bf16.mxu0 %v6011_v58  ;;  %v4698_v58 = vrot.slane %v9225_v16, 5  ;;  %v4189_v44 = vshrl.u32 %v5910_v9, 16  ;;  %v4192_v6 = vshll.u32 %v5910_v9, 16  ;;  %v1209_v33 = vadd.f32 %v6485_v54, %v9876_v29  ;;  %6775 = vmatprep.mubr.bf16.mxu1 %v9207_v5 }
 0x147   : > { %v9301_v12 = vadd.f32 %v1640_v43, %v1188_v36  ;;  %v4198_v34 = vshll.u32 %v9291_v8, 16  ;;  %v4202_v3 = vshrl.u32 %v9291_v8, 16  ;;  %v1200_v16 = vpop.f32.mrf.mxu1  ;;  %v4158_v52 = vrot.slane %v4157_v51, 4  ;;  %v9877_v43 = vld [vmem:[#allocation5_spill] sm:$0xff]  ;;  %v1656_v21 = vpop.f32.mrf.mxu0  ;;  %v9878_v36 = vld [vmem:[#allocation4_spill] sm:$0xff] }
 0x148   : > { %v4695_v4 = vsel %vm7426_vm5, %v4693_v28, %v4694_v55  ;;  %v5983_v59 = vrot.slane %v5967_v48, 9  ;;  %v4701_v37 = vrot.slane %v9269_v20, 5  ;;  %v9310_v25 = vadd.f32 %v6533_v10, %v1209_v33  ;;  %v5912_v20 = vld [vmem:[%s7084_s25 + $0xd4] sm:$0x1] }
 0x149   : > { %v1201_v38 = vadd.f32 %v1200_v16, %v9877_v43  ;;  %v4186_v63 = vrot.slane %v4184_v30, 5  ;;  %v4700_v5 = vrot.slane %v4698_v58, 4  ;;  %v6486_v2 = vpop.f32.mrf.mxu1  ;;  %v4172_v1 = vrot.slane %v4171_v11, 4 }
 0x14a   : > { %v4182_v60 = vrot.slane %v4181_v62, 4  ;;  %v4191_v9 = vrot.slane %v4189_v44, 4  ;;  %v4194_v17 = vrot.slane %v4192_v6, 5  ;;  %v1212_v55 = vadd.f32 %v6486_v2, %v9878_v36  ;;  %v6537_v28 = vpop.f32.mrf.mxu0  ;;  %v5968_v6 = vld [vmem:[%s7084_s25 + $0xcc] sm:$0xe]  ;;  %s5440_s25 = sshll.u32 %s9957_s12, 1  ;;  %s9634_s12 = scalar_lea.vmem %s9731_s2, %s6059_s8 }
 0x14b   : > { %v9313_v51 = vadd.f32 %v1653_v13, %v1201_v38  ;;  %v9320_v10 = vrot.slane %v4198_v34, 5  ;;  %v4204_v30 = vrot.slane %v4202_v3, 4  ;;  %v1203_v48 = vpop.f32.mrf.mxu1  ;;  %v4153_v13 = vsel %vm7115_vm2, %v9282_v47, %v9251_v40  ;;  %s9506_s7 = scalar_lea.vmem %s9732_s3, %s5440_s25 }
 0x14c   : > { %v4163_v54 = vsel %vm7115_vm2, %v4158_v52, %v9284_v31  ;;  %v4705_v11 = vrot.slane %v9291_v8, 5  ;;  %v9330_v62 = vadd.f32 %v6534_v57, %v1212_v55  ;;  %v1204_v0 = vadd.f32 %v1203_v48, %v9879_v46  ;;  %v9880_v57 = vld [vmem:[#allocation8_spill] sm:$0xff] }
 0x14d   : > { %6824 = vmatmul.mubr.bf16.gmra.mxu0 %v6012_v39  ;;  %v1669_v39 = vpop.f32.mrf.mxu0  ;;  %v4699_v44 = vsel %vm7426_vm5, %v5983_v59, %v4698_v58  ;;  %v6489_v29 = vpop.f32.mrf.mxu1  ;;  %6776 = vmatmul.mubr.bf16.gmra.mxu1 %v9211_v50  ;;  %v6014_v40 = vcombine.low %v9288_v26, %v4695_v4  ;;  %v4177_v47 = vsel %vm7115_vm2, %v4172_v1, %v9271_v49  ;;  %v4208_v8 = vshll.u32 %v5912_v20, 16  ;;  %v9883_v48 = vld [vmem:[#allocation12_spill] sm:$0xff] }
 0x14e   : > { %6827 = vmatprep.mubr.bf16.mxu0 %v6013_v22  ;;  %v4702_v22 = vsel %vm7426_vm5, %v4700_v5, %v4701_v37  ;;  %v4195_v31 = vor.u32 %v4194_v17, %v4191_v9  ;;  %v9343_v33 = vadd.f32 %v1656_v21, %v1204_v0  ;;  %v1225_v34 = vadd.f32 %v6489_v29, %v9880_v57  ;;  %v9881_v37 = vld [vmem:[#allocation10_spill] sm:$0xff]  ;;  %v9882_v9 = vld [vmem:[#allocation11_spill] sm:$0xff] }
 0x14f   : > { %v6538_v58 = vpop.f32.mrf.mxu0  ;;  %6779 = vmatprep.mubr.bf16.mxu1 %v9264_v35  ;;  %v4187_v3 = vsel %vm7115_vm2, %v4182_v60, %v4186_v63  ;;  %v4205_v50 = vor.u32 %v4204_v30, %v9320_v10  ;;  %v1216_v16 = vpop.f32.mrf.mxu1  ;;  %v6015_v26 = vcombine.low %v4699_v44, %v4702_v22  ;;  %v5984_v52 = vrot.slane %v5968_v6, 9  ;;  %v9884_v44 = vld [vmem:[#allocation14_spill] sm:$0xff] }
 0x150   : > { %v4707_v4 = vrot.slane %v4705_v11, 4  ;;  %v4708_v59 = vrot.slane %v5912_v20, 5  ;;  %v9350_v49 = vadd.f32 %v6537_v28, %v1225_v34  ;;  %v1217_v43 = vadd.f32 %v1216_v16, %v9881_v37  ;;  %v9887_v37 = vld [vmem:[#allocation21_spill] sm:$0xff] }
 0x151   : > { %v1672_v38 = vpop.f32.mrf.mxu0  ;;  %v6490_v21 = vpop.f32.mrf.mxu1  ;;  %v5942_v5 = vcombine.low %v4153_v13, %v4163_v54  ;;  %v5943_v2 = vcombine.low %v4177_v47, %v4187_v3  ;;  %v4196_v1 = vrot.slane %v4195_v31, 4  ;;  %v4206_v17 = vrot.slane %v4205_v50, 4  ;;  %v9885_v47 = vld [vmem:[#allocation16_spill] sm:$0xff] }
 0x152   : > { %v9353_v35 = vadd.f32 %v1669_v39, %v1217_v43  ;;  %v1228_v63 = vadd.f32 %v6490_v21, %v9882_v9  ;;  %v4210_v36 = vrot.slane %v4208_v8, 5  ;;  %v4706_v28 = vsel %vm7426_vm5, %v5984_v52, %v4705_v11 }
 0x153   : > { %v6541_v60 = vpop.f32.mrf.mxu0  ;;  %v1219_v55 = vpop.f32.mrf.mxu1  ;;  %v4709_v20 = vsel %vm7426_vm5, %v4707_v4, %v4708_v59  ;;  %v4201_v0 = vsel %vm7115_vm2, %v4196_v1, %v9320_v10  ;;  %v9886_v10 = vld [vmem:[#allocation19_spill] sm:$0xff] }
 0x154   : > { %v9360_v30 = vadd.f32 %v6538_v58, %v1228_v63  ;;  %v1220_v13 = vadd.f32 %v1219_v55, %v9883_v48  ;;  %v4211_v56 = vsel %vm7115_vm2, %v4206_v17, %v4210_v36  ;;  %v6016_v11 = vcombine.low %v4706_v28, %v4709_v20  ;;  %v9889_v17 = vld [vmem:[#allocation23_spill] sm:$0xff]  ;;  %v9890_v20 = vld [vmem:[#allocation24_spill] sm:$0xff] }
 0x155   : > { %6828 = vmatmul.mubr.bf16.gmra.mxu0 %v6014_v40  ;;  %v1685_v54 = vpop.f32.mrf.mxu0  ;;  %v6493_v46 = vpop.f32.mrf.mxu1  ;;  %6780 = vmatmul.mubr.bf16.gmra.mxu1 %v5942_v5  ;;  %v5944_v34 = vcombine.low %v4201_v0, %v4211_v56  ;;  %v9891_v0 = vld [vmem:[#allocation25_spill] sm:$0xff] }
 0x156   : > { %6831 = vmatprep.mubr.bf16.mxu0 %v6015_v26  ;;  %v9366_v39 = vadd.f32 %v1672_v38, %v1220_v13  ;;  %v1241_v22 = vadd.f32 %v6493_v46, %v9884_v44  ;;  %6783 = vmatprep.mubr.bf16.mxu1 %v5943_v2  ;;  %v9888_v2 = vld [vmem:[#allocation22_spill] sm:$0xff] }
 0x157   : > { %v6542_v6 = vpop.f32.mrf.mxu0  ;;  %v1232_v29 = vpop.f32.mrf.mxu1 }
 0x158   : > { %v9371_v40 = vadd.f32 %v6541_v60, %v1241_v22  ;;  %v1233_v31 = vadd.f32 %v1232_v29, %v9885_v47 }
 0x159   : > { %v1688_v8 = vpop.f32.mrf.mxu0  ;;  %v6494_v57 = vpop.f32.mrf.mxu1 }
 0x15a   : > { %v9374_v58 = vadd.f32 %v1685_v54, %v1233_v31  ;;  %v1244_v3 = vadd.f32 %v6494_v57, %v9886_v10  ;;  %v9893_v57 = vld [vmem:[#allocation27_spill] sm:$0xff] }
 0x15b   : > { %v6545_v50 = vpop.f32.mrf.mxu0  ;;  %v1235_v16 = vpop.f32.mrf.mxu1 }
 0x15c   : > { %v9377_v26 = vadd.f32 %v6542_v6, %v1244_v3  ;;  %v1236_v27 = vadd.f32 %v1235_v16, %v8967_v32 }
 0x15d   : > { %6832 = vmatmul.mubr.bf16.gmra.mxu0 %v6016_v11  ;;  %v1701_v52 = vpop.f32.mrf.mxu0  ;;  %v6497_v4 = vpop.f32.mrf.mxu1  ;;  %6784 = vmatmul.mubr.bf16.gmra.mxu1 %v5944_v34  ;;  %v9892_v11 = vld [vmem:[#allocation26_spill] sm:$0xff] }
 0x15e   : > { %v9380_v59 = vadd.f32 %v1688_v8, %v1236_v27  ;;  %v1257_v43 = vadd.f32 %v6497_v4, %v9887_v37 }
 0x15f   : > { %v6546_v38 = vpop.f32.mrf.mxu0  ;;  %v1248_v21 = vpop.f32.mrf.mxu1 }
 0x160   : > { %v9383_v5 = vadd.f32 %v6545_v50, %v1257_v43  ;;  %v1249_v1 = vadd.f32 %v1248_v21, %v9888_v2 }
 0x161   : > { %v1704_v9 = vpop.f32.mrf.mxu0  ;;  %v6498_v63 = vpop.f32.mrf.mxu1 }
 0x162   : > { %v9386_v60 = vadd.f32 %v1701_v52, %v1249_v1  ;;  %v1260_v36 = vadd.f32 %v6498_v63, %v9889_v17 }
 0x163   : > { %v6613_v32 = vpop.f32.mrf.mxu0  ;;  %v1251_v55 = vpop.f32.mrf.mxu1 }
 0x164   : > { %v9389_v28 = vadd.f32 %v6546_v38, %v1260_v36  ;;  %v1252_v48 = vadd.f32 %v1251_v55, %v9890_v20 }
 0x165   : > { %v2733_v13 = vpop.f32.mrf.mxu0  ;;  %v6565_v54 = vpop.f32.mrf.mxu1 }
 0x166   : > { %v9392_v46 = vadd.f32 %v1704_v9, %v1252_v48  ;;  %v2108_v44 = vadd.f32 %v6565_v54, %v9891_v0 }
 0x167   : > { %v6614_v22 = vpop.f32.mrf.mxu0  ;;  %v1979_v6 = vpop.f32.mrf.mxu1 }
 0x168   : > { %v9395_v56 = vadd.f32 %v6613_v32, %v2108_v44  ;;  %v2106_v29 = vadd.f32 %v1979_v6, %v9892_v11 }
 0x169   : > { %v2736_v47 = vpop.f32.mrf.mxu0  ;;  %v6566_v31 = vpop.f32.mrf.mxu1 }
 0x16a   : > { %v9398_v8 = vadd.f32 %v2733_v13, %v2106_v29  ;;  %v2109_v34 = vadd.f32 %v6566_v31, %v9893_v57 }
 0x16b   : > { %v6617_v10 = vpop.f32.mrf.mxu0  ;;  %v1982_v3 = vpop.f32.mrf.mxu1 }
 0x16c   : > { %v9401_v50 = vadd.f32 %v6614_v22, %v2109_v34  ;;  %v2107_v16 = vadd.f32 %v1982_v3, %v9137_v24 }
 0x16d   : > { %v2749_v27 = vpop.f32.mrf.mxu0  ;;  %v6569_v52 = vpop.f32.mrf.mxu1 }
 0x16e   : > { %v9404_v4 = vadd.f32 %v2736_v47, %v2107_v16  ;;  %v2112_v37 = vadd.f32 %v6569_v52, %v9141_v41 }
 0x16f   : > { %v6618_v43 = vpop.f32.mrf.mxu0  ;;  %v1995_v38 = vpop.f32.mrf.mxu1 }
 0x170   : > { %v9407_v21 = vadd.f32 %v6617_v10, %v2112_v37  ;;  %v2110_v2 = vadd.f32 %v1995_v38, %v9150_v15 }
 0x171   : > { %v2752_v1 = vpop.f32.mrf.mxu0  ;;  %v6570_v9 = vpop.f32.mrf.mxu1 }
 0x172   : > { %v9410_v63 = vadd.f32 %v2749_v27, %v2110_v2  ;;  %v2113_v17 = vadd.f32 %v6570_v9, %v9176_v53 }
 0x173   : > { %v6621_v36 = vpop.f32.mrf.mxu0  ;;  %v1998_v24 = vpop.f32.mrf.mxu1 }
 0x174   : > { %v9413_v32 = vadd.f32 %v6618_v43, %v2113_v17  ;;  %v2111_v55 = vadd.f32 %v1998_v24, %v9196_v14 }
 0x175   : > { %v2765_v20 = vpop.f32.mrf.mxu0  ;;  %v6573_v41 = vpop.f32.mrf.mxu1 }
 0x176   : > { %v9416_v48 = vadd.f32 %v2752_v1, %v2111_v55  ;;  %v2116_v13 = vadd.f32 %v6573_v41, %v9204_v7 }
 0x177   : > { %v6622_v54 = vpop.f32.mrf.mxu0  ;;  %v2011_v15 = vpop.f32.mrf.mxu1 }
 0x178   : > { %v9419_v0 = vadd.f32 %v6621_v36, %v2116_v13  ;;  %v2114_v44 = vadd.f32 %v2011_v15, %v9214_v45 }
 0x179   : > { %v2768_v22 = vpop.f32.mrf.mxu0  ;;  %v6574_v53 = vpop.f32.mrf.mxu1 }
 0x17a   : > { %v9422_v6 = vadd.f32 %v2765_v20, %v2114_v44  ;;  %v2117_v11 = vadd.f32 %v6574_v53, %v9237_v23 }
 0x17b   : > { %v6625_v29 = vpop.f32.mrf.mxu0  ;;  %v2014_v14 = vpop.f32.mrf.mxu1 }
 0x17c   : > { %v9425_v47 = vadd.f32 %v6622_v54, %v2117_v11  ;;  %v2115_v31 = vadd.f32 %v2014_v14, %v9254_v18 }
 0x17d   : > { %v2781_v57 = vpop.f32.mrf.mxu0  ;;  %v6577_v7 = vpop.f32.mrf.mxu1 }
 0x17e   : > { %v9428_v34 = vadd.f32 %v2768_v22, %v2115_v31  ;;  %v2120_v10 = vadd.f32 %v6577_v7, %v9261_v42 }
 0x17f   : > { %v6626_v3 = vpop.f32.mrf.mxu0  ;;  %v2027_v45 = vpop.f32.mrf.mxu1 }
 0x180   : > { %v9431_v16 = vadd.f32 %v6625_v29, %v2120_v10  ;;  %v2118_v27 = vadd.f32 %v2027_v45, %v9273_v61 }
 0x181   : > { %v2784_v52 = vpop.f32.mrf.mxu0  ;;  %v6578_v23 = vpop.f32.mrf.mxu1 }
 0x182   : > { %v9434_v37 = vadd.f32 %v2781_v57, %v2118_v27  ;;  %v2121_v43 = vadd.f32 %v6578_v23, %v9293_v19 }
 0x183   : > { %v6629_v38 = vpop.f32.mrf.mxu0  ;;  %v2030_v18 = vpop.f32.mrf.mxu1 }
 0x184   : > { %v9437_v2 = vadd.f32 %v6626_v3, %v2121_v43  ;;  %v2119_v1 = vadd.f32 %v2030_v18, %v9301_v12 }
 0x185   : > { %v2797_v9 = vpop.f32.mrf.mxu0  ;;  %v6581_v42 = vpop.f32.mrf.mxu1 }
 0x186   : > { %v9440_v17 = vadd.f32 %v2784_v52, %v2119_v1  ;;  %v2124_v36 = vadd.f32 %v6581_v42, %v9310_v25 }
 0x187   : > { %v6630_v24 = vpop.f32.mrf.mxu0  ;;  %v2043_v61 = vpop.f32.mrf.mxu1 }
 0x188   : > { %v9443_v55 = vadd.f32 %v6629_v38, %v2124_v36  ;;  %v2122_v20 = vadd.f32 %v2043_v61, %v9313_v51 }
 0x189   : > { %v2800_v41 = vpop.f32.mrf.mxu0  ;;  %v6582_v19 = vpop.f32.mrf.mxu1 }
 0x18a   : > { %v9446_v13 = vadd.f32 %v2797_v9, %v2122_v20  ;;  %v2125_v54 = vadd.f32 %v6582_v19, %v9330_v62 }
 0x18b   : > { %v6633_v15 = vpop.f32.mrf.mxu0  ;;  %v2046_v12 = vpop.f32.mrf.mxu1 }
 0x18c   : > { %v9449_v44 = vadd.f32 %v6630_v24, %v2125_v54  ;;  %v2123_v22 = vadd.f32 %v2046_v12, %v9343_v33 }
 0x18d   : > { %v2813_v53 = vpop.f32.mrf.mxu0  ;;  %v6585_v25 = vpop.f32.mrf.mxu1 }
 0x18e   : > { %v9452_v11 = vadd.f32 %v2800_v41, %v2123_v22  ;;  %v2128_v29 = vadd.f32 %v6585_v25, %v9350_v49 }
 0x18f   : > { %v6634_v14 = vpop.f32.mrf.mxu0  ;;  %v2059_v51 = vpop.f32.mrf.mxu1 }
 0x190   : > { %v9455_v31 = vadd.f32 %v6633_v15, %v2128_v29  ;;  %v2126_v57 = vadd.f32 %v2059_v51, %v9353_v35 }
 0x191   : > { %v2816_v7 = vpop.f32.mrf.mxu0  ;;  %v6586_v62 = vpop.f32.mrf.mxu1 }
 0x192   : > { %v9458_v10 = vadd.f32 %v2813_v53, %v2126_v57  ;;  %v2129_v3 = vadd.f32 %v6586_v62, %v9360_v30 }
 0x193   : > { %v6637_v45 = vpop.f32.mrf.mxu0  ;;  %v2062_v33 = vpop.f32.mrf.mxu1 }
 0x194   : > { %9894 = vst [vmem:[#allocation3_spill] sm:$0xff] %v9458_v10  ;;  %v9461_v27 = vadd.f32 %v6634_v14, %v2129_v3  ;;  %v2127_v52 = vadd.f32 %v2062_v33, %v9366_v39 }
 0x195   : > { %v2829_v23 = vpop.f32.mrf.mxu0  ;;  %v6589_v49 = vpop.f32.mrf.mxu1 }
 0x196   : > { %9895 = vst [vmem:[#allocation7_spill] sm:$0xff] %v9461_v27  ;;  %v9464_v43 = vadd.f32 %v2816_v7, %v2127_v52  ;;  %v2132_v38 = vadd.f32 %v6589_v49, %v9371_v40 }
 0x197   : > { %v6638_v18 = vpop.f32.mrf.mxu0  ;;  %v2075_v35 = vpop.f32.mrf.mxu1 }
 0x198   : > { %9896 = vst [vmem:[#allocation9_spill] sm:$0xff] %v9464_v43  ;;  %v9467_v1 = vadd.f32 %v6637_v45, %v2132_v38  ;;  %v2130_v9 = vadd.f32 %v2075_v35, %v9374_v58 }
 0x199   : > { %v2832_v42 = vpop.f32.mrf.mxu0  ;;  %v6590_v30 = vpop.f32.mrf.mxu1 }
 0x19a   : > { %v9470_v36 = vadd.f32 %v2829_v23, %v2130_v9  ;;  %v2133_v24 = vadd.f32 %v6590_v30, %v9377_v26 }
 0x19b   : > { %v6641_v61 = vpop.f32.mrf.mxu0  ;;  %v2078_v39 = vpop.f32.mrf.mxu1 }
 0x19c   : > { %9897 = vst [vmem:[#allocation18_spill] sm:$0xff] %v9470_v36  ;;  %v9473_v20 = vadd.f32 %v6638_v18, %v2133_v24  ;;  %v2131_v41 = vadd.f32 %v2078_v39, %v9380_v59  ;;  %v7030_v18 = vmov 0.0  }
 0x19d   : > { %v2845_v19 = vpop.f32.mrf.mxu0  ;;  %v6593_v40 = vpop.f32.mrf.mxu1  ;;  %212 = vst [vmem:[%s9506_s7] sm:$0x3] %v7030_v18 }
 0x19e   : > { %9898 = vst [vmem:[#allocation13_spill] sm:$0xff] %v9473_v20  ;;  %v9476_v54 = vadd.f32 %v2832_v42, %v2131_v41  ;;  %v2136_v15 = vadd.f32 %v6593_v40, %v9383_v5 }
 0x19f   : > { %v6642_v12 = vpop.f32.mrf.mxu0  ;;  %v2091_v58 = vpop.f32.mrf.mxu1 }
 0x1a0   : > { %9899 = vst [vmem:[#allocation15_spill] sm:$0xff] %v9476_v54  ;;  %v9479_v22 = vadd.f32 %v6641_v61, %v2136_v15  ;;  %v2134_v53 = vadd.f32 %v2091_v58, %v9386_v60 }
 0x1a1   : > { %v2848_v25 = vpop.f32.mrf.mxu0  ;;  %v6594_v26 = vpop.f32.mrf.mxu1 }
 0x1a2   : > { %v9482_v29 = vadd.f32 %v2845_v19, %v2134_v53  ;;  %v2137_v14 = vadd.f32 %v6594_v26, %v9389_v28 }
 0x1a3   : > { %v6709_v59 = vpop.f32.mrf.mxu0  ;;  %v2094_v51 = vpop.f32.mrf.mxu1 }
 0x1a4   : > { %9900 = vst [vmem:[#allocation17_spill] sm:$0xff] %v9482_v29  ;;  %v9485_v57 = vadd.f32 %v6642_v12, %v2137_v14  ;;  %v2135_v7 = vadd.f32 %v2094_v51, %v9392_v46 }
 0x1a5   : > { %v3621_v5 = vpop.f32.mrf.mxu0  ;;  %v6661_v62 = vpop.f32.mrf.mxu1 }
 0x1a6   : > { %9901 = vst [vmem:[#allocation20_spill] sm:$0xff] %v9485_v57  ;;  %v9488_v3 = vadd.f32 %v2848_v25, %v2135_v7  ;;  %v3360_v45 = vadd.f32 %v6661_v62, %v9395_v56 }
 0x1a7   : > { %v9491_v60 = vpop.f32.mrf.mxu0  ;;  %v3231_v33 = vpop.f32.mrf.mxu1 }
 0x1a8   : > { %9902 = vst [vmem:[#allocation2_spill] sm:$0xff] %v9488_v3  ;;  %v9493_v52 = vadd.f32 %v6709_v59, %v3360_v45  ;;  %v3358_v23 = vadd.f32 %v3231_v33, %v9398_v8 }
 0x1a9   : > { %v9496_v28 = vpop.f32.mrf.mxu0  ;;  %v9498_v49 = vpop.f32.mrf.mxu1 }
 0x1aa   : > { %v9501_v38 = vadd.f32 %v3621_v5, %v3358_v23 }
 0x1ab   : > { %v6713_v46 = vpop.f32.mrf.mxu0  ;;  %v9508_v56 = vpop.f32.mrf.mxu1 }
 0x1ad   : > { %v9511_v35 = vpop.f32.mrf.mxu0  ;;  %v6665_v8 = vpop.f32.mrf.mxu1 }
 0x1ae   : > { %v3364_v9 = vadd.f32 %v6665_v8, %v9407_v21 }
 0x1af   : > { %v9514_v42 = vpop.f32.mrf.mxu0  ;;  %v9516_v30 = vpop.f32.mrf.mxu1 }
 0x1b0   : > { %v9518_v24 = vadd.f32 %v6713_v46, %v3364_v9 }
 0x1b1   : > { %v9520_v61 = vpop.f32.mrf.mxu0  ;;  %v9522_v39 = vpop.f32.mrf.mxu1 }
 0x1b3   : > { %v6717_v41 = vpop.f32.mrf.mxu0  ;;  %v9524_v19 = vpop.f32.mrf.mxu1 }
 0x1b5   : > { %v9526_v40 = vpop.f32.mrf.mxu0  ;;  %v6669_v15 = vpop.f32.mrf.mxu1 }
 0x1b6   : > { %v3368_v12 = vadd.f32 %v6669_v15, %v9419_v0 }
 0x1b7   : > { %v9529_v58 = vpop.f32.mrf.mxu0  ;;  %v9531_v21 = vpop.f32.mrf.mxu1 }
 0x1b8   : > { %v9533_v53 = vadd.f32 %v6717_v41, %v3368_v12 }
 0x1b9   : > { %v9535_v25 = vpop.f32.mrf.mxu0  ;;  %v9537_v26 = vpop.f32.mrf.mxu1 }
 0x1bb   : > { %v6721_v14 = vpop.f32.mrf.mxu0  ;;  %v9539_v59 = vpop.f32.mrf.mxu1 }
 0x1bd   : > { %v9541_v51 = vpop.f32.mrf.mxu0  ;;  %v6673_v7 = vpop.f32.mrf.mxu1 }
 0x1be   : > { %v3372_v5 = vadd.f32 %v6673_v7, %v9431_v16 }
 0x1bf   : > { %v9544_v62 = vpop.f32.mrf.mxu0  ;;  %v9546_v0 = vpop.f32.mrf.mxu1 }
 0x1c0   : > { %v9548_v45 = vadd.f32 %v6721_v14, %v3372_v5 }
 0x1c1   : > { %v9550_v33 = vpop.f32.mrf.mxu0  ;;  %v9552_v23 = vpop.f32.mrf.mxu1 }
 0x1c3   : > { %v6725_v46 = vpop.f32.mrf.mxu0  ;;  %v9554_v18 = vpop.f32.mrf.mxu1 }
 0x1c5   : > { %v9556_v8 = vpop.f32.mrf.mxu0  ;;  %v6677_v9 = vpop.f32.mrf.mxu1 }
 0x1c6   : > { %v3376_v41 = vadd.f32 %v6677_v9, %v9443_v55 }
 0x1c7   : > { %v9559_v15 = vpop.f32.mrf.mxu0  ;;  %v9561_v16 = vpop.f32.mrf.mxu1 }
 0x1c8   : > { %v9563_v12 = vadd.f32 %v6725_v46, %v3376_v41 }
 0x1c9   : > { %v9565_v14 = vpop.f32.mrf.mxu0  ;;  %v9567_v7 = vpop.f32.mrf.mxu1 }
 0x1ca   : > { %9903 = vst [vmem:[#allocation5_spill] sm:$0xff] %v9565_v14 }
 0x1cb   : > { %v6729_v5 = vpop.f32.mrf.mxu0  ;;  %v9569_v3 = vpop.f32.mrf.mxu1 }
 0x1cd   : > { %v9571_v57 = vpop.f32.mrf.mxu0  ;;  %v6681_v29 = vpop.f32.mrf.mxu1 }
 0x1ce   : > { %9904 = vst [vmem:[#allocation4_spill] sm:$0xff] %v9571_v57  ;;  %v3380_v54 = vadd.f32 %v6681_v29, %v9455_v31 }
 0x1cf   : > { %v9574_v20 = vpop.f32.mrf.mxu0  ;;  %v9576_v55 = vpop.f32.mrf.mxu1 }
 0x1d0   : > { %9905 = vst [vmem:[#allocation6_spill] sm:$0xff] %v9574_v20  ;;  %v9578_v9 = vadd.f32 %v6729_v5, %v3380_v54 }
 0x1d1   : > { %v9580_v46 = vpop.f32.mrf.mxu0  ;;  %v9582_v41 = vpop.f32.mrf.mxu1 }
 0x1d2   : > { %9906 = vst [vmem:[#allocation8_spill] sm:$0xff] %v9578_v9  ;;  %9907 = vst [vmem:[#allocation10_spill] sm:$0xff] %v9580_v46 }
 0x1d3   : > { %9908 = vst [vmem:[#allocation11_spill] sm:$0xff] %v9582_v41  ;;  %v6733_v36 = vpop.f32.mrf.mxu0  ;;  %v9584_v43 = vpop.f32.mrf.mxu1 }
 0x1d4   : > { %9909 = vst [vmem:[#allocation12_spill] sm:$0xff] %v9584_v43 }
 0x1d5   : > { %v9586_v27 = vpop.f32.mrf.mxu0  ;;  %v6685_v10 = vpop.f32.mrf.mxu1 }
 0x1d6   : > { %9910 = vst [vmem:[#allocation14_spill] sm:$0xff] %v9586_v27  ;;  %v3384_v57 = vadd.f32 %v6685_v10, %v9467_v1 }
 0x1d7   : > { %v9589_v14 = vpop.f32.mrf.mxu0  ;;  %v9591_v31 = vpop.f32.mrf.mxu1 }
 0x1d8   : > { %9911 = vst [vmem:[#allocation16_spill] sm:$0xff] %v9589_v14  ;;  %v9593_v29 = vadd.f32 %v6733_v36, %v3384_v57 }
 0x1d9   : > { %v9595_v54 = vpop.f32.mrf.mxu0  ;;  %v9597_v5 = vpop.f32.mrf.mxu1 }
 0x1da   : > { %9912 = vst [vmem:[#allocation19_spill] sm:$0xff] %v9593_v29  ;;  %9913 = vst [vmem:[#allocation21_spill] sm:$0xff] %v9595_v54 }
 0x1db   : > { %9914 = vst [vmem:[#allocation22_spill] sm:$0xff] %v9597_v5  ;;  %v6737_v46 = vpop.f32.mrf.mxu0  ;;  %v9599_v9 = vpop.f32.mrf.mxu1 }
 0x1dc   : > { %9915 = vst [vmem:[#allocation23_spill] sm:$0xff] %v9599_v9 }
 0x1dd   : > { %v9601_v20 = vpop.f32.mrf.mxu0  ;;  %v6689_v43 = vpop.f32.mrf.mxu1 }
 0x1de   : > { %9916 = vst [vmem:[#allocation24_spill] sm:$0xff] %v9601_v20  ;;  %v3388_v27 = vadd.f32 %v6689_v43, %v9479_v22  ;;  %v3361_v20 = vadd.f32 %v9498_v49, %v9401_v50  ;;  %v3359_v43 = vadd.f32 %v9508_v56, %v9404_v4  ;;  %v3362_v49 = vadd.f32 %v9516_v30, %v9410_v63 }
 0x1df   : > { %v9604_v41 = vpop.f32.mrf.mxu0  ;;  %v9606_v10 = vpop.f32.mrf.mxu1  ;;  %v3365_v4 = vadd.f32 %v9522_v39, %v9413_v32 }
 0x1e0   : > { %9917 = vst [vmem:[#allocation25_spill] sm:$0xff] %v9604_v41  ;;  %9918 = vst [vmem:[#allocation26_spill] sm:$0xff] %v9606_v10  ;;  %v9608_v1 = vadd.f32 %v6737_v46, %v3388_v27  ;;  %v3751_v27 = vadd.f32 %v9491_v60, %v3361_v20  ;;  %v3752_v32 = vadd.f32 %v9511_v35, %v3362_v49 }
 0x1e1   : > { %v9610_v36 = vpop.f32.mrf.mxu0  ;;  %v9612_v57 = vpop.f32.mrf.mxu1  ;;  %v3755_v39 = vadd.f32 %v9514_v42, %v3365_v4  ;;  %v3369_v49 = vadd.f32 %v9537_v26, %v9425_v47 }
 0x1e2   : > { %9919 = vst [vmem:[#allocation27_spill] sm:$0xff] %v9608_v1  ;;  %9920 = vst [vmem:[#allocation28_spill] sm:$0xff] %v9610_v36 }
 0x1e3   : > { %9921 = vst [vmem:[#allocation29_spill] sm:$0xff] %v9612_v57  ;;  %v9614_v29 = vpop.f32.mrf.mxu1 }
 0x1e4   : > { %v6805_v54 = vpop.f32.mrf.mxu0  ;;  %9922 = vst [vmem:[#allocation30_spill] sm:$0xff] %v9614_v29  ;;  %v3749_v29 = vadd.f32 %v9496_v28, %v3359_v43 }
 0x1e5   : > { %v6757_v9 = vpop.f32.mrf.mxu1 }
 0x1e6   : > { %v4873_v14 = vpop.f32.mrf.mxu0  ;;  %v4504_v46 = vadd.f32 %v6757_v9, %v9493_v52 }
 0x1e7   : > { %v4375_v41 = vpop.f32.mrf.mxu1 }
 0x1e8   : > { %v6806_v22 = vpop.f32.mrf.mxu0  ;;  %v4502_v36 = vadd.f32 %v4375_v41, %v9501_v38  ;;  %v5002_v5 = vadd.f32 %v6805_v54, %v4504_v46  ;;  %v3363_v38 = vadd.f32 %v9524_v19, %v9416_v48 }
 0x1e9   : > { %v6758_v57 = vpop.f32.mrf.mxu1 }
 0x1ea   : > { %v4876_v1 = vpop.f32.mrf.mxu0  ;;  %v4505_v10 = vadd.f32 %v6758_v57, %v3751_v27  ;;  %v5000_v20 = vadd.f32 %v4873_v14, %v4502_v36  ;;  %v3753_v57 = vadd.f32 %v9520_v61, %v3363_v38  ;;  %v5235_v27 = vmul.f32 %v5002_v5, %v5002_v5 }
 0x1eb   : > { %v4378_v56 = vpop.f32.mrf.mxu1 }
 0x1ec   : > { %v6809_v50 = vpop.f32.mrf.mxu0  ;;  %v5003_v60 = vadd.f32 %v6806_v22, %v4505_v10  ;;  %v4503_v52 = vadd.f32 %v4378_v56, %v3749_v29  ;;  %v5233_v54 = vmul.f32 %v5000_v20, %v5000_v20 }
 0x1ed   : > { %v6761_v28 = vpop.f32.mrf.mxu1 }
 0x1ee   : > { %v4889_v9 = vpop.f32.mrf.mxu0  ;;  %v6100_v63 = vpack.c.bf16 %v5003_v60, %v5002_v5  ;;  %v5001_v30 = vadd.f32 %v4876_v1, %v4503_v52  ;;  %v4508_v14 = vadd.f32 %v6761_v28, %v9518_v24  ;;  %v3366_v1 = vadd.f32 %v9531_v21, %v9422_v6 }
 0x1ef   : > { %v4391_v29 = vpop.f32.mrf.mxu1  ;;  %v5236_v4 = vmul.f32 %v5003_v60, %v5003_v60 }
 0x1f0   : > { %v6810_v41 = vpop.f32.mrf.mxu0  ;;  %6172 = vst [vmem:[%s9634_s12 + $0x8] sm:$0xff] %v6100_v63   ;;  %v6095_v48 = vpack.c.bf16 %v5001_v30, %v5000_v20  ;;  %v5193_v19 = vadd.f32 %v5001_v30, %v5000_v20  ;;  %v5234_v10 = vmul.f32 %v5001_v30, %v5001_v30  ;;  %v4506_v43 = vadd.f32 %v4391_v29, %v3752_v32 }
 0x1f1   : > { %v6762_v22 = vpop.f32.mrf.mxu1  ;;  %v5006_v56 = vadd.f32 %v6809_v50, %v4508_v14  ;;  %v3756_v63 = vadd.f32 %v9526_v40, %v3366_v1  ;;  %v3759_v14 = vadd.f32 %v9529_v58, %v3369_v49 }
 0x1f2   : > { %v4892_v36 = vpop.f32.mrf.mxu0  ;;  %6096 = vst [vmem:[%s9634_s12] sm:$0xff] %v6095_v48   ;;  %v5194_v35 = vadd.f32 %v5193_v19, %v5002_v5  ;;  %v5265_v42 = vadd.f32 %v5234_v10, %v5233_v54  ;;  %v4509_v46 = vadd.f32 %v6762_v22, %v3755_v39  ;;  %v5004_v20 = vadd.f32 %v4889_v9, %v4506_v43 }
 0x1f3   : > { %v4394_v52 = vpop.f32.mrf.mxu1  ;;  %v3367_v5 = vadd.f32 %v9539_v59, %v9428_v34  ;;  %v5239_v43 = vmul.f32 %v5006_v56, %v5006_v56 }
 0x1f4   : > { %v6813_v24 = vpop.f32.mrf.mxu0  ;;  %v5266_v28 = vadd.f32 %v5265_v42, %v5235_v27  ;;  %v5195_v61 = vadd.f32 %v5194_v35, %v5003_v60  ;;  %v5007_v38 = vadd.f32 %v6810_v41, %v4509_v46  ;;  %v4507_v6 = vadd.f32 %v4394_v52, %v3753_v57 }
 0x1f5   : > { %v6765_v30 = vpop.f32.mrf.mxu1  ;;  %v5237_v39 = vmul.f32 %v5004_v20, %v5004_v20  ;;  %v3757_v10 = vadd.f32 %v9535_v25, %v3367_v5  ;;  %v3370_v57 = vadd.f32 %v9546_v0, %v9434_v37 }
 0x1f6   : > { %v4905_v21 = vpop.f32.mrf.mxu0  ;;  %v5196_v32 = vadd.f32 %v5195_v61, %v5004_v20  ;;  %v5267_v29 = vadd.f32 %v5266_v28, %v5236_v4  ;;  %v6110_v47 = vpack.c.bf16 %v5007_v38, %v5006_v56  ;;  %v5005_v50 = vadd.f32 %v4892_v36, %v4507_v6 }
 0x1f7   : > { %v4407_v9 = vpop.f32.mrf.mxu1  ;;  %v4512_v41 = vadd.f32 %v6765_v30, %v9533_v53  ;;  %v3373_v36 = vadd.f32 %v9552_v23, %v9437_v2  ;;  %v5240_v25 = vmul.f32 %v5007_v38, %v5007_v38  ;;  %v3760_v0 = vadd.f32 %v9541_v51, %v3370_v57 }
 0x1f8   : > { %v6814_v26 = vpop.f32.mrf.mxu0  ;;  %v5268_v60 = vadd.f32 %v5267_v29, %v5237_v39  ;;  %6174 = vst [vmem:[%s9634_s12 + $0x18] sm:$0xff] %v6110_v47   ;;  %v4510_v54 = vadd.f32 %v4407_v9, %v3756_v63  ;;  %v6105_v48 = vpack.c.bf16 %v5005_v50, %v5004_v20  ;;  %v5197_v19 = vadd.f32 %v5196_v32, %v5005_v50 }
 0x1f9   : > { %v5238_v34 = vmul.f32 %v5005_v50, %v5005_v50  ;;  %v6766_v59 = vpop.f32.mrf.mxu1  ;;  %v5010_v42 = vadd.f32 %v6813_v24, %v4512_v41  ;;  %v3371_v2 = vadd.f32 %v9554_v18, %v9440_v17  ;;  %v3763_v61 = vadd.f32 %v9544_v62, %v3373_v36 }
 0x1fa   : > { %v4908_v40 = vpop.f32.mrf.mxu0  ;;  %v4513_v58 = vadd.f32 %v6766_v59, %v3759_v14  ;;  %6173 = vst [vmem:[%s9634_s12 + $0x10] sm:$0xff] %v6105_v48   ;;  %v5198_v22 = vadd.f32 %v5197_v19, %v5006_v56  ;;  %v5008_v27 = vadd.f32 %v4905_v21, %v4510_v54  ;;  %v3374_v62 = vadd.f32 %v9561_v16, %v9446_v13 }
 0x1fb   : > { %v5269_v53 = vadd.f32 %v5268_v60, %v5238_v34  ;;  %v4410_v35 = vpop.f32.mrf.mxu1  ;;  %v3761_v18 = vadd.f32 %v9550_v33, %v3371_v2  ;;  %v3377_v47 = vadd.f32 %v9567_v7, %v9449_v44  ;;  %v5243_v9 = vmul.f32 %v5010_v42, %v5010_v42 }
 0x1fc   : > { %v6817_v1 = vpop.f32.mrf.mxu0  ;;  %v5011_v46 = vadd.f32 %v6814_v26, %v4513_v58  ;;  %v4511_v49 = vadd.f32 %v4410_v35, %v3757_v10  ;;  %v5199_v52 = vadd.f32 %v5198_v22, %v5007_v38  ;;  %v5241_v24 = vmul.f32 %v5008_v27, %v5008_v27 }
 0x1fd   : > { %v5270_v20 = vadd.f32 %v5269_v53, %v5239_v43  ;;  %v6769_v37 = vpop.f32.mrf.mxu1  ;;  %v3764_v16 = vadd.f32 %v9556_v8, %v3374_v62  ;;  %v3375_v44 = vadd.f32 %v9569_v3, %v9452_v11  ;;  %v3767_v36 = vadd.f32 %v9559_v15, %v3377_v47  ;;  %v9923_v3 = vld [vmem:[#allocation5_spill] sm:$0xff] }
 0x1fe   : > { %v4921_v4 = vpop.f32.mrf.mxu0  ;;  %v6120_v23 = vpack.c.bf16 %v5011_v46, %v5010_v42  ;;  %v5009_v28 = vadd.f32 %v4908_v40, %v4511_v49  ;;  %v5200_v6 = vadd.f32 %v5199_v52, %v5008_v27  ;;  %v4516_v38 = vadd.f32 %v6769_v37, %v9548_v45  ;;  %v9926_v52 = vld [vmem:[#allocation11_spill] sm:$0xff] }
 0x1ff   : > { %v5271_v21 = vadd.f32 %v5270_v20, %v5240_v25  ;;  %v4423_v63 = vpop.f32.mrf.mxu1  ;;  %v5244_v33 = vmul.f32 %v5011_v46, %v5011_v46  ;;  %v9924_v25 = vld [vmem:[#allocation3_spill] sm:$0xff] }
 0x200   : > { %v6818_v56 = vpop.f32.mrf.mxu0  ;;  %6176 = vst [vmem:[%s9634_s12 + $0x28] sm:$0xff] %v6120_v23   ;;  %v6115_v5 = vpack.c.bf16 %v5009_v28, %v5008_v27  ;;  %v5242_v30 = vmul.f32 %v5009_v28, %v5009_v28  ;;  %v4514_v32 = vadd.f32 %v4423_v63, %v3760_v0  ;;  %v5201_v29 = vadd.f32 %v5200_v6, %v5009_v28  ;;  %v9925_v20 = vld [vmem:[#allocation7_spill] sm:$0xff] }
 0x201   : > { %v5272_v39 = vadd.f32 %v5271_v21, %v5241_v24  ;;  %v6770_v17 = vpop.f32.mrf.mxu1  ;;  %v5014_v54 = vadd.f32 %v6817_v1, %v4516_v38  ;;  %v3378_v15 = vadd.f32 %v9576_v55, %v9924_v25  ;;  %v3381_v37 = vadd.f32 %v9926_v52, %v9925_v20  ;;  %v9937_v52 = vld [vmem:[#allocation15_spill] sm:$0xff] }
 0x202   : > { %v4924_v51 = vpop.f32.mrf.mxu0  ;;  %6175 = vst [vmem:[%s9634_s12 + $0x20] sm:$0xff] %v6115_v5   ;;  %v4517_v26 = vadd.f32 %v6770_v17, %v3763_v61  ;;  %v5202_v14 = vadd.f32 %v5201_v29, %v5010_v42  ;;  %v5012_v45 = vadd.f32 %v4921_v4, %v4514_v32  ;;  %v3765_v4 = vadd.f32 %v9923_v3, %v3375_v44  ;;  %v9927_v32 = vld [vmem:[#allocation4_spill] sm:$0xff] }
 0x203   : > { %v5273_v60 = vadd.f32 %v5272_v39, %v5242_v30  ;;  %v4426_v41 = vpop.f32.mrf.mxu1  ;;  %v5247_v23 = vmul.f32 %v5014_v54, %v5014_v54  ;;  %v9928_v39 = vld [vmem:[#allocation9_spill] sm:$0xff]  ;;  %v9929_v29 = vld [vmem:[#allocation12_spill] sm:$0xff] }
 0x204   : > { %v5015_v40 = vadd.f32 %v6818_v56, %v4517_v26  ;;  %v4515_v48 = vadd.f32 %v4426_v41, %v3761_v18  ;;  %v5203_v59 = vadd.f32 %v5202_v14, %v5011_v46  ;;  %v5245_v1 = vmul.f32 %v5012_v45, %v5012_v45  ;;  %v9930_v26 = vld [vmem:[#allocation6_spill] sm:$0xff] }
 0x205   : > { %v6821_v50 = vpop.f32.mrf.mxu0  ;;  %v5274_v34 = vadd.f32 %v5273_v60, %v5243_v9  ;;  %v6773_v13 = vpop.f32.mrf.mxu1  ;;  %v3379_v17 = vadd.f32 %v9929_v29, %v9928_v39  ;;  %v3771_v9 = vadd.f32 %v9930_v26, %v3381_v37  ;;  %v9938_v37 = vld [vmem:[#allocation23_spill] sm:$0xff] }
 0x206   : > { %v6130_v7 = vpack.c.bf16 %v5015_v40, %v5014_v54  ;;  %v5013_v10 = vadd.f32 %v4924_v51, %v4515_v48  ;;  %v5204_v58 = vadd.f32 %v5203_v59, %v5012_v45  ;;  %v4520_v35 = vadd.f32 %v6773_v13, %v9563_v12 }
 0x207   : > { %v4937_v19 = vpop.f32.mrf.mxu0  ;;  %v5275_v43 = vadd.f32 %v5274_v34, %v5244_v33  ;;  %v4439_v22 = vpop.f32.mrf.mxu1  ;;  %v5248_v5 = vmul.f32 %v5015_v40, %v5015_v40  ;;  %v3768_v51 = vadd.f32 %v9927_v32, %v3378_v15  ;;  %v9936_v15 = vld [vmem:[#allocation14_spill] sm:$0xff] }
 0x208   : > { %6178 = vst [vmem:[%s9634_s12 + $0x38] sm:$0xff] %v6130_v7   ;;  %v6125_v53 = vpack.c.bf16 %v5013_v10, %v5012_v45  ;;  %v5246_v27 = vmul.f32 %v5013_v10, %v5013_v10  ;;  %v4518_v42 = vadd.f32 %v4439_v22, %v3764_v16  ;;  %v5205_v49 = vadd.f32 %v5204_v58, %v5013_v10  ;;  %v9932_v16 = vld [vmem:[#allocation10_spill] sm:$0xff] }
 0x209   : > { %v6822_v57 = vpop.f32.mrf.mxu0  ;;  %v5276_v46 = vadd.f32 %v5275_v43, %v5245_v1  ;;  %v6774_v11 = vpop.f32.mrf.mxu1  ;;  %v5018_v6 = vadd.f32 %v6821_v50, %v4520_v35  ;;  %v3769_v44 = vadd.f32 %v9932_v16, %v3379_v17  ;;  %v9933_v7 = vld [vmem:[#allocation18_spill] sm:$0xff]  ;;  %v9941_v17 = vld [vmem:[#allocation21_spill] sm:$0xff] }
 0x20a   : > { %6177 = vst [vmem:[%s9634_s12 + $0x30] sm:$0xff] %v6125_v53   ;;  %v4521_v0 = vadd.f32 %v6774_v11, %v3767_v36  ;;  %v5206_v28 = vadd.f32 %v5205_v49, %v5014_v54  ;;  %v5016_v12 = vadd.f32 %v4937_v19, %v4518_v42  ;;  %v3382_v10 = vadd.f32 %v9591_v31, %v9933_v7  ;;  %v9935_v36 = vld [vmem:[#allocation22_spill] sm:$0xff] }
 0x20b   : > { %v4940_v8 = vpop.f32.mrf.mxu0  ;;  %v5277_v56 = vadd.f32 %v5276_v46, %v5246_v27  ;;  %v4442_v61 = vpop.f32.mrf.mxu1  ;;  %v5251_v22 = vmul.f32 %v5018_v6, %v5018_v6 }
 0x20c   : > { %v5019_v24 = vadd.f32 %v6822_v57, %v4521_v0  ;;  %v4519_v21 = vadd.f32 %v4442_v61, %v3765_v4  ;;  %v5207_v38 = vadd.f32 %v5206_v28, %v5015_v40  ;;  %v5249_v50 = vmul.f32 %v5016_v12, %v5016_v12  ;;  %v9931_v40 = vld [vmem:[#allocation8_spill] sm:$0xff]  ;;  %v9934_v57 = vld [vmem:[#allocation13_spill] sm:$0xff] }
 0x20d   : > { %v6825_v2 = vpop.f32.mrf.mxu0  ;;  %v5278_v30 = vadd.f32 %v5277_v56, %v5247_v23  ;;  %v6777_v55 = vpop.f32.mrf.mxu1  ;;  %v3385_v58 = vadd.f32 %v9935_v36, %v9934_v57  ;;  %v3772_v20 = vadd.f32 %v9936_v15, %v3382_v10  ;;  %v3383_v0 = vadd.f32 %v9938_v37, %v9937_v52  ;;  %v9946_v57 = vld [vmem:[#allocation24_spill] sm:$0xff] }
 0x20e   : > { %v6140_v18 = vpack.c.bf16 %v5019_v24, %v5018_v6  ;;  %v5017_v62 = vadd.f32 %v4940_v8, %v4519_v21  ;;  %v5208_v14 = vadd.f32 %v5207_v38, %v5016_v12  ;;  %v4524_v48 = vadd.f32 %v6777_v55, %v9931_v40 }
 0x20f   : > { %v4953_v63 = vpop.f32.mrf.mxu0  ;;  %v5279_v60 = vadd.f32 %v5278_v30, %v5248_v5  ;;  %v4455_v45 = vpop.f32.mrf.mxu1  ;;  %v5252_v3 = vmul.f32 %v5019_v24, %v5019_v24 }
 0x210   : > { %6180 = vst [vmem:[%s9634_s12 + $0x48] sm:$0xff] %v6140_v18   ;;  %v6135_v41 = vpack.c.bf16 %v5017_v62, %v5016_v12  ;;  %v5250_v54 = vmul.f32 %v5017_v62, %v5017_v62  ;;  %v4522_v19 = vadd.f32 %v4455_v45, %v3768_v51  ;;  %v5209_v59 = vadd.f32 %v5208_v14, %v5017_v62  ;;  %v9939_v12 = vld [vmem:[#allocation16_spill] sm:$0xff]  ;;  %v9942_v62 = vld [vmem:[#allocation17_spill] sm:$0xff] }
 0x211   : > { %v6826_v47 = vpop.f32.mrf.mxu0  ;;  %v5280_v34 = vadd.f32 %v5279_v60, %v5249_v50  ;;  %v6778_v13 = vpop.f32.mrf.mxu1  ;;  %v5022_v8 = vadd.f32 %v6825_v2, %v4524_v48  ;;  %v3775_v61 = vadd.f32 %v9939_v12, %v3385_v58  ;;  %v3773_v18 = vadd.f32 %v9941_v17, %v3383_v0  ;;  %v9945_v14 = vld [vmem:[#allocation29_spill] sm:$0xff]  ;;  %v9947_v58 = vld [vmem:[#allocation2_spill] sm:$0xff]  ;;  %v9951_v0 = vld [vmem:[#allocation28_spill] sm:$0xff] }
 0x212   : > { %6179 = vst [vmem:[%s9634_s12 + $0x40] sm:$0xff] %v6135_v41   ;;  %v4525_v1 = vadd.f32 %v6778_v13, %v3771_v9  ;;  %v5210_v53 = vadd.f32 %v5209_v59, %v5018_v6  ;;  %v5020_v35 = vadd.f32 %v4953_v63, %v4522_v19  ;;  %v9944_v9 = vld [vmem:[#allocation20_spill] sm:$0xff] }
 0x213   : > { %v4956_v33 = vpop.f32.mrf.mxu0  ;;  %v5281_v27 = vadd.f32 %v5280_v34, %v5250_v54  ;;  %v4458_v42 = vpop.f32.mrf.mxu1  ;;  %v3389_v50 = vadd.f32 %v9945_v14, %v9944_v9  ;;  %v5255_v41 = vmul.f32 %v5022_v8, %v5022_v8 }
 0x214   : > { %v5023_v46 = vadd.f32 %v6826_v47, %v4525_v1  ;;  %v4523_v49 = vadd.f32 %v4458_v42, %v3769_v44  ;;  %v5211_v25 = vadd.f32 %v5210_v53, %v5019_v24  ;;  %v5253_v2 = vmul.f32 %v5020_v35, %v5020_v35  ;;  %v9940_v24 = vld [vmem:[#allocation19_spill] sm:$0xff]  ;;  %v9943_v47 = vld [vmem:[#allocation26_spill] sm:$0xff] }
 0x215   : > { %v6829_v43 = vpop.f32.mrf.mxu0  ;;  %v5282_v4 = vadd.f32 %v5281_v27, %v5251_v22  ;;  %v6781_v31 = vpop.f32.mrf.mxu1  ;;  %v3386_v26 = vadd.f32 %v9943_v47, %v9942_v62  ;;  %v9948_v1 = vld [vmem:[#allocation30_spill] sm:$0xff] }
 0x216   : > { %v6150_v23 = vpack.c.bf16 %v5023_v46, %v5022_v8  ;;  %v5021_v28 = vadd.f32 %v4956_v33, %v4523_v49  ;;  %v5212_v6 = vadd.f32 %v5211_v25, %v5020_v35  ;;  %v4528_v38 = vadd.f32 %v6781_v31, %v9940_v24 }
 0x217   : > { %v4969_v11 = vpop.f32.mrf.mxu0  ;;  %v5283_v21 = vadd.f32 %v5282_v4, %v5252_v3  ;;  %v4471_v63 = vpop.f32.mrf.mxu1  ;;  %v5256_v13 = vmul.f32 %v5023_v46, %v5023_v46  ;;  %v3776_v36 = vadd.f32 %v9946_v57, %v3386_v26  ;;  %v3387_v22 = vadd.f32 %v9948_v1, %v9947_v58 }
 0x218   : > { %6182 = vst [vmem:[%s9634_s12 + $0x58] sm:$0xff] %v6150_v23   ;;  %v6145_v5 = vpack.c.bf16 %v5021_v28, %v5020_v35  ;;  %v5254_v30 = vmul.f32 %v5021_v28, %v5021_v28  ;;  %v4526_v55 = vadd.f32 %v4471_v63, %v3772_v20  ;;  %v5213_v39 = vadd.f32 %v5212_v6, %v5021_v28  ;;  %v9949_v35 = vld [vmem:[#allocation25_spill] sm:$0xff] }
 0x219   : > { %v6830_v56 = vpop.f32.mrf.mxu0  ;;  %v5284_v51 = vadd.f32 %v5283_v21, %v5253_v2  ;;  %v6782_v29 = vpop.f32.mrf.mxu1  ;;  %v5026_v33 = vadd.f32 %v6829_v43, %v4528_v38  ;;  %v3779_v42 = vadd.f32 %v9949_v35, %v3389_v50  ;;  %v3777_v23 = vadd.f32 %v9951_v0, %v3387_v22 }
 0x21a   : > { %6181 = vst [vmem:[%s9634_s12 + $0x50] sm:$0xff] %v6145_v5   ;;  %v4529_v60 = vadd.f32 %v6782_v29, %v3775_v61  ;;  %v5214_v54 = vadd.f32 %v5213_v39, %v5022_v8  ;;  %v5024_v48 = vadd.f32 %v4969_v11, %v4526_v55 }
 0x21b   : > { %v4972_v32 = vpop.f32.mrf.mxu0  ;;  %v5285_v40 = vadd.f32 %v5284_v51, %v5254_v30  ;;  %v4474_v19 = vpop.f32.mrf.mxu1 }
 0x21c   : > { %v5027_v34 = vadd.f32 %v6830_v56, %v4529_v60  ;;  %v4527_v59 = vadd.f32 %v4474_v19, %v3773_v18  ;;  %v5215_v44 = vadd.f32 %v5214_v54, %v5023_v46  ;;  %v5257_v43 = vmul.f32 %v5024_v48, %v5024_v48  ;;  %v9950_v46 = vld [vmem:[#allocation27_spill] sm:$0xff] }
 0x21d   : > { %v6833_v45 = vpop.f32.mrf.mxu0  ;;  %v5286_v16 = vadd.f32 %v5285_v40, %v5255_v41  ;;  %v6785_v7 = vpop.f32.mrf.mxu1  ;;  %v5259_v56 = vmul.f32 %v5026_v33, %v5026_v33 }
 0x21e   : > { %v6160_v53 = vpack.c.bf16 %v5027_v34, %v5026_v33  ;;  %v5025_v27 = vadd.f32 %v4972_v32, %v4527_v59  ;;  %v5216_v8 = vadd.f32 %v5215_v44, %v5024_v48  ;;  %v4532_v25 = vadd.f32 %v6785_v7, %v9950_v46  ;;  %v5192_v7 = vld [vmem:[%s9506_s7] sm:$0x1] }
 0x21f   : > { %v4985_v10 = vpop.f32.mrf.mxu0  ;;  %v5287_v49 = vadd.f32 %v5286_v16, %v5256_v13  ;;  %v4487_v11 = vpop.f32.mrf.mxu1  ;;  %v5260_v30 = vmul.f32 %v5027_v34, %v5027_v34 }
 0x220   : > { %6184 = vst [vmem:[%s9634_s12 + $0x68] sm:$0xff] %v6160_v53   ;;  %v6155_v3 = vpack.c.bf16 %v5025_v27, %v5024_v48  ;;  %v5258_v4 = vmul.f32 %v5025_v27, %v5025_v27  ;;  %v4530_v31 = vadd.f32 %v4487_v11, %v3776_v36  ;;  %v5217_v20 = vadd.f32 %v5216_v8, %v5025_v27  ;;  %v5232_v36 = vld [vmem:[%s9506_s7 + $0x1] sm:$0x1] }
 0x221   : > { %v5288_v15 = vadd.f32 %v5287_v49, %v5257_v43  ;;  %v6786_v52 = vpop.f32.mrf.mxu1  ;;  %v6834_v37 = vpop.f32.mrf.mxu0  ;;  %v5030_v21 = vadd.f32 %v6833_v45, %v4532_v25 }
 0x222   : > { %6183 = vst [vmem:[%s9634_s12 + $0x60] sm:$0xff] %v6155_v3   ;;  %v4533_v28 = vadd.f32 %v6786_v52, %v3779_v42  ;;  %v5218_v12 = vadd.f32 %v5217_v20, %v5026_v33  ;;  %v5028_v6 = vadd.f32 %v4985_v10, %v4530_v31 }
 0x223   : > { %v5289_v61 = vadd.f32 %v5288_v15, %v5258_v4  ;;  %v4490_v2 = vpop.f32.mrf.mxu1  ;;  %v4988_v55 = vpop.f32.mrf.mxu0  ;;  %v5263_v9 = vmul.f32 %v5030_v21, %v5030_v21 }
 0x224   : > { %v5031_v63 = vadd.f32 %v6834_v37, %v4533_v28  ;;  %v4531_v5 = vadd.f32 %v4490_v2, %v3777_v23  ;;  %v5219_v38 = vadd.f32 %v5218_v12, %v5027_v34  ;;  %v5261_v29 = vmul.f32 %v5028_v6, %v5028_v6 }
 0x225   : > { %v5290_v24 = vadd.f32 %v5289_v61, %v5259_v56 }
 0x226   : > { %v6170_v32 = vpack.c.bf16 %v5031_v63, %v5030_v21  ;;  %v5029_v51 = vadd.f32 %v4988_v55, %v4531_v5  ;;  %v5220_v39 = vadd.f32 %v5219_v38, %v5028_v6  ;;  %v5264_v60 = vmul.f32 %v5031_v63, %v5031_v63 }
 0x227   : > { %v5291_v17 = vadd.f32 %v5290_v24, %v5260_v30 }
 0x228   : > { %6186 = vst [vmem:[%s9634_s12 + $0x78] sm:$0xff] %v6170_v32   ;;  %v6165_v18 = vpack.c.bf16 %v5029_v51, %v5028_v6  ;;  %v5262_v62 = vmul.f32 %v5029_v51, %v5029_v51  ;;  %v5221_v26 = vadd.f32 %v5220_v39, %v5029_v51 }
 0x229   : > { %v5292_v47 = vadd.f32 %v5291_v17, %v5261_v29 }
 0x22a   : > { %6185 = vst [vmem:[%s9634_s12 + $0x70] sm:$0xff] %v6165_v18   ;;  %v5222_v14 = vadd.f32 %v5221_v26, %v5030_v21 }
 0x22b   : > { %v5293_v50 = vadd.f32 %v5292_v47, %v5262_v62 }
 0x22c   : > { %v5223_v45 = vadd.f32 %v5222_v14, %v5031_v63 }
 0x22d   : > { %v5294_v41 = vadd.f32 %v5293_v50, %v5263_v9 }
 0x22e   : > { %v5224_v54 = vrot.slane %v5223_v45, 4 }
 0x22f   : > { %v5295_v40 = vadd.f32 %v5294_v41, %v5264_v60 }
 0x230   : > { %v5225_v48 = vadd.f32 %v5224_v54, %v5223_v45 }
 0x231   : > { %v5296_v19 = vrot.slane %v5295_v40, 4 }
 0x232   : > { %v5226_v33 = vrot.slane %v5225_v48, 2 }
 0x233   : > { %v5297_v34 = vadd.f32 %v5296_v19, %v5295_v40 }
 0x234   : > { %v5227_v59 = vadd.f32 %v5226_v33, %v5225_v48 }
 0x235   : > { %v5298_v13 = vrot.slane %v5297_v34, 2 }
 0x236   : > { %v5228_v16 = vrot.slane %v5227_v59, 1 }
 0x237   : > { %v5299_v44 = vadd.f32 %v5298_v13, %v5297_v34 }
 0x238   : > { %v5229_v10 = vadd.f32 %v5228_v16, %v5227_v59 }
 0x239   : > { %v5300_v57 = vrot.slane %v5299_v44, 1 }
 0x23a   : > { %v5230_v58 = vadd.f32 %v5229_v10, %v5192_v7 }
 0x23b   : > { %v5301_v1 = vadd.f32 %v5300_v57, %v5299_v44 }
 0x23c   : > { %5231 = vst [vmem:[%s9506_s7] sm:$0x1] %v5230_v58 }
 0x23d   : > { %v5302_v22 = vadd.f32 %v5301_v1, %v5232_v36 }
 0x23f   : > { %5303 = vst [vmem:[%s9506_s7 + $0x1] sm:$0x1] %v5302_v22 }
 0x240 PF: > { %s14_s14 = sadd.s32 1, %s7028_s14   ;;  %s9952_s12 = smov %s7024_s13 }
 0x241   : > { %p11_p5 = scmp.ge.s32.totalorder %s14_s14, 4   ;;  %s9953_s13 = smov %s9955_s15 }
 0x243   :  { %13 = sbr.rel (!%p11_p5) target bundleno = 2 (0x2), region = 85 }

</bundles_post_ra>
